<compile_context>
chip_gen: v7x
topology: tpu7x:2x2x1
jax: 0.10.0
libtpu: 0.0.40
codegen_flags: <defaults>
</compile_context>

<pallas_src>
import functools

import jax
import jax.numpy as jnp
from jax.experimental import pallas as pl
from jax.experimental.pallas import tpu as pltpu

_LANE = 128      # lane width: last dim of MXU/VPU operands
_SUBLANE = 8     # sublane width: second-minor dim


def _round_up(x, m):
    return (x + m - 1) // m * m


# ----------------------------------------------------------------------------
# Per-generation VMEM budgeting / chunk selection
# ----------------------------------------------------------------------------
@functools.lru_cache(maxsize=1)
def _vmem_budgets():
    """(vmem_limit_bytes, per-chunk footprint budget), keyed off the chip."""
    try:
        cap = int(pltpu.get_tpu_info().vmem_capacity_bytes)
    except Exception:
        cap = 64 * 1024 * 1024        # conservative fallback (v7x physical VMEM)
    limit = min(cap * 3 // 4, 96 * 1024 * 1024)   # 96 MiB on 128 MiB parts, 48 MiB on v7x
    return limit, limit // 2


def _layer_vmem_bytes(t_chunk, B, D, H, O, last):
    bf16, f32 = 2, 4
    x_blk = 2 * t_chunk * B * D * bf16                        # double-buffered bf16 input
    weights = (D + H) * 4 * H * bf16 + 4 * H * f32            # single-buffered (VMEM-pinned)
    scratch = t_chunk * B * 4 * H * bf16 + 2 * B * H * f32    # gx (bf16) + h + c (f32)
    if last:
        out = B * O * f32 + H * O * bf16 + O * f32            # fc out + pinned fc weights
    else:
        out = 2 * t_chunk * B * H * bf16                      # double-buffered bf16 output
    return x_blk + weights + scratch + out


def _pick_t_chunk(S, B, D, H, O, last):
    """Largest divisor of S whose per-chunk VMEM footprint fits the budget."""
    budget = _vmem_budgets()[1]
    for tc in range(S, 0, -1):
        if S % tc == 0 and _layer_vmem_bytes(tc, B, D, H, O, last) <= budget:
            return tc
    # TODO(synk): pad S / mask a partial chunk instead of falling back to Tc=1.
    return 1


# ----------------------------------------------------------------------------
# Pallas kernels
# ----------------------------------------------------------------------------
def _lstm_chunk_recurrence(x_ref, wih_ref, whh_ref, b_ref,
                           gx_scr, h_scr, c_scr, out_ref=None):
    """Shared LSTM recurrence over one VMEM-resident time chunk.

    x_ref   : (Tc, B, D)  bf16   chunk of the (time-major) input sequence
    wih_ref : (D, 4H)     bf16   input->gates weights (gate-padded, lane-aligned)
    whh_ref : (H, 4H)     bf16   hidden->gates weights
    b_ref   : (1, 4H)     f32    combined bias (b_ih + b_hh)
    gx_scr  : (Tc, B, 4H) bf16   precomputed input projection (VMEM scratch)
    h_scr   : (B, H)      f32    persistent hidden state
    c_scr   : (B, H)      f32    persistent cell state
    out_ref : (Tc, B, H)  bf16   per-step hidden states (None for the last layer)
    """
    t_chunk, B, D = x_ref.shape
    H = whh_ref.shape[0]

    @pl.when(pl.program_id(0) == 0)
    def _init():
        h_scr[...] = jnp.zeros_like(h_scr)
        c_scr[...] = jnp.zeros_like(c_scr)

    # Batched input projection for the whole chunk (one big MXU matmul, bias
    # folded in) -- hoisted off the serial per-step critical path.  B is a
    # multiple of 8 and D / 4H multiples of 128, so the reshapes are layout
    # no-ops.
    x2 = x_ref[...].reshape(t_chunk * B, D)
    gx = jnp.dot(x2, wih_ref[...], preferred_element_type=jnp.float32) + b_ref[...]
    gx_scr[...] = gx.reshape(t_chunk, B, 4 * H).astype(gx_scr.dtype)

    whh = whh_ref[...]  # bf16, hoisted; lives across the loop
    # TODO(synk): hold W_hh in MXU staging registers across the time loop
    # (pltpu.matmul_push_rhs / matmul_acc_lhs / matmul_pop) so the per-step
    # serial cost is only the small LHS push, not the (H, 4H) RHS push.

    def step(t, carry):
        h, c_prev = carry
        gates = gx_scr[t].astype(jnp.float32) + jnp.dot(
            h.astype(jnp.bfloat16), whh, preferred_element_type=jnp.float32)
        # PyTorch gate order: i, f, g, o.  H is a multiple of 128, so each
        # slice is a lane-aligned vreg view (no masked/XLU work on the serial
        # path).
        i_g = jax.nn.sigmoid(gates[:, 0 * H:1 * H])
        f_g = jax.nn.sigmoid(gates[:, 1 * H:2 * H])
        g_g = jnp.tanh(gates[:, 2 * H:3 * H])
        o_g = jax.nn.sigmoid(gates[:, 3 * H:4 * H])
        c_new = f_g * c_prev + i_g * g_g
        h_new = o_g * jnp.tanh(c_new)
        if out_ref is not None:
            out_ref[t] = h_new.astype(out_ref.dtype)
        return h_new, c_new

    # Full unroll only for tiny Tc*H; cap at 4 otherwise to stay inside the
    # 64-vreg file (gates + h/c + activations live per unrolled step).
    if t_chunk * H <= 1024:
        unroll = True
    else:
        unroll = min(4, t_chunk)
    h_f, c_f = jax.lax.fori_loop(0, t_chunk, step, (h_scr[...], c_scr[...]),
                                 unroll=unroll)
    h_scr[...] = h_f
    c_scr[...] = c_f


def _lstm_layer_seq_kernel(x_ref, wih_ref, whh_ref, b_ref, out_ref,
                           gx_scr, h_scr, c_scr):
    """One (non-final) LSTM layer over a time chunk; writes the hidden seq."""
    _lstm_chunk_recurrence(x_ref, wih_ref, whh_ref, b_ref,
                           gx_scr, h_scr, c_scr, out_ref=out_ref)


def _lstm_last_layer_fc_kernel(x_ref, wih_ref, whh_ref, b_ref, wfc_ref, bfc_ref,
                               fc_ref, gx_scr, h_scr, c_scr):
    """Last LSTM layer fused with the Linear head (per-step h never hits HBM)."""
    _lstm_chunk_recurrence(x_ref, wih_ref, whh_ref, b_ref,
                           gx_scr, h_scr, c_scr, out_ref=None)

    @pl.when(pl.program_id(0) == pl.num_programs(0) - 1)
    def _head():
        # nn.Dropout is identity in eval mode.
        # TODO(synk): training-mode dropout masking is not implemented.
        fc_ref[...] = (
            jnp.dot(h_scr[...].astype(jnp.bfloat16), wfc_ref[...],
                    preferred_element_type=jnp.float32) + bfc_ref[...]
        ).astype(fc_ref.dtype)


# ----------------------------------------------------------------------------
# pallas_call wrappers
# ----------------------------------------------------------------------------
def lstm_layer_seq(seq_tm, w_ih_t, w_hh_t, bias):
    """One (non-final) LSTM layer.  seq_tm: (S, B, D) bf16 -> (S, B, H) bf16."""
    S, B, D = seq_tm.shape
    H = w_hh_t.shape[0]
    assert B % _SUBLANE == 0 and D % _LANE == 0 and H % _LANE == 0
    Tc = _pick_t_chunk(S, B, D, H, O=0, last=False)
    vmem_limit, _ = _vmem_budgets()

    return pl.pallas_call(
        _lstm_layer_seq_kernel,
        out_shape=jax.ShapeDtypeStruct((S, B, H), jnp.bfloat16),
        grid_spec=pltpu.PrefetchScalarGridSpec(
            num_scalar_prefetch=0,
            grid=(S // Tc,),
            in_specs=[
                pl.BlockSpec((Tc, B, D), lambda c: (c, 0, 0)),
                # Constant-index weights: pin the whole array in VMEM (single
                # buffer) instead of the default double-buffered pipeline.
                pl.BlockSpec(memory_space=pltpu.MemorySpace.VMEM),  # W_ih (D,4H) bf16
                pl.BlockSpec(memory_space=pltpu.MemorySpace.VMEM),  # W_hh (H,4H) bf16
                pl.BlockSpec(memory_space=pltpu.MemorySpace.VMEM),  # bias (1,4H) f32
            ],
            out_specs=pl.BlockSpec((Tc, B, H), lambda c: (c, 0, 0)),
            scratch_shapes=[
                pltpu.VMEM((Tc, B, 4 * H), jnp.bfloat16),   # gx scratch (bf16)
                pltpu.VMEM((B, H), jnp.float32),            # h
                pltpu.VMEM((B, H), jnp.float32),            # c
            ],
        ),
        compiler_params=pltpu.CompilerParams(
            dimension_semantics=("arbitrary",),   # time recurrence is serial
            vmem_limit_bytes=vmem_limit,
        ),
    )(seq_tm, w_ih_t, w_hh_t, bias)


def lstm_last_layer_fc(seq_tm, w_ih_t, w_hh_t, bias, w_fc_t, b_fc):
    """Last LSTM layer + fused Linear head.  (S, B, D) bf16 -> (B, O) f32."""
    S, B, D = seq_tm.shape
    H = w_hh_t.shape[0]
    O = w_fc_t.shape[1]
    assert B % _SUBLANE == 0 and D % _LANE == 0 and H % _LANE == 0 and O % _LANE == 0
    Tc = _pick_t_chunk(S, B, D, H, O, last=True)
    vmem_limit, _ = _vmem_budgets()

    return pl.pallas_call(
        _lstm_last_layer_fc_kernel,
        out_shape=jax.ShapeDtypeStruct((B, O), jnp.float32),
        grid_spec=pltpu.PrefetchScalarGridSpec(
            num_scalar_prefetch=0,
            grid=(S // Tc,),
            in_specs=[
                pl.BlockSpec((Tc, B, D), lambda c: (c, 0, 0)),
                pl.BlockSpec(memory_space=pltpu.MemorySpace.VMEM),  # W_ih
                pl.BlockSpec(memory_space=pltpu.MemorySpace.VMEM),  # W_hh
                pl.BlockSpec(memory_space=pltpu.MemorySpace.VMEM),  # bias
                pl.BlockSpec(memory_space=pltpu.MemorySpace.VMEM),  # W_fc (H,O) bf16
                pl.BlockSpec(memory_space=pltpu.MemorySpace.VMEM),  # b_fc (1,O) f32
            ],
            out_specs=pl.BlockSpec((B, O), lambda c: (0, 0)),
            scratch_shapes=[
                pltpu.VMEM((Tc, B, 4 * H), jnp.bfloat16),
                pltpu.VMEM((B, H), jnp.float32),
                pltpu.VMEM((B, H), jnp.float32),
            ],
        ),
        compiler_params=pltpu.CompilerParams(
            dimension_semantics=("arbitrary",),
            vmem_limit_bytes=vmem_limit,
        ),
    )(seq_tm, w_ih_t, w_hh_t, bias, w_fc_t, b_fc)


@functools.partial(jax.jit, static_argnames=("num_layers", "output_dim"))
def lstm_model_forward(x, params, num_layers, output_dim):
    """Forward pass matching the PyTorch module in eval mode.

    x: (B, S, input_dim), batch_first, as in PyTorch.
    """
    B, S, D_in = x.shape
    B_p = _round_up(B, _SUBLANE)
    D0_p = params["lstm"][0]["w_ih_t"].shape[0]

    # Time-major, zero-pad batch to a sublane multiple and the feature dim to
    # the padded weight layout; cast to bf16 for the MXU.
    seq = jnp.transpose(x, (1, 0, 2)).astype(jnp.float32)
    seq = jnp.pad(seq, ((0, 0), (0, B_p - B), (0, D0_p - D_in)))
    seq = seq.astype(jnp.bfloat16)

    # TODO(synk): v7x layer-wavefront across the two TensorCores, or one
    # (layer, chunk)-grid pallas_call, would remove the per-layer HBM round
    # trip; here the inter-layer sequence is at least written/read in bf16.
    for layer in range(num_layers - 1):
        p = params["lstm"][layer]
        seq = lstm_layer_seq(seq, p["w_ih_t"], p["w_hh_t"], p["bias"])
    p = params["lstm"][num_layers - 1]
    out_p = lstm_last_layer_fc(seq, p["w_ih_t"], p["w_hh_t"], p["bias"],
                               params["fc"]["w_t"], params["fc"]["b"])
    return out_p[:B, :output_dim]


# ----------------------------------------------------------------------------
# Parameter init (PyTorch layout) + kernel-layout preparation (pad / cast)
# ----------------------------------------------------------------------------
def init_params(key, input_dim, hidden_dim, num_layers, output_dim):
    """PyTorch-style uniform(-1/sqrt(H), 1/sqrt(H)) init, PyTorch layouts."""
    bound = float(hidden_dim) ** -0.5
    raw = {"lstm": [], "fc": {}}
    for layer in range(num_layers):
        d_in = input_dim if layer == 0 else hidden_dim
        key, k1, k2, k3, k4 = jax.random.split(key, 5)
        raw["lstm"].append({
            "w_ih": jax.random.uniform(k1, (4 * hidden_dim, d_in), jnp.float32, -bound, bound),
            "w_hh": jax.random.uniform(k2, (4 * hidden_dim, hidden_dim), jnp.float32, -bound, bound),
            "b_ih": jax.random.uniform(k3, (4 * hidden_dim,), jnp.float32, -bound, bound),
            "b_hh": jax.random.uniform(k4, (4 * hidden_dim,), jnp.float32, -bound, bound),
        })
    key, k1, k2 = jax.random.split(key, 3)
    raw["fc"]["w"] = jax.random.uniform(k1, (output_dim, hidden_dim), jnp.float32, -bound, bound)
    raw["fc"]["b"] = jax.random.uniform(k2, (output_dim,), jnp.float32, -bound, bound)
    return raw


def _pad_gates_cols(w_t, h, h_p):
    """(rows, 4h) -> (rows, 4h_p): zero-pad each of the i/f/g/o gate blocks."""
    rows = w_t.shape[0]
    out = jnp.zeros((rows, 4 * h_p), w_t.dtype)
    for g in range(4):
        out = out.at[:, g * h_p:g * h_p + h].set(w_t[:, g * h:(g + 1) * h])
    return out


def prepare_params(raw, input_dim, hidden_dim, output_dim):
    """Transpose to (in, out) layout, zero-pad every feature dim to a lane
    multiple (padded hidden lanes stay exactly zero through the recurrence, so
    results are unchanged) and cast matmul operands to bf16 (bias stays f32)."""
    H = hidden_dim
    Hp = _round_up(H, _LANE)
    Op = _round_up(output_dim, _LANE)
    D0p = _round_up(input_dim, _LANE)
    params = {"lstm": [], "fc": {}}
    for layer, p in enumerate(raw["lstm"]):
        d_in = input_dim if layer == 0 else hidden_dim
        d_in_p = D0p if layer == 0 else Hp
        w_ih_t = jnp.zeros((d_in_p, 4 * H), jnp.float32).at[:d_in, :].set(p["w_ih"].T)
        w_hh_t = jnp.zeros((Hp, 4 * H), jnp.float32).at[:H, :].set(p["w_hh"].T)
        bias = (p["b_ih"] + p["b_hh"])[None, :]
        params["lstm"].append({
            "w_ih_t": _pad_gates_cols(w_ih_t, H, Hp).astype(jnp.bfloat16),  # (Din_p, 4Hp)
            "w_hh_t": _pad_gates_cols(w_hh_t, H, Hp).astype(jnp.bfloat16),  # (Hp, 4Hp)
            "bias": _pad_gates_cols(bias, H, Hp).astype(jnp.float32),       # (1, 4Hp)
        })
    w_fc_t = jnp.zeros((Hp, Op), jnp.float32).at[:H, :output_dim].set(raw["fc"]["w"].T)
    b_fc = jnp.zeros((1, Op), jnp.float32).at[0, :output_dim].set(raw["fc"]["b"])
    params["fc"]["w_t"] = w_fc_t.astype(jnp.bfloat16)
    params["fc"]["b"] = b_fc
    return params


# ----------------------------------------------------------------------------
# Pure-JAX reference (mirrors the kernel numerics: bf16 matmul operands,
# f32 accumulation / recurrence, bf16 gx round trip)
# ----------------------------------------------------------------------------
def reference_forward(x, raw, num_layers, hidden_dim):
    bf16 = jnp.bfloat16
    B = x.shape[0]
    H = hidden_dim
    seq = jnp.transpose(x, (1, 0, 2)).astype(jnp.float32)  # (S, B, D)
    for layer in range(num_layers):
        p = raw["lstm"][layer]
        w_ih_t = p["w_ih"].T.astype(bf16)
        w_hh_t = p["w_hh"].T.astype(bf16)
        bias = (p["b_ih"] + p["b_hh"])[None, :]

        def step(carry, x_t, w_ih_t=w_ih_t, w_hh_t=w_hh_t, bias=bias):
            h, c = carry
            gx = jnp.dot(x_t.astype(bf16), w_ih_t,
                         preferred_element_type=jnp.float32) + bias
            gx = gx.astype(bf16).astype(jnp.float32)          # bf16 gx scratch
            gates = gx + jnp.dot(h.astype(bf16), w_hh_t,
                                 preferred_element_type=jnp.float32)
            i = jax.nn.sigmoid(gates[:, 0 * H:1 * H])
            f = jax.nn.sigmoid(gates[:, 1 * H:2 * H])
            g = jnp.tanh(gates[:, 2 * H:3 * H])
            o = jax.nn.sigmoid(gates[:, 3 * H:4 * H])
            c = f * c + i * g
            h = o * jnp.tanh(c)
            return (h, c), h

        h0 = jnp.zeros((B, H), jnp.float32)
        c0 = jnp.zeros((B, H), jnp.float32)
        _, seq = jax.lax.scan(step, (h0, c0), seq)
    h_last = seq[-1]
    return (jnp.dot(h_last.astype(bf16), raw["fc"]["w"].T.astype(bf16),
                    preferred_element_type=jnp.float32) + raw["fc"]["b"][None, :])


# ----------------------------------------------------------------------------
if __name__ == "__main__":
    # Small shapes consistent with the module's forward (batch_first LSTM).
    batch = 8
    seq_len = 8
    input_dim = 16
    hidden_dim = 32
    num_layers = 2
    output_dim = 4

    key = jax.random.PRNGKey(0)
    key, xk = jax.random.split(key)
    x = jax.random.normal(xk, (batch, seq_len, input_dim), jnp.float32)

    raw = init_params(key, input_dim, hidden_dim, num_layers, output_dim)
    params = prepare_params(raw, input_dim, hidden_dim, output_dim)

    out = lstm_model_forward(x, params, num_layers=num_layers, output_dim=output_dim)
    out = jax.block_until_ready(out)
    assert out.shape == (batch, output_dim)

    ref = reference_forward(x, raw, num_layers, hidden_dim)
    max_err = float(jnp.max(jnp.abs(out - ref)))
    assert max_err < 1e-2, f"max abs error too large: {max_err}"

    print("KERNEL_OK")
</pallas_src>

<mosaic_0001>
module attributes {stable_mosaic.version = 11 : i64} {
  func.func @_lstm_last_layer_fc_kernel(%arg0: i32, %arg1: memref<8x8x128xbf16, #tpu.memory_space<vmem>>, %arg2: memref<128x512xbf16, #tpu.memory_space<vmem>>, %arg3: memref<128x512xbf16, #tpu.memory_space<vmem>>, %arg4: memref<1x512xf32, #tpu.memory_space<vmem>>, %arg5: memref<128x128xbf16, #tpu.memory_space<vmem>>, %arg6: memref<1x128xf32, #tpu.memory_space<vmem>>, %arg7: memref<8x128xf32, #tpu.memory_space<vmem>>, %arg8: memref<8x8x512xbf16, #tpu.memory_space<vmem>>, %arg9: memref<8x128xf32, #tpu.memory_space<vmem>>, %arg10: memref<8x128xf32, #tpu.memory_space<vmem>>) attributes {dimension_semantics = [#tpu.dimension_semantics<arbitrary>], iteration_bounds = array<i64: 1>, scalar_prefetch = 0 : i64, scratch_operands = 3 : i64, tpu.core_type = #tpu.core_type<tc>, window_params = [{transform_indices = @transform_0, window_bounds = array<i64: 8, 8, 128>}, {pipeline_mode = #tpu.pipeline_mode<synchronous>, transform_indices = @transform_1, window_bounds = array<i64: 128, 512>}, {pipeline_mode = #tpu.pipeline_mode<synchronous>, transform_indices = @transform_2, window_bounds = array<i64: 128, 512>}, {pipeline_mode = #tpu.pipeline_mode<synchronous>, transform_indices = @transform_3, window_bounds = array<i64: 1, 512>}, {pipeline_mode = #tpu.pipeline_mode<synchronous>, transform_indices = @transform_4, window_bounds = array<i64: 128, 128>}, {pipeline_mode = #tpu.pipeline_mode<synchronous>, transform_indices = @transform_5, window_bounds = array<i64: 1, 128>}, {pipeline_mode = #tpu.pipeline_mode<synchronous>, transform_indices = @transform_6, window_bounds = array<i64: 8, 128>}]} {
    %c0_i32 = arith.constant 0 : i32
    %0 = arith.cmpi eq, %arg0, %c0_i32 : i32
    %1 = arith.extui %0 : i1 to i32
    %c0_i32_0 = arith.constant 0 : i32
    %2 = arith.cmpi ne, %1, %c0_i32_0 : i32
    scf.if %2 {
      %cst_71 = arith.constant 0.000000e+00 : f32
      %277 = vector.broadcast %cst_71 : f32 to vector<8x128xf32>
      %c0_72 = arith.constant 0 : index
      %c0_73 = arith.constant 0 : index
      %278 = vector.load %arg9[%c0_72, %c0_73] : memref<8x128xf32, #tpu.memory_space<vmem>>, vector<8x128xf32>
      tpu.vector_store %arg9[%c0_72, %c0_73], %277 {strides = array<i32>} : memref<8x128xf32, #tpu.memory_space<vmem>>, vector<8x128xf32>,
      %cst_74 = arith.constant 0.000000e+00 : f32
      %279 = vector.broadcast %cst_74 : f32 to vector<8x128xf32>
      %c0_75 = arith.constant 0 : index
      %c0_76 = arith.constant 0 : index
      %280 = vector.load %arg10[%c0_75, %c0_76] : memref<8x128xf32, #tpu.memory_space<vmem>>, vector<8x128xf32>
      tpu.vector_store %arg10[%c0_75, %c0_76], %279 {strides = array<i32>} : memref<8x128xf32, #tpu.memory_space<vmem>>, vector<8x128xf32>,
    } else {
    }
    %c0 = arith.constant 0 : index
    %c0_1 = arith.constant 0 : index
    %c0_2 = arith.constant 0 : index
    %3 = vector.load %arg1[%c0, %c0_1, %c0_2] : memref<8x8x128xbf16, #tpu.memory_space<vmem>>, vector<8x8x128xbf16>
    %4 = vector.shape_cast %3 : vector<8x8x128xbf16> to vector<64x128xbf16>
    %c0_3 = arith.constant 0 : index
    %c0_4 = arith.constant 0 : index
    %5 = vector.load %arg2[%c0_3, %c0_4] : memref<128x512xbf16, #tpu.memory_space<vmem>>, vector<128x512xbf16>
    %cst = arith.constant dense<0.000000e+00> : vector<64x512xf32>
    %6 = tpu.matmul %4, %5, %cst {dimension_numbers = #tpu.dot_dimension_numbers<[1], [0], [0], [1], [0, 0, 1, 1], [], []>} : vector<64x128xbf16>, vector<128x512xbf16>, vector<64x512xf32> -> vector<64x512xf32>
    %c0_5 = arith.constant 0 : index
    %c0_6 = arith.constant 0 : index
    %7 = vector.load %arg4[%c0_5, %c0_6] : memref<1x512xf32, #tpu.memory_space<vmem>>, vector<1x512xf32>
    %8 = vector.broadcast %7 : vector<1x512xf32> to vector<64x512xf32>
    %9 = arith.addf %6, %8 : vector<64x512xf32>
    %10 = vector.shape_cast %9 : vector<64x512xf32> to vector<8x8x512xf32>
    %11 = arith.truncf %10 : vector<8x8x512xf32> to vector<8x8x512xbf16>
    %c0_7 = arith.constant 0 : index
    %c0_8 = arith.constant 0 : index
    %c0_9 = arith.constant 0 : index
    %12 = vector.load %arg8[%c0_7, %c0_8, %c0_9] : memref<8x8x512xbf16, #tpu.memory_space<vmem>>, vector<8x8x512xbf16>
    tpu.vector_store %arg8[%c0_7, %c0_8, %c0_9], %11 {strides = array<i32>} : memref<8x8x512xbf16, #tpu.memory_space<vmem>>, vector<8x8x512xbf16>,
    %c0_10 = arith.constant 0 : index
    %c0_11 = arith.constant 0 : index
    %13 = vector.load %arg3[%c0_10, %c0_11] : memref<128x512xbf16, #tpu.memory_space<vmem>>, vector<128x512xbf16>
    %c0_12 = arith.constant 0 : index
    %c0_13 = arith.constant 0 : index
    %14 = vector.load %arg9[%c0_12, %c0_13] : memref<8x128xf32, #tpu.memory_space<vmem>>, vector<8x128xf32>
    %c0_14 = arith.constant 0 : index
    %c0_15 = arith.constant 0 : index
    %15 = vector.load %arg10[%c0_14, %c0_15] : memref<8x128xf32, #tpu.memory_space<vmem>>, vector<8x128xf32>
    %c0_i32_16 = arith.constant 0 : i32
    %16 = arith.index_cast %c0_i32_16 : i32 to index
    %c0_17 = arith.constant 0 : index
    %c0_18 = arith.constant 0 : index
    %17 = vector.load %arg8[%16, %c0_17, %c0_18] : memref<8x8x512xbf16, #tpu.memory_space<vmem>>, vector<1x8x512xbf16>
    %18 = vector.shape_cast %17 : vector<1x8x512xbf16> to vector<8x512xbf16>
    %19 = arith.extf %18 : vector<8x512xbf16> to vector<8x512xf32>
    %20 = arith.truncf %14 : vector<8x128xf32> to vector<8x128xbf16>
    %cst_19 = arith.constant dense<0.000000e+00> : vector<8x512xf32>
    %21 = tpu.matmul %20, %13, %cst_19 {dimension_numbers = #tpu.dot_dimension_numbers<[1], [0], [0], [1], [0, 0, 1, 1], [], []>} : vector<8x128xbf16>, vector<128x512xbf16>, vector<8x512xf32> -> vector<8x512xf32>
    %22 = arith.addf %19, %21 : vector<8x512xf32>
    %23 = vector.extract_strided_slice %22 {offsets = [0, 0], sizes = [8, 128], strides = [1, 1]} : vector<8x512xf32> to vector<8x128xf32>
    %24 = arith.negf %23 : vector<8x128xf32>
    %25 = math.exp %24 : vector<8x128xf32>
    %cst_20 = arith.constant 1.000000e+00 : f32
    %26 = vector.broadcast %cst_20 : f32 to vector<8x128xf32>
    %27 = arith.addf %26, %25 : vector<8x128xf32>
    %28 = arith.divf %26, %27 : vector<8x128xf32>
    %29 = vector.extract_strided_slice %22 {offsets = [0, 128], sizes = [8, 128], strides = [1, 1]} : vector<8x512xf32> to vector<8x128xf32>
    %30 = arith.negf %29 : vector<8x128xf32>
    %31 = math.exp %30 : vector<8x128xf32>
    %cst_21 = arith.constant 1.000000e+00 : f32
    %32 = vector.broadcast %cst_21 : f32 to vector<8x128xf32>
    %33 = arith.addf %32, %31 : vector<8x128xf32>
    %34 = arith.divf %32, %33 : vector<8x128xf32>
    %35 = vector.extract_strided_slice %22 {offsets = [0, 256], sizes = [8, 128], strides = [1, 1]} : vector<8x512xf32> to vector<8x128xf32>
    %36 = math.tanh %35 : vector<8x128xf32>
    %37 = vector.extract_strided_slice %22 {offsets = [0, 384], sizes = [8, 128], strides = [1, 1]} : vector<8x512xf32> to vector<8x128xf32>
    %38 = arith.negf %37 : vector<8x128xf32>
    %39 = math.exp %38 : vector<8x128xf32>
    %cst_22 = arith.constant 1.000000e+00 : f32
    %40 = vector.broadcast %cst_22 : f32 to vector<8x128xf32>
    %41 = arith.addf %40, %39 : vector<8x128xf32>
    %42 = arith.divf %40, %41 : vector<8x128xf32>
    %43 = arith.mulf %34, %15 : vector<8x128xf32>
    %44 = arith.mulf %28, %36 : vector<8x128xf32>
    %45 = arith.addf %43, %44 : vector<8x128xf32>
    %46 = math.tanh %45 : vector<8x128xf32>
    %47 = arith.mulf %42, %46 : vector<8x128xf32>
    %c1_i32 = arith.constant 1 : i32
    %48 = arith.index_cast %c1_i32 : i32 to index
    %c0_23 = arith.constant 0 : index
    %c0_24 = arith.constant 0 : index
    %49 = vector.load %arg8[%48, %c0_23, %c0_24] : memref<8x8x512xbf16, #tpu.memory_space<vmem>>, vector<1x8x512xbf16>
    %50 = vector.shape_cast %49 : vector<1x8x512xbf16> to vector<8x512xbf16>
    %51 = arith.extf %50 : vector<8x512xbf16> to vector<8x512xf32>
    %52 = arith.truncf %47 : vector<8x128xf32> to vector<8x128xbf16>
    %cst_25 = arith.constant dense<0.000000e+00> : vector<8x512xf32>
    %53 = tpu.matmul %52, %13, %cst_25 {dimension_numbers = #tpu.dot_dimension_numbers<[1], [0], [0], [1], [0, 0, 1, 1], [], []>} : vector<8x128xbf16>, vector<128x512xbf16>, vector<8x512xf32> -> vector<8x512xf32>
    %54 = arith.addf %51, %53 : vector<8x512xf32>
    %55 = vector.extract_strided_slice %54 {offsets = [0, 0], sizes = [8, 128], strides = [1, 1]} : vector<8x512xf32> to vector<8x128xf32>
    %56 = arith.negf %55 : vector<8x128xf32>
    %57 = math.exp %56 : vector<8x128xf32>
    %cst_26 = arith.constant 1.000000e+00 : f32
    %58 = vector.broadcast %cst_26 : f32 to vector<8x128xf32>
    %59 = arith.addf %58, %57 : vector<8x128xf32>
    %60 = arith.divf %58, %59 : vector<8x128xf32>
    %61 = vector.extract_strided_slice %54 {offsets = [0, 128], sizes = [8, 128], strides = [1, 1]} : vector<8x512xf32> to vector<8x128xf32>
    %62 = arith.negf %61 : vector<8x128xf32>
    %63 = math.exp %62 : vector<8x128xf32>
    %cst_27 = arith.constant 1.000000e+00 : f32
    %64 = vector.broadcast %cst_27 : f32 to vector<8x128xf32>
    %65 = arith.addf %64, %63 : vector<8x128xf32>
    %66 = arith.divf %64, %65 : vector<8x128xf32>
    %67 = vector.extract_strided_slice %54 {offsets = [0, 256], sizes = [8, 128], strides = [1, 1]} : vector<8x512xf32> to vector<8x128xf32>
    %68 = math.tanh %67 : vector<8x128xf32>
    %69 = vector.extract_strided_slice %54 {offsets = [0, 384], sizes = [8, 128], strides = [1, 1]} : vector<8x512xf32> to vector<8x128xf32>
    %70 = arith.negf %69 : vector<8x128xf32>
    %71 = math.exp %70 : vector<8x128xf32>
    %cst_28 = arith.constant 1.000000e+00 : f32
    %72 = vector.broadcast %cst_28 : f32 to vector<8x128xf32>
    %73 = arith.addf %72, %71 : vector<8x128xf32>
    %74 = arith.divf %72, %73 : vector<8x128xf32>
    %75 = arith.mulf %66, %45 : vector<8x128xf32>
    %76 = arith.mulf %60, %68 : vector<8x128xf32>
    %77 = arith.addf %75, %76 : vector<8x128xf32>
    %78 = math.tanh %77 : vector<8x128xf32>
    %79 = arith.mulf %74, %78 : vector<8x128xf32>
    %c2_i32 = arith.constant 2 : i32
    %80 = arith.index_cast %c2_i32 : i32 to index
    %c0_29 = arith.constant 0 : index
    %c0_30 = arith.constant 0 : index
    %81 = vector.load %arg8[%80, %c0_29, %c0_30] : memref<8x8x512xbf16, #tpu.memory_space<vmem>>, vector<1x8x512xbf16>
    %82 = vector.shape_cast %81 : vector<1x8x512xbf16> to vector<8x512xbf16>
    %83 = arith.extf %82 : vector<8x512xbf16> to vector<8x512xf32>
    %84 = arith.truncf %79 : vector<8x128xf32> to vector<8x128xbf16>
    %cst_31 = arith.constant dense<0.000000e+00> : vector<8x512xf32>
    %85 = tpu.matmul %84, %13, %cst_31 {dimension_numbers = #tpu.dot_dimension_numbers<[1], [0], [0], [1], [0, 0, 1, 1], [], []>} : vector<8x128xbf16>, vector<128x512xbf16>, vector<8x512xf32> -> vector<8x512xf32>
    %86 = arith.addf %83, %85 : vector<8x512xf32>
    %87 = vector.extract_strided_slice %86 {offsets = [0, 0], sizes = [8, 128], strides = [1, 1]} : vector<8x512xf32> to vector<8x128xf32>
    %88 = arith.negf %87 : vector<8x128xf32>
    %89 = math.exp %88 : vector<8x128xf32>
    %cst_32 = arith.constant 1.000000e+00 : f32
    %90 = vector.broadcast %cst_32 : f32 to vector<8x128xf32>
    %91 = arith.addf %90, %89 : vector<8x128xf32>
    %92 = arith.divf %90, %91 : vector<8x128xf32>
    %93 = vector.extract_strided_slice %86 {offsets = [0, 128], sizes = [8, 128], strides = [1, 1]} : vector<8x512xf32> to vector<8x128xf32>
    %94 = arith.negf %93 : vector<8x128xf32>
    %95 = math.exp %94 : vector<8x128xf32>
    %cst_33 = arith.constant 1.000000e+00 : f32
    %96 = vector.broadcast %cst_33 : f32 to vector<8x128xf32>
    %97 = arith.addf %96, %95 : vector<8x128xf32>
    %98 = arith.divf %96, %97 : vector<8x128xf32>
    %99 = vector.extract_strided_slice %86 {offsets = [0, 256], sizes = [8, 128], strides = [1, 1]} : vector<8x512xf32> to vector<8x128xf32>
    %100 = math.tanh %99 : vector<8x128xf32>
    %101 = vector.extract_strided_slice %86 {offsets = [0, 384], sizes = [8, 128], strides = [1, 1]} : vector<8x512xf32> to vector<8x128xf32>
    %102 = arith.negf %101 : vector<8x128xf32>
    %103 = math.exp %102 : vector<8x128xf32>
    %cst_34 = arith.constant 1.000000e+00 : f32
    %104 = vector.broadcast %cst_34 : f32 to vector<8x128xf32>
    %105 = arith.addf %104, %103 : vector<8x128xf32>
    %106 = arith.divf %104, %105 : vector<8x128xf32>
    %107 = arith.mulf %98, %77 : vector<8x128xf32>
    %108 = arith.mulf %92, %100 : vector<8x128xf32>
    %109 = arith.addf %107, %108 : vector<8x128xf32>
    %110 = math.tanh %109 : vector<8x128xf32>
    %111 = arith.mulf %106, %110 : vector<8x128xf32>
    %c3_i32 = arith.constant 3 : i32
    %112 = arith.index_cast %c3_i32 : i32 to index
    %c0_35 = arith.constant 0 : index
    %c0_36 = arith.constant 0 : index
    %113 = vector.load %arg8[%112, %c0_35, %c0_36] : memref<8x8x512xbf16, #tpu.memory_space<vmem>>, vector<1x8x512xbf16>
    %114 = vector.shape_cast %113 : vector<1x8x512xbf16> to vector<8x512xbf16>
    %115 = arith.extf %114 : vector<8x512xbf16> to vector<8x512xf32>
    %116 = arith.truncf %111 : vector<8x128xf32> to vector<8x128xbf16>
    %cst_37 = arith.constant dense<0.000000e+00> : vector<8x512xf32>
    %117 = tpu.matmul %116, %13, %cst_37 {dimension_numbers = #tpu.dot_dimension_numbers<[1], [0], [0], [1], [0, 0, 1, 1], [], []>} : vector<8x128xbf16>, vector<128x512xbf16>, vector<8x512xf32> -> vector<8x512xf32>
    %118 = arith.addf %115, %117 : vector<8x512xf32>
    %119 = vector.extract_strided_slice %118 {offsets = [0, 0], sizes = [8, 128], strides = [1, 1]} : vector<8x512xf32> to vector<8x128xf32>
    %120 = arith.negf %119 : vector<8x128xf32>
    %121 = math.exp %120 : vector<8x128xf32>
    %cst_38 = arith.constant 1.000000e+00 : f32
    %122 = vector.broadcast %cst_38 : f32 to vector<8x128xf32>
    %123 = arith.addf %122, %121 : vector<8x128xf32>
    %124 = arith.divf %122, %123 : vector<8x128xf32>
    %125 = vector.extract_strided_slice %118 {offsets = [0, 128], sizes = [8, 128], strides = [1, 1]} : vector<8x512xf32> to vector<8x128xf32>
    %126 = arith.negf %125 : vector<8x128xf32>
    %127 = math.exp %126 : vector<8x128xf32>
    %cst_39 = arith.constant 1.000000e+00 : f32
    %128 = vector.broadcast %cst_39 : f32 to vector<8x128xf32>
    %129 = arith.addf %128, %127 : vector<8x128xf32>
    %130 = arith.divf %128, %129 : vector<8x128xf32>
    %131 = vector.extract_strided_slice %118 {offsets = [0, 256], sizes = [8, 128], strides = [1, 1]} : vector<8x512xf32> to vector<8x128xf32>
    %132 = math.tanh %131 : vector<8x128xf32>
    %133 = vector.extract_strided_slice %118 {offsets = [0, 384], sizes = [8, 128], strides = [1, 1]} : vector<8x512xf32> to vector<8x128xf32>
    %134 = arith.negf %133 : vector<8x128xf32>
    %135 = math.exp %134 : vector<8x128xf32>
    %cst_40 = arith.constant 1.000000e+00 : f32
    %136 = vector.broadcast %cst_40 : f32 to vector<8x128xf32>
    %137 = arith.addf %136, %135 : vector<8x128xf32>
    %138 = arith.divf %136, %137 : vector<8x128xf32>
    %139 = arith.mulf %130, %109 : vector<8x128xf32>
    %140 = arith.mulf %124, %132 : vector<8x128xf32>
    %141 = arith.addf %139, %140 : vector<8x128xf32>
    %142 = math.tanh %141 : vector<8x128xf32>
    %143 = arith.mulf %138, %142 : vector<8x128xf32>
    %c4_i32 = arith.constant 4 : i32
    %144 = arith.index_cast %c4_i32 : i32 to index
    %c0_41 = arith.constant 0 : index
    %c0_42 = arith.constant 0 : index
    %145 = vector.load %arg8[%144, %c0_41, %c0_42] : memref<8x8x512xbf16, #tpu.memory_space<vmem>>, vector<1x8x512xbf16>
    %146 = vector.shape_cast %145 : vector<1x8x512xbf16> to vector<8x512xbf16>
    %147 = arith.extf %146 : vector<8x512xbf16> to vector<8x512xf32>
    %148 = arith.truncf %143 : vector<8x128xf32> to vector<8x128xbf16>
    %cst_43 = arith.constant dense<0.000000e+00> : vector<8x512xf32>
    %149 = tpu.matmul %148, %13, %cst_43 {dimension_numbers = #tpu.dot_dimension_numbers<[1], [0], [0], [1], [0, 0, 1, 1], [], []>} : vector<8x128xbf16>, vector<128x512xbf16>, vector<8x512xf32> -> vector<8x512xf32>
    %150 = arith.addf %147, %149 : vector<8x512xf32>
    %151 = vector.extract_strided_slice %150 {offsets = [0, 0], sizes = [8, 128], strides = [1, 1]} : vector<8x512xf32> to vector<8x128xf32>
    %152 = arith.negf %151 : vector<8x128xf32>
    %153 = math.exp %152 : vector<8x128xf32>
    %cst_44 = arith.constant 1.000000e+00 : f32
    %154 = vector.broadcast %cst_44 : f32 to vector<8x128xf32>
    %155 = arith.addf %154, %153 : vector<8x128xf32>
    %156 = arith.divf %154, %155 : vector<8x128xf32>
    %157 = vector.extract_strided_slice %150 {offsets = [0, 128], sizes = [8, 128], strides = [1, 1]} : vector<8x512xf32> to vector<8x128xf32>
    %158 = arith.negf %157 : vector<8x128xf32>
    %159 = math.exp %158 : vector<8x128xf32>
    %cst_45 = arith.constant 1.000000e+00 : f32
    %160 = vector.broadcast %cst_45 : f32 to vector<8x128xf32>
    %161 = arith.addf %160, %159 : vector<8x128xf32>
    %162 = arith.divf %160, %161 : vector<8x128xf32>
    %163 = vector.extract_strided_slice %150 {offsets = [0, 256], sizes = [8, 128], strides = [1, 1]} : vector<8x512xf32> to vector<8x128xf32>
    %164 = math.tanh %163 : vector<8x128xf32>
    %165 = vector.extract_strided_slice %150 {offsets = [0, 384], sizes = [8, 128], strides = [1, 1]} : vector<8x512xf32> to vector<8x128xf32>
    %166 = arith.negf %165 : vector<8x128xf32>
    %167 = math.exp %166 : vector<8x128xf32>
    %cst_46 = arith.constant 1.000000e+00 : f32
    %168 = vector.broadcast %cst_46 : f32 to vector<8x128xf32>
    %169 = arith.addf %168, %167 : vector<8x128xf32>
    %170 = arith.divf %168, %169 : vector<8x128xf32>
    %171 = arith.mulf %162, %141 : vector<8x128xf32>
    %172 = arith.mulf %156, %164 : vector<8x128xf32>
    %173 = arith.addf %171, %172 : vector<8x128xf32>
    %174 = math.tanh %173 : vector<8x128xf32>
    %175 = arith.mulf %170, %174 : vector<8x128xf32>
    %c5_i32 = arith.constant 5 : i32
    %176 = arith.index_cast %c5_i32 : i32 to index
    %c0_47 = arith.constant 0 : index
    %c0_48 = arith.constant 0 : index
    %177 = vector.load %arg8[%176, %c0_47, %c0_48] : memref<8x8x512xbf16, #tpu.memory_space<vmem>>, vector<1x8x512xbf16>
    %178 = vector.shape_cast %177 : vector<1x8x512xbf16> to vector<8x512xbf16>
    %179 = arith.extf %178 : vector<8x512xbf16> to vector<8x512xf32>
    %180 = arith.truncf %175 : vector<8x128xf32> to vector<8x128xbf16>
    %cst_49 = arith.constant dense<0.000000e+00> : vector<8x512xf32>
    %181 = tpu.matmul %180, %13, %cst_49 {dimension_numbers = #tpu.dot_dimension_numbers<[1], [0], [0], [1], [0, 0, 1, 1], [], []>} : vector<8x128xbf16>, vector<128x512xbf16>, vector<8x512xf32> -> vector<8x512xf32>
    %182 = arith.addf %179, %181 : vector<8x512xf32>
    %183 = vector.extract_strided_slice %182 {offsets = [0, 0], sizes = [8, 128], strides = [1, 1]} : vector<8x512xf32> to vector<8x128xf32>
    %184 = arith.negf %183 : vector<8x128xf32>
    %185 = math.exp %184 : vector<8x128xf32>
    %cst_50 = arith.constant 1.000000e+00 : f32
    %186 = vector.broadcast %cst_50 : f32 to vector<8x128xf32>
    %187 = arith.addf %186, %185 : vector<8x128xf32>
    %188 = arith.divf %186, %187 : vector<8x128xf32>
    %189 = vector.extract_strided_slice %182 {offsets = [0, 128], sizes = [8, 128], strides = [1, 1]} : vector<8x512xf32> to vector<8x128xf32>
    %190 = arith.negf %189 : vector<8x128xf32>
    %191 = math.exp %190 : vector<8x128xf32>
    %cst_51 = arith.constant 1.000000e+00 : f32
    %192 = vector.broadcast %cst_51 : f32 to vector<8x128xf32>
    %193 = arith.addf %192, %191 : vector<8x128xf32>
    %194 = arith.divf %192, %193 : vector<8x128xf32>
    %195 = vector.extract_strided_slice %182 {offsets = [0, 256], sizes = [8, 128], strides = [1, 1]} : vector<8x512xf32> to vector<8x128xf32>
    %196 = math.tanh %195 : vector<8x128xf32>
    %197 = vector.extract_strided_slice %182 {offsets = [0, 384], sizes = [8, 128], strides = [1, 1]} : vector<8x512xf32> to vector<8x128xf32>
    %198 = arith.negf %197 : vector<8x128xf32>
    %199 = math.exp %198 : vector<8x128xf32>
    %cst_52 = arith.constant 1.000000e+00 : f32
    %200 = vector.broadcast %cst_52 : f32 to vector<8x128xf32>
    %201 = arith.addf %200, %199 : vector<8x128xf32>
    %202 = arith.divf %200, %201 : vector<8x128xf32>
    %203 = arith.mulf %194, %173 : vector<8x128xf32>
    %204 = arith.mulf %188, %196 : vector<8x128xf32>
    %205 = arith.addf %203, %204 : vector<8x128xf32>
    %206 = math.tanh %205 : vector<8x128xf32>
    %207 = arith.mulf %202, %206 : vector<8x128xf32>
    %c6_i32 = arith.constant 6 : i32
    %208 = arith.index_cast %c6_i32 : i32 to index
    %c0_53 = arith.constant 0 : index
    %c0_54 = arith.constant 0 : index
    %209 = vector.load %arg8[%208, %c0_53, %c0_54] : memref<8x8x512xbf16, #tpu.memory_space<vmem>>, vector<1x8x512xbf16>
    %210 = vector.shape_cast %209 : vector<1x8x512xbf16> to vector<8x512xbf16>
    %211 = arith.extf %210 : vector<8x512xbf16> to vector<8x512xf32>
    %212 = arith.truncf %207 : vector<8x128xf32> to vector<8x128xbf16>
    %cst_55 = arith.constant dense<0.000000e+00> : vector<8x512xf32>
    %213 = tpu.matmul %212, %13, %cst_55 {dimension_numbers = #tpu.dot_dimension_numbers<[1], [0], [0], [1], [0, 0, 1, 1], [], []>} : vector<8x128xbf16>, vector<128x512xbf16>, vector<8x512xf32> -> vector<8x512xf32>
    %214 = arith.addf %211, %213 : vector<8x512xf32>
    %215 = vector.extract_strided_slice %214 {offsets = [0, 0], sizes = [8, 128], strides = [1, 1]} : vector<8x512xf32> to vector<8x128xf32>
    %216 = arith.negf %215 : vector<8x128xf32>
    %217 = math.exp %216 : vector<8x128xf32>
    %cst_56 = arith.constant 1.000000e+00 : f32
    %218 = vector.broadcast %cst_56 : f32 to vector<8x128xf32>
    %219 = arith.addf %218, %217 : vector<8x128xf32>
    %220 = arith.divf %218, %219 : vector<8x128xf32>
    %221 = vector.extract_strided_slice %214 {offsets = [0, 128], sizes = [8, 128], strides = [1, 1]} : vector<8x512xf32> to vector<8x128xf32>
    %222 = arith.negf %221 : vector<8x128xf32>
    %223 = math.exp %222 : vector<8x128xf32>
    %cst_57 = arith.constant 1.000000e+00 : f32
    %224 = vector.broadcast %cst_57 : f32 to vector<8x128xf32>
    %225 = arith.addf %224, %223 : vector<8x128xf32>
    %226 = arith.divf %224, %225 : vector<8x128xf32>
    %227 = vector.extract_strided_slice %214 {offsets = [0, 256], sizes = [8, 128], strides = [1, 1]} : vector<8x512xf32> to vector<8x128xf32>
    %228 = math.tanh %227 : vector<8x128xf32>
    %229 = vector.extract_strided_slice %214 {offsets = [0, 384], sizes = [8, 128], strides = [1, 1]} : vector<8x512xf32> to vector<8x128xf32>
    %230 = arith.negf %229 : vector<8x128xf32>
    %231 = math.exp %230 : vector<8x128xf32>
    %cst_58 = arith.constant 1.000000e+00 : f32
    %232 = vector.broadcast %cst_58 : f32 to vector<8x128xf32>
    %233 = arith.addf %232, %231 : vector<8x128xf32>
    %234 = arith.divf %232, %233 : vector<8x128xf32>
    %235 = arith.mulf %226, %205 : vector<8x128xf32>
    %236 = arith.mulf %220, %228 : vector<8x128xf32>
    %237 = arith.addf %235, %236 : vector<8x128xf32>
    %238 = math.tanh %237 : vector<8x128xf32>
    %239 = arith.mulf %234, %238 : vector<8x128xf32>
    %c7_i32 = arith.constant 7 : i32
    %240 = arith.index_cast %c7_i32 : i32 to index
    %c0_59 = arith.constant 0 : index
    %c0_60 = arith.constant 0 : index
    %241 = vector.load %arg8[%240, %c0_59, %c0_60] : memref<8x8x512xbf16, #tpu.memory_space<vmem>>, vector<1x8x512xbf16>
    %242 = vector.shape_cast %241 : vector<1x8x512xbf16> to vector<8x512xbf16>
    %243 = arith.extf %242 : vector<8x512xbf16> to vector<8x512xf32>
    %244 = arith.truncf %239 : vector<8x128xf32> to vector<8x128xbf16>
    %cst_61 = arith.constant dense<0.000000e+00> : vector<8x512xf32>
    %245 = tpu.matmul %244, %13, %cst_61 {dimension_numbers = #tpu.dot_dimension_numbers<[1], [0], [0], [1], [0, 0, 1, 1], [], []>} : vector<8x128xbf16>, vector<128x512xbf16>, vector<8x512xf32> -> vector<8x512xf32>
    %246 = arith.addf %243, %245 : vector<8x512xf32>
    %247 = vector.extract_strided_slice %246 {offsets = [0, 0], sizes = [8, 128], strides = [1, 1]} : vector<8x512xf32> to vector<8x128xf32>
    %248 = arith.negf %247 : vector<8x128xf32>
    %249 = math.exp %248 : vector<8x128xf32>
    %cst_62 = arith.constant 1.000000e+00 : f32
    %250 = vector.broadcast %cst_62 : f32 to vector<8x128xf32>
    %251 = arith.addf %250, %249 : vector<8x128xf32>
    %252 = arith.divf %250, %251 : vector<8x128xf32>
    %253 = vector.extract_strided_slice %246 {offsets = [0, 128], sizes = [8, 128], strides = [1, 1]} : vector<8x512xf32> to vector<8x128xf32>
    %254 = arith.negf %253 : vector<8x128xf32>
    %255 = math.exp %254 : vector<8x128xf32>
    %cst_63 = arith.constant 1.000000e+00 : f32
    %256 = vector.broadcast %cst_63 : f32 to vector<8x128xf32>
    %257 = arith.addf %256, %255 : vector<8x128xf32>
    %258 = arith.divf %256, %257 : vector<8x128xf32>
    %259 = vector.extract_strided_slice %246 {offsets = [0, 256], sizes = [8, 128], strides = [1, 1]} : vector<8x512xf32> to vector<8x128xf32>
    %260 = math.tanh %259 : vector<8x128xf32>
    %261 = vector.extract_strided_slice %246 {offsets = [0, 384], sizes = [8, 128], strides = [1, 1]} : vector<8x512xf32> to vector<8x128xf32>
    %262 = arith.negf %261 : vector<8x128xf32>
    %263 = math.exp %262 : vector<8x128xf32>
    %cst_64 = arith.constant 1.000000e+00 : f32
    %264 = vector.broadcast %cst_64 : f32 to vector<8x128xf32>
    %265 = arith.addf %264, %263 : vector<8x128xf32>
    %266 = arith.divf %264, %265 : vector<8x128xf32>
    %267 = arith.mulf %258, %237 : vector<8x128xf32>
    %268 = arith.mulf %252, %260 : vector<8x128xf32>
    %269 = arith.addf %267, %268 : vector<8x128xf32>
    %270 = math.tanh %269 : vector<8x128xf32>
    %271 = arith.mulf %266, %270 : vector<8x128xf32>
    %c8_i32 = arith.constant 8 : i32
    %c0_65 = arith.constant 0 : index
    %c0_66 = arith.constant 0 : index
    %272 = vector.load %arg9[%c0_65, %c0_66] : memref<8x128xf32, #tpu.memory_space<vmem>>, vector<8x128xf32>
    tpu.vector_store %arg9[%c0_65, %c0_66], %271 {strides = array<i32>} : memref<8x128xf32, #tpu.memory_space<vmem>>, vector<8x128xf32>,
    %c0_67 = arith.constant 0 : index
    %c0_68 = arith.constant 0 : index
    %273 = vector.load %arg10[%c0_67, %c0_68] : memref<8x128xf32, #tpu.memory_space<vmem>>, vector<8x128xf32>
    tpu.vector_store %arg10[%c0_67, %c0_68], %269 {strides = array<i32>} : memref<8x128xf32, #tpu.memory_space<vmem>>, vector<8x128xf32>,
    %c0_i32_69 = arith.constant 0 : i32
    %274 = arith.cmpi eq, %arg0, %c0_i32_69 : i32
    %275 = arith.extui %274 : i1 to i32
    %c0_i32_70 = arith.constant 0 : i32
    %276 = arith.cmpi ne, %275, %c0_i32_70 : i32
    scf.if %276 {
      %c0_71 = arith.constant 0 : index
      %c0_72 = arith.constant 0 : index
      %277 = vector.load %arg9[%c0_71, %c0_72] : memref<8x128xf32, #tpu.memory_space<vmem>>, vector<8x128xf32>
      %278 = arith.truncf %277 : vector<8x128xf32> to vector<8x128xbf16>
      %c0_73 = arith.constant 0 : index
      %c0_74 = arith.constant 0 : index
      %279 = vector.load %arg5[%c0_73, %c0_74] : memref<128x128xbf16, #tpu.memory_space<vmem>>, vector<128x128xbf16>
      %cst_75 = arith.constant dense<0.000000e+00> : vector<8x128xf32>
      %280 = tpu.matmul %278, %279, %cst_75 {dimension_numbers = #tpu.dot_dimension_numbers<[1], [0], [0], [1], [0, 0, 1, 1], [], []>} : vector<8x128xbf16>, vector<128x128xbf16>, vector<8x128xf32> -> vector<8x128xf32>
      %c0_76 = arith.constant 0 : index
      %c0_77 = arith.constant 0 : index
      %281 = vector.load %arg6[%c0_76, %c0_77] : memref<1x128xf32, #tpu.memory_space<vmem>>, vector<1x128xf32>
      %282 = vector.broadcast %281 : vector<1x128xf32> to vector<8x128xf32>
      %283 = arith.addf %280, %282 : vector<8x128xf32>
      %c0_78 = arith.constant 0 : index
      %c0_79 = arith.constant 0 : index
      %284 = vector.load %arg7[%c0_78, %c0_79] : memref<8x128xf32, #tpu.memory_space<vmem>>, vector<8x128xf32>
      tpu.vector_store %arg7[%c0_78, %c0_79], %283 {strides = array<i32>} : memref<8x128xf32, #tpu.memory_space<vmem>>, vector<8x128xf32>,
    } else {
    }
    return
  }
  func.func @transform_0(%arg0: i32) -> (i32, i32, i32) {
    %c0_i32 = arith.constant 0 : i32
    %c0_i32_0 = arith.constant 0 : i32
    %c0_i32_1 = arith.constant 0 : i32
    return %arg0, %c0_i32, %c0_i32_0 : i32, i32, i32
  }
  func.func @transform_1(%arg0: i32) -> (i32, i32) {
    %c0_i32 = arith.constant 0 : i32
    %c0_i32_0 = arith.constant 0 : i32
    %c0_i32_1 = arith.constant 0 : i32
    return %c0_i32, %c0_i32_0 : i32, i32
  }
  func.func @transform_2(%arg0: i32) -> (i32, i32) {
    %c0_i32 = arith.constant 0 : i32
    %c0_i32_0 = arith.constant 0 : i32
    %c0_i32_1 = arith.constant 0 : i32
    return %c0_i32, %c0_i32_0 : i32, i32
  }
  func.func @transform_3(%arg0: i32) -> (i32, i32) {
    %c0_i32 = arith.constant 0 : i32
    %c0_i32_0 = arith.constant 0 : i32
    %c0_i32_1 = arith.constant 0 : i32
    return %c0_i32, %c0_i32_0 : i32, i32
  }
  func.func @transform_4(%arg0: i32) -> (i32, i32) {
    %c0_i32 = arith.constant 0 : i32
    %c0_i32_0 = arith.constant 0 : i32
    %c0_i32_1 = arith.constant 0 : i32
    return %c0_i32, %c0_i32_0 : i32, i32
  }
  func.func @transform_5(%arg0: i32) -> (i32, i32) {
    %c0_i32 = arith.constant 0 : i32
    %c0_i32_0 = arith.constant 0 : i32
    %c0_i32_1 = arith.constant 0 : i32
    return %c0_i32, %c0_i32_0 : i32, i32
  }
  func.func @transform_6(%arg0: i32) -> (i32, i32) {
    %c0_i32 = arith.constant 0 : i32
    %c0_i32_0 = arith.constant 0 : i32
    %c0_i32_1 = arith.constant 0 : i32
    return %c0_i32, %c0_i32_0 : i32, i32
  }
}

module attributes {stable_mosaic.version = 11 : i64} {
  func.func @_lstm_layer_seq_kernel(%arg0: i32, %arg1: memref<8x8x128xbf16, #tpu.memory_space<vmem>>, %arg2: memref<128x512xbf16, #tpu.memory_space<vmem>>, %arg3: memref<128x512xbf16, #tpu.memory_space<vmem>>, %arg4: memref<1x512xf32, #tpu.memory_space<vmem>>, %arg5: memref<8x8x128xbf16, #tpu.memory_space<vmem>>, %arg6: memref<8x8x512xbf16, #tpu.memory_space<vmem>>, %arg7: memref<8x128xf32, #tpu.memory_space<vmem>>, %arg8: memref<8x128xf32, #tpu.memory_space<vmem>>) attributes {dimension_semantics = [#tpu.dimension_semantics<arbitrary>], iteration_bounds = array<i64: 1>, scalar_prefetch = 0 : i64, scratch_operands = 3 : i64, tpu.core_type = #tpu.core_type<tc>, window_params = [{transform_indices = @transform_0, window_bounds = array<i64: 8, 8, 128>}, {pipeline_mode = #tpu.pipeline_mode<synchronous>, transform_indices = @transform_1, window_bounds = array<i64: 128, 512>}, {pipeline_mode = #tpu.pipeline_mode<synchronous>, transform_indices = @transform_2, window_bounds = array<i64: 128, 512>}, {pipeline_mode = #tpu.pipeline_mode<synchronous>, transform_indices = @transform_3, window_bounds = array<i64: 1, 512>}, {transform_indices = @transform_4, window_bounds = array<i64: 8, 8, 128>}]} {
    %c0_i32 = arith.constant 0 : i32
    %0 = arith.cmpi eq, %arg0, %c0_i32 : i32
    %1 = arith.extui %0 : i1 to i32
    %c0_i32_0 = arith.constant 0 : i32
    %2 = arith.cmpi ne, %1, %c0_i32_0 : i32
    scf.if %2 {
      %cst_85 = arith.constant 0.000000e+00 : f32
      %314 = vector.broadcast %cst_85 : f32 to vector<8x128xf32>
      %c0_86 = arith.constant 0 : index
      %c0_87 = arith.constant 0 : index
      %315 = vector.load %arg7[%c0_86, %c0_87] : memref<8x128xf32, #tpu.memory_space<vmem>>, vector<8x128xf32>
      tpu.vector_store %arg7[%c0_86, %c0_87], %314 {strides = array<i32>} : memref<8x128xf32, #tpu.memory_space<vmem>>, vector<8x128xf32>,
      %cst_88 = arith.constant 0.000000e+00 : f32
      %316 = vector.broadcast %cst_88 : f32 to vector<8x128xf32>
      %c0_89 = arith.constant 0 : index
      %c0_90 = arith.constant 0 : index
      %317 = vector.load %arg8[%c0_89, %c0_90] : memref<8x128xf32, #tpu.memory_space<vmem>>, vector<8x128xf32>
      tpu.vector_store %arg8[%c0_89, %c0_90], %316 {strides = array<i32>} : memref<8x128xf32, #tpu.memory_space<vmem>>, vector<8x128xf32>,
    } else {
    }
    %c0 = arith.constant 0 : index
    %c0_1 = arith.constant 0 : index
    %c0_2 = arith.constant 0 : index
    %3 = vector.load %arg1[%c0, %c0_1, %c0_2] : memref<8x8x128xbf16, #tpu.memory_space<vmem>>, vector<8x8x128xbf16>
    %4 = vector.shape_cast %3 : vector<8x8x128xbf16> to vector<64x128xbf16>
    %c0_3 = arith.constant 0 : index
    %c0_4 = arith.constant 0 : index
    %5 = vector.load %arg2[%c0_3, %c0_4] : memref<128x512xbf16, #tpu.memory_space<vmem>>, vector<128x512xbf16>
    %cst = arith.constant dense<0.000000e+00> : vector<64x512xf32>
    %6 = tpu.matmul %4, %5, %cst {dimension_numbers = #tpu.dot_dimension_numbers<[1], [0], [0], [1], [0, 0, 1, 1], [], []>} : vector<64x128xbf16>, vector<128x512xbf16>, vector<64x512xf32> -> vector<64x512xf32>
    %c0_5 = arith.constant 0 : index
    %c0_6 = arith.constant 0 : index
    %7 = vector.load %arg4[%c0_5, %c0_6] : memref<1x512xf32, #tpu.memory_space<vmem>>, vector<1x512xf32>
    %8 = vector.broadcast %7 : vector<1x512xf32> to vector<64x512xf32>
    %9 = arith.addf %6, %8 : vector<64x512xf32>
    %10 = vector.shape_cast %9 : vector<64x512xf32> to vector<8x8x512xf32>
    %11 = arith.truncf %10 : vector<8x8x512xf32> to vector<8x8x512xbf16>
    %c0_7 = arith.constant 0 : index
    %c0_8 = arith.constant 0 : index
    %c0_9 = arith.constant 0 : index
    %12 = vector.load %arg6[%c0_7, %c0_8, %c0_9] : memref<8x8x512xbf16, #tpu.memory_space<vmem>>, vector<8x8x512xbf16>
    tpu.vector_store %arg6[%c0_7, %c0_8, %c0_9], %11 {strides = array<i32>} : memref<8x8x512xbf16, #tpu.memory_space<vmem>>, vector<8x8x512xbf16>,
    %c0_10 = arith.constant 0 : index
    %c0_11 = arith.constant 0 : index
    %13 = vector.load %arg3[%c0_10, %c0_11] : memref<128x512xbf16, #tpu.memory_space<vmem>>, vector<128x512xbf16>
    %c0_12 = arith.constant 0 : index
    %c0_13 = arith.constant 0 : index
    %14 = vector.load %arg7[%c0_12, %c0_13] : memref<8x128xf32, #tpu.memory_space<vmem>>, vector<8x128xf32>
    %c0_14 = arith.constant 0 : index
    %c0_15 = arith.constant 0 : index
    %15 = vector.load %arg8[%c0_14, %c0_15] : memref<8x128xf32, #tpu.memory_space<vmem>>, vector<8x128xf32>
    %c0_i32_16 = arith.constant 0 : i32
    %16 = arith.index_cast %c0_i32_16 : i32 to index
    %c0_17 = arith.constant 0 : index
    %c0_18 = arith.constant 0 : index
    %17 = vector.load %arg6[%16, %c0_17, %c0_18] : memref<8x8x512xbf16, #tpu.memory_space<vmem>>, vector<1x8x512xbf16>
    %18 = vector.shape_cast %17 : vector<1x8x512xbf16> to vector<8x512xbf16>
    %19 = arith.extf %18 : vector<8x512xbf16> to vector<8x512xf32>
    %20 = arith.truncf %14 : vector<8x128xf32> to vector<8x128xbf16>
    %cst_19 = arith.constant dense<0.000000e+00> : vector<8x512xf32>
    %21 = tpu.matmul %20, %13, %cst_19 {dimension_numbers = #tpu.dot_dimension_numbers<[1], [0], [0], [1], [0, 0, 1, 1], [], []>} : vector<8x128xbf16>, vector<128x512xbf16>, vector<8x512xf32> -> vector<8x512xf32>
    %22 = arith.addf %19, %21 : vector<8x512xf32>
    %23 = vector.extract_strided_slice %22 {offsets = [0, 0], sizes = [8, 128], strides = [1, 1]} : vector<8x512xf32> to vector<8x128xf32>
    %24 = arith.negf %23 : vector<8x128xf32>
    %25 = math.exp %24 : vector<8x128xf32>
    %cst_20 = arith.constant 1.000000e+00 : f32
    %26 = vector.broadcast %cst_20 : f32 to vector<8x128xf32>
    %27 = arith.addf %26, %25 : vector<8x128xf32>
    %28 = arith.divf %26, %27 : vector<8x128xf32>
    %29 = vector.extract_strided_slice %22 {offsets = [0, 128], sizes = [8, 128], strides = [1, 1]} : vector<8x512xf32> to vector<8x128xf32>
    %30 = arith.negf %29 : vector<8x128xf32>
    %31 = math.exp %30 : vector<8x128xf32>
    %cst_21 = arith.constant 1.000000e+00 : f32
    %32 = vector.broadcast %cst_21 : f32 to vector<8x128xf32>
    %33 = arith.addf %32, %31 : vector<8x128xf32>
    %34 = arith.divf %32, %33 : vector<8x128xf32>
    %35 = vector.extract_strided_slice %22 {offsets = [0, 256], sizes = [8, 128], strides = [1, 1]} : vector<8x512xf32> to vector<8x128xf32>
    %36 = math.tanh %35 : vector<8x128xf32>
    %37 = vector.extract_strided_slice %22 {offsets = [0, 384], sizes = [8, 128], strides = [1, 1]} : vector<8x512xf32> to vector<8x128xf32>
    %38 = arith.negf %37 : vector<8x128xf32>
    %39 = math.exp %38 : vector<8x128xf32>
    %cst_22 = arith.constant 1.000000e+00 : f32
    %40 = vector.broadcast %cst_22 : f32 to vector<8x128xf32>
    %41 = arith.addf %40, %39 : vector<8x128xf32>
    %42 = arith.divf %40, %41 : vector<8x128xf32>
    %43 = arith.mulf %34, %15 : vector<8x128xf32>
    %44 = arith.mulf %28, %36 : vector<8x128xf32>
    %45 = arith.addf %43, %44 : vector<8x128xf32>
    %46 = math.tanh %45 : vector<8x128xf32>
    %47 = arith.mulf %42, %46 : vector<8x128xf32>
    %48 = arith.truncf %47 : vector<8x128xf32> to vector<8x128xbf16>
    %49 = arith.index_cast %c0_i32_16 : i32 to index
    %c0_23 = arith.constant 0 : index
    %c0_24 = arith.constant 0 : index
    %50 = vector.load %arg5[%49, %c0_23, %c0_24] : memref<8x8x128xbf16, #tpu.memory_space<vmem>>, vector<1x8x128xbf16>
    %51 = vector.shape_cast %50 : vector<1x8x128xbf16> to vector<8x128xbf16>
    %52 = vector.shape_cast %48 : vector<8x128xbf16> to vector<1x8x128xbf16>
    tpu.vector_store %arg5[%49, %c0_23, %c0_24], %52 {strides = array<i32>} : memref<8x8x128xbf16, #tpu.memory_space<vmem>>, vector<1x8x128xbf16>,
    %c1_i32 = arith.constant 1 : i32
    %53 = arith.index_cast %c1_i32 : i32 to index
    %c0_25 = arith.constant 0 : index
    %c0_26 = arith.constant 0 : index
    %54 = vector.load %arg6[%53, %c0_25, %c0_26] : memref<8x8x512xbf16, #tpu.memory_space<vmem>>, vector<1x8x512xbf16>
    %55 = vector.shape_cast %54 : vector<1x8x512xbf16> to vector<8x512xbf16>
    %56 = arith.extf %55 : vector<8x512xbf16> to vector<8x512xf32>
    %57 = arith.truncf %47 : vector<8x128xf32> to vector<8x128xbf16>
    %cst_27 = arith.constant dense<0.000000e+00> : vector<8x512xf32>
    %58 = tpu.matmul %57, %13, %cst_27 {dimension_numbers = #tpu.dot_dimension_numbers<[1], [0], [0], [1], [0, 0, 1, 1], [], []>} : vector<8x128xbf16>, vector<128x512xbf16>, vector<8x512xf32> -> vector<8x512xf32>
    %59 = arith.addf %56, %58 : vector<8x512xf32>
    %60 = vector.extract_strided_slice %59 {offsets = [0, 0], sizes = [8, 128], strides = [1, 1]} : vector<8x512xf32> to vector<8x128xf32>
    %61 = arith.negf %60 : vector<8x128xf32>
    %62 = math.exp %61 : vector<8x128xf32>
    %cst_28 = arith.constant 1.000000e+00 : f32
    %63 = vector.broadcast %cst_28 : f32 to vector<8x128xf32>
    %64 = arith.addf %63, %62 : vector<8x128xf32>
    %65 = arith.divf %63, %64 : vector<8x128xf32>
    %66 = vector.extract_strided_slice %59 {offsets = [0, 128], sizes = [8, 128], strides = [1, 1]} : vector<8x512xf32> to vector<8x128xf32>
    %67 = arith.negf %66 : vector<8x128xf32>
    %68 = math.exp %67 : vector<8x128xf32>
    %cst_29 = arith.constant 1.000000e+00 : f32
    %69 = vector.broadcast %cst_29 : f32 to vector<8x128xf32>
    %70 = arith.addf %69, %68 : vector<8x128xf32>
    %71 = arith.divf %69, %70 : vector<8x128xf32>
    %72 = vector.extract_strided_slice %59 {offsets = [0, 256], sizes = [8, 128], strides = [1, 1]} : vector<8x512xf32> to vector<8x128xf32>
    %73 = math.tanh %72 : vector<8x128xf32>
    %74 = vector.extract_strided_slice %59 {offsets = [0, 384], sizes = [8, 128], strides = [1, 1]} : vector<8x512xf32> to vector<8x128xf32>
    %75 = arith.negf %74 : vector<8x128xf32>
    %76 = math.exp %75 : vector<8x128xf32>
    %cst_30 = arith.constant 1.000000e+00 : f32
    %77 = vector.broadcast %cst_30 : f32 to vector<8x128xf32>
    %78 = arith.addf %77, %76 : vector<8x128xf32>
    %79 = arith.divf %77, %78 : vector<8x128xf32>
    %80 = arith.mulf %71, %45 : vector<8x128xf32>
    %81 = arith.mulf %65, %73 : vector<8x128xf32>
    %82 = arith.addf %80, %81 : vector<8x128xf32>
    %83 = math.tanh %82 : vector<8x128xf32>
    %84 = arith.mulf %79, %83 : vector<8x128xf32>
    %85 = arith.truncf %84 : vector<8x128xf32> to vector<8x128xbf16>
    %86 = arith.index_cast %c1_i32 : i32 to index
    %c0_31 = arith.constant 0 : index
    %c0_32 = arith.constant 0 : index
    %87 = vector.load %arg5[%86, %c0_31, %c0_32] : memref<8x8x128xbf16, #tpu.memory_space<vmem>>, vector<1x8x128xbf16>
    %88 = vector.shape_cast %87 : vector<1x8x128xbf16> to vector<8x128xbf16>
    %89 = vector.shape_cast %85 : vector<8x128xbf16> to vector<1x8x128xbf16>
    tpu.vector_store %arg5[%86, %c0_31, %c0_32], %89 {strides = array<i32>} : memref<8x8x128xbf16, #tpu.memory_space<vmem>>, vector<1x8x128xbf16>,
    %c2_i32 = arith.constant 2 : i32
    %90 = arith.index_cast %c2_i32 : i32 to index
    %c0_33 = arith.constant 0 : index
    %c0_34 = arith.constant 0 : index
    %91 = vector.load %arg6[%90, %c0_33, %c0_34] : memref<8x8x512xbf16, #tpu.memory_space<vmem>>, vector<1x8x512xbf16>
    %92 = vector.shape_cast %91 : vector<1x8x512xbf16> to vector<8x512xbf16>
    %93 = arith.extf %92 : vector<8x512xbf16> to vector<8x512xf32>
    %94 = arith.truncf %84 : vector<8x128xf32> to vector<8x128xbf16>
    %cst_35 = arith.constant dense<0.000000e+00> : vector<8x512xf32>
    %95 = tpu.matmul %94, %13, %cst_35 {dimension_numbers = #tpu.dot_dimension_numbers<[1], [0], [0], [1], [0, 0, 1, 1], [], []>} : vector<8x128xbf16>, vector<128x512xbf16>, vector<8x512xf32> -> vector<8x512xf32>
    %96 = arith.addf %93, %95 : vector<8x512xf32>
    %97 = vector.extract_strided_slice %96 {offsets = [0, 0], sizes = [8, 128], strides = [1, 1]} : vector<8x512xf32> to vector<8x128xf32>
    %98 = arith.negf %97 : vector<8x128xf32>
    %99 = math.exp %98 : vector<8x128xf32>
    %cst_36 = arith.constant 1.000000e+00 : f32
    %100 = vector.broadcast %cst_36 : f32 to vector<8x128xf32>
    %101 = arith.addf %100, %99 : vector<8x128xf32>
    %102 = arith.divf %100, %101 : vector<8x128xf32>
    %103 = vector.extract_strided_slice %96 {offsets = [0, 128], sizes = [8, 128], strides = [1, 1]} : vector<8x512xf32> to vector<8x128xf32>
    %104 = arith.negf %103 : vector<8x128xf32>
    %105 = math.exp %104 : vector<8x128xf32>
    %cst_37 = arith.constant 1.000000e+00 : f32
    %106 = vector.broadcast %cst_37 : f32 to vector<8x128xf32>
    %107 = arith.addf %106, %105 : vector<8x128xf32>
    %108 = arith.divf %106, %107 : vector<8x128xf32>
    %109 = vector.extract_strided_slice %96 {offsets = [0, 256], sizes = [8, 128], strides = [1, 1]} : vector<8x512xf32> to vector<8x128xf32>
    %110 = math.tanh %109 : vector<8x128xf32>
    %111 = vector.extract_strided_slice %96 {offsets = [0, 384], sizes = [8, 128], strides = [1, 1]} : vector<8x512xf32> to vector<8x128xf32>
    %112 = arith.negf %111 : vector<8x128xf32>
    %113 = math.exp %112 : vector<8x128xf32>
    %cst_38 = arith.constant 1.000000e+00 : f32
    %114 = vector.broadcast %cst_38 : f32 to vector<8x128xf32>
    %115 = arith.addf %114, %113 : vector<8x128xf32>
    %116 = arith.divf %114, %115 : vector<8x128xf32>
    %117 = arith.mulf %108, %82 : vector<8x128xf32>
    %118 = arith.mulf %102, %110 : vector<8x128xf32>
    %119 = arith.addf %117, %118 : vector<8x128xf32>
    %120 = math.tanh %119 : vector<8x128xf32>
    %121 = arith.mulf %116, %120 : vector<8x128xf32>
    %122 = arith.truncf %121 : vector<8x128xf32> to vector<8x128xbf16>
    %123 = arith.index_cast %c2_i32 : i32 to index
    %c0_39 = arith.constant 0 : index
    %c0_40 = arith.constant 0 : index
    %124 = vector.load %arg5[%123, %c0_39, %c0_40] : memref<8x8x128xbf16, #tpu.memory_space<vmem>>, vector<1x8x128xbf16>
    %125 = vector.shape_cast %124 : vector<1x8x128xbf16> to vector<8x128xbf16>
    %126 = vector.shape_cast %122 : vector<8x128xbf16> to vector<1x8x128xbf16>
    tpu.vector_store %arg5[%123, %c0_39, %c0_40], %126 {strides = array<i32>} : memref<8x8x128xbf16, #tpu.memory_space<vmem>>, vector<1x8x128xbf16>,
    %c3_i32 = arith.constant 3 : i32
    %127 = arith.index_cast %c3_i32 : i32 to index
    %c0_41 = arith.constant 0 : index
    %c0_42 = arith.constant 0 : index
    %128 = vector.load %arg6[%127, %c0_41, %c0_42] : memref<8x8x512xbf16, #tpu.memory_space<vmem>>, vector<1x8x512xbf16>
    %129 = vector.shape_cast %128 : vector<1x8x512xbf16> to vector<8x512xbf16>
    %130 = arith.extf %129 : vector<8x512xbf16> to vector<8x512xf32>
    %131 = arith.truncf %121 : vector<8x128xf32> to vector<8x128xbf16>
    %cst_43 = arith.constant dense<0.000000e+00> : vector<8x512xf32>
    %132 = tpu.matmul %131, %13, %cst_43 {dimension_numbers = #tpu.dot_dimension_numbers<[1], [0], [0], [1], [0, 0, 1, 1], [], []>} : vector<8x128xbf16>, vector<128x512xbf16>, vector<8x512xf32> -> vector<8x512xf32>
    %133 = arith.addf %130, %132 : vector<8x512xf32>
    %134 = vector.extract_strided_slice %133 {offsets = [0, 0], sizes = [8, 128], strides = [1, 1]} : vector<8x512xf32> to vector<8x128xf32>
    %135 = arith.negf %134 : vector<8x128xf32>
    %136 = math.exp %135 : vector<8x128xf32>
    %cst_44 = arith.constant 1.000000e+00 : f32
    %137 = vector.broadcast %cst_44 : f32 to vector<8x128xf32>
    %138 = arith.addf %137, %136 : vector<8x128xf32>
    %139 = arith.divf %137, %138 : vector<8x128xf32>
    %140 = vector.extract_strided_slice %133 {offsets = [0, 128], sizes = [8, 128], strides = [1, 1]} : vector<8x512xf32> to vector<8x128xf32>
    %141 = arith.negf %140 : vector<8x128xf32>
    %142 = math.exp %141 : vector<8x128xf32>
    %cst_45 = arith.constant 1.000000e+00 : f32
    %143 = vector.broadcast %cst_45 : f32 to vector<8x128xf32>
    %144 = arith.addf %143, %142 : vector<8x128xf32>
    %145 = arith.divf %143, %144 : vector<8x128xf32>
    %146 = vector.extract_strided_slice %133 {offsets = [0, 256], sizes = [8, 128], strides = [1, 1]} : vector<8x512xf32> to vector<8x128xf32>
    %147 = math.tanh %146 : vector<8x128xf32>
    %148 = vector.extract_strided_slice %133 {offsets = [0, 384], sizes = [8, 128], strides = [1, 1]} : vector<8x512xf32> to vector<8x128xf32>
    %149 = arith.negf %148 : vector<8x128xf32>
    %150 = math.exp %149 : vector<8x128xf32>
    %cst_46 = arith.constant 1.000000e+00 : f32
    %151 = vector.broadcast %cst_46 : f32 to vector<8x128xf32>
    %152 = arith.addf %151, %150 : vector<8x128xf32>
    %153 = arith.divf %151, %152 : vector<8x128xf32>
    %154 = arith.mulf %145, %119 : vector<8x128xf32>
    %155 = arith.mulf %139, %147 : vector<8x128xf32>
    %156 = arith.addf %154, %155 : vector<8x128xf32>
    %157 = math.tanh %156 : vector<8x128xf32>
    %158 = arith.mulf %153, %157 : vector<8x128xf32>
    %159 = arith.truncf %158 : vector<8x128xf32> to vector<8x128xbf16>
    %160 = arith.index_cast %c3_i32 : i32 to index
    %c0_47 = arith.constant 0 : index
    %c0_48 = arith.constant 0 : index
    %161 = vector.load %arg5[%160, %c0_47, %c0_48] : memref<8x8x128xbf16, #tpu.memory_space<vmem>>, vector<1x8x128xbf16>
    %162 = vector.shape_cast %161 : vector<1x8x128xbf16> to vector<8x128xbf16>
    %163 = vector.shape_cast %159 : vector<8x128xbf16> to vector<1x8x128xbf16>
    tpu.vector_store %arg5[%160, %c0_47, %c0_48], %163 {strides = array<i32>} : memref<8x8x128xbf16, #tpu.memory_space<vmem>>, vector<1x8x128xbf16>,
    %c4_i32 = arith.constant 4 : i32
    %164 = arith.index_cast %c4_i32 : i32 to index
    %c0_49 = arith.constant 0 : index
    %c0_50 = arith.constant 0 : index
    %165 = vector.load %arg6[%164, %c0_49, %c0_50] : memref<8x8x512xbf16, #tpu.memory_space<vmem>>, vector<1x8x512xbf16>
    %166 = vector.shape_cast %165 : vector<1x8x512xbf16> to vector<8x512xbf16>
    %167 = arith.extf %166 : vector<8x512xbf16> to vector<8x512xf32>
    %168 = arith.truncf %158 : vector<8x128xf32> to vector<8x128xbf16>
    %cst_51 = arith.constant dense<0.000000e+00> : vector<8x512xf32>
    %169 = tpu.matmul %168, %13, %cst_51 {dimension_numbers = #tpu.dot_dimension_numbers<[1], [0], [0], [1], [0, 0, 1, 1], [], []>} : vector<8x128xbf16>, vector<128x512xbf16>, vector<8x512xf32> -> vector<8x512xf32>
    %170 = arith.addf %167, %169 : vector<8x512xf32>
    %171 = vector.extract_strided_slice %170 {offsets = [0, 0], sizes = [8, 128], strides = [1, 1]} : vector<8x512xf32> to vector<8x128xf32>
    %172 = arith.negf %171 : vector<8x128xf32>
    %173 = math.exp %172 : vector<8x128xf32>
    %cst_52 = arith.constant 1.000000e+00 : f32
    %174 = vector.broadcast %cst_52 : f32 to vector<8x128xf32>
    %175 = arith.addf %174, %173 : vector<8x128xf32>
    %176 = arith.divf %174, %175 : vector<8x128xf32>
    %177 = vector.extract_strided_slice %170 {offsets = [0, 128], sizes = [8, 128], strides = [1, 1]} : vector<8x512xf32> to vector<8x128xf32>
    %178 = arith.negf %177 : vector<8x128xf32>
    %179 = math.exp %178 : vector<8x128xf32>
    %cst_53 = arith.constant 1.000000e+00 : f32
    %180 = vector.broadcast %cst_53 : f32 to vector<8x128xf32>
    %181 = arith.addf %180, %179 : vector<8x128xf32>
    %182 = arith.divf %180, %181 : vector<8x128xf32>
    %183 = vector.extract_strided_slice %170 {offsets = [0, 256], sizes = [8, 128], strides = [1, 1]} : vector<8x512xf32> to vector<8x128xf32>
    %184 = math.tanh %183 : vector<8x128xf32>
    %185 = vector.extract_strided_slice %170 {offsets = [0, 384], sizes = [8, 128], strides = [1, 1]} : vector<8x512xf32> to vector<8x128xf32>
    %186 = arith.negf %185 : vector<8x128xf32>
    %187 = math.exp %186 : vector<8x128xf32>
    %cst_54 = arith.constant 1.000000e+00 : f32
    %188 = vector.broadcast %cst_54 : f32 to vector<8x128xf32>
    %189 = arith.addf %188, %187 : vector<8x128xf32>
    %190 = arith.divf %188, %189 : vector<8x128xf32>
    %191 = arith.mulf %182, %156 : vector<8x128xf32>
    %192 = arith.mulf %176, %184 : vector<8x128xf32>
    %193 = arith.addf %191, %192 : vector<8x128xf32>
    %194 = math.tanh %193 : vector<8x128xf32>
    %195 = arith.mulf %190, %194 : vector<8x128xf32>
    %196 = arith.truncf %195 : vector<8x128xf32> to vector<8x128xbf16>
    %197 = arith.index_cast %c4_i32 : i32 to index
    %c0_55 = arith.constant 0 : index
    %c0_56 = arith.constant 0 : index
    %198 = vector.load %arg5[%197, %c0_55, %c0_56] : memref<8x8x128xbf16, #tpu.memory_space<vmem>>, vector<1x8x128xbf16>
    %199 = vector.shape_cast %198 : vector<1x8x128xbf16> to vector<8x128xbf16>
    %200 = vector.shape_cast %196 : vector<8x128xbf16> to vector<1x8x128xbf16>
    tpu.vector_store %arg5[%197, %c0_55, %c0_56], %200 {strides = array<i32>} : memref<8x8x128xbf16, #tpu.memory_space<vmem>>, vector<1x8x128xbf16>,
    %c5_i32 = arith.constant 5 : i32
    %201 = arith.index_cast %c5_i32 : i32 to index
    %c0_57 = arith.constant 0 : index
    %c0_58 = arith.constant 0 : index
    %202 = vector.load %arg6[%201, %c0_57, %c0_58] : memref<8x8x512xbf16, #tpu.memory_space<vmem>>, vector<1x8x512xbf16>
    %203 = vector.shape_cast %202 : vector<1x8x512xbf16> to vector<8x512xbf16>
    %204 = arith.extf %203 : vector<8x512xbf16> to vector<8x512xf32>
    %205 = arith.truncf %195 : vector<8x128xf32> to vector<8x128xbf16>
    %cst_59 = arith.constant dense<0.000000e+00> : vector<8x512xf32>
    %206 = tpu.matmul %205, %13, %cst_59 {dimension_numbers = #tpu.dot_dimension_numbers<[1], [0], [0], [1], [0, 0, 1, 1], [], []>} : vector<8x128xbf16>, vector<128x512xbf16>, vector<8x512xf32> -> vector<8x512xf32>
    %207 = arith.addf %204, %206 : vector<8x512xf32>
    %208 = vector.extract_strided_slice %207 {offsets = [0, 0], sizes = [8, 128], strides = [1, 1]} : vector<8x512xf32> to vector<8x128xf32>
    %209 = arith.negf %208 : vector<8x128xf32>
    %210 = math.exp %209 : vector<8x128xf32>
    %cst_60 = arith.constant 1.000000e+00 : f32
    %211 = vector.broadcast %cst_60 : f32 to vector<8x128xf32>
    %212 = arith.addf %211, %210 : vector<8x128xf32>
    %213 = arith.divf %211, %212 : vector<8x128xf32>
    %214 = vector.extract_strided_slice %207 {offsets = [0, 128], sizes = [8, 128], strides = [1, 1]} : vector<8x512xf32> to vector<8x128xf32>
    %215 = arith.negf %214 : vector<8x128xf32>
    %216 = math.exp %215 : vector<8x128xf32>
    %cst_61 = arith.constant 1.000000e+00 : f32
    %217 = vector.broadcast %cst_61 : f32 to vector<8x128xf32>
    %218 = arith.addf %217, %216 : vector<8x128xf32>
    %219 = arith.divf %217, %218 : vector<8x128xf32>
    %220 = vector.extract_strided_slice %207 {offsets = [0, 256], sizes = [8, 128], strides = [1, 1]} : vector<8x512xf32> to vector<8x128xf32>
    %221 = math.tanh %220 : vector<8x128xf32>
    %222 = vector.extract_strided_slice %207 {offsets = [0, 384], sizes = [8, 128], strides = [1, 1]} : vector<8x512xf32> to vector<8x128xf32>
    %223 = arith.negf %222 : vector<8x128xf32>
    %224 = math.exp %223 : vector<8x128xf32>
    %cst_62 = arith.constant 1.000000e+00 : f32
    %225 = vector.broadcast %cst_62 : f32 to vector<8x128xf32>
    %226 = arith.addf %225, %224 : vector<8x128xf32>
    %227 = arith.divf %225, %226 : vector<8x128xf32>
    %228 = arith.mulf %219, %193 : vector<8x128xf32>
    %229 = arith.mulf %213, %221 : vector<8x128xf32>
    %230 = arith.addf %228, %229 : vector<8x128xf32>
    %231 = math.tanh %230 : vector<8x128xf32>
    %232 = arith.mulf %227, %231 : vector<8x128xf32>
    %233 = arith.truncf %232 : vector<8x128xf32> to vector<8x128xbf16>
    %234 = arith.index_cast %c5_i32 : i32 to index
    %c0_63 = arith.constant 0 : index
    %c0_64 = arith.constant 0 : index
    %235 = vector.load %arg5[%234, %c0_63, %c0_64] : memref<8x8x128xbf16, #tpu.memory_space<vmem>>, vector<1x8x128xbf16>
    %236 = vector.shape_cast %235 : vector<1x8x128xbf16> to vector<8x128xbf16>
    %237 = vector.shape_cast %233 : vector<8x128xbf16> to vector<1x8x128xbf16>
    tpu.vector_store %arg5[%234, %c0_63, %c0_64], %237 {strides = array<i32>} : memref<8x8x128xbf16, #tpu.memory_space<vmem>>, vector<1x8x128xbf16>,
    %c6_i32 = arith.constant 6 : i32
    %238 = arith.index_cast %c6_i32 : i32 to index
    %c0_65 = arith.constant 0 : index
    %c0_66 = arith.constant 0 : index
    %239 = vector.load %arg6[%238, %c0_65, %c0_66] : memref<8x8x512xbf16, #tpu.memory_space<vmem>>, vector<1x8x512xbf16>
    %240 = vector.shape_cast %239 : vector<1x8x512xbf16> to vector<8x512xbf16>
    %241 = arith.extf %240 : vector<8x512xbf16> to vector<8x512xf32>
    %242 = arith.truncf %232 : vector<8x128xf32> to vector<8x128xbf16>
    %cst_67 = arith.constant dense<0.000000e+00> : vector<8x512xf32>
    %243 = tpu.matmul %242, %13, %cst_67 {dimension_numbers = #tpu.dot_dimension_numbers<[1], [0], [0], [1], [0, 0, 1, 1], [], []>} : vector<8x128xbf16>, vector<128x512xbf16>, vector<8x512xf32> -> vector<8x512xf32>
    %244 = arith.addf %241, %243 : vector<8x512xf32>
    %245 = vector.extract_strided_slice %244 {offsets = [0, 0], sizes = [8, 128], strides = [1, 1]} : vector<8x512xf32> to vector<8x128xf32>
    %246 = arith.negf %245 : vector<8x128xf32>
    %247 = math.exp %246 : vector<8x128xf32>
    %cst_68 = arith.constant 1.000000e+00 : f32
    %248 = vector.broadcast %cst_68 : f32 to vector<8x128xf32>
    %249 = arith.addf %248, %247 : vector<8x128xf32>
    %250 = arith.divf %248, %249 : vector<8x128xf32>
    %251 = vector.extract_strided_slice %244 {offsets = [0, 128], sizes = [8, 128], strides = [1, 1]} : vector<8x512xf32> to vector<8x128xf32>
    %252 = arith.negf %251 : vector<8x128xf32>
    %253 = math.exp %252 : vector<8x128xf32>
    %cst_69 = arith.constant 1.000000e+00 : f32
    %254 = vector.broadcast %cst_69 : f32 to vector<8x128xf32>
    %255 = arith.addf %254, %253 : vector<8x128xf32>
    %256 = arith.divf %254, %255 : vector<8x128xf32>
    %257 = vector.extract_strided_slice %244 {offsets = [0, 256], sizes = [8, 128], strides = [1, 1]} : vector<8x512xf32> to vector<8x128xf32>
    %258 = math.tanh %257 : vector<8x128xf32>
    %259 = vector.extract_strided_slice %244 {offsets = [0, 384], sizes = [8, 128], strides = [1, 1]} : vector<8x512xf32> to vector<8x128xf32>
    %260 = arith.negf %259 : vector<8x128xf32>
    %261 = math.exp %260 : vector<8x128xf32>
    %cst_70 = arith.constant 1.000000e+00 : f32
    %262 = vector.broadcast %cst_70 : f32 to vector<8x128xf32>
    %263 = arith.addf %262, %261 : vector<8x128xf32>
    %264 = arith.divf %262, %263 : vector<8x128xf32>
    %265 = arith.mulf %256, %230 : vector<8x128xf32>
    %266 = arith.mulf %250, %258 : vector<8x128xf32>
    %267 = arith.addf %265, %266 : vector<8x128xf32>
    %268 = math.tanh %267 : vector<8x128xf32>
    %269 = arith.mulf %264, %268 : vector<8x128xf32>
    %270 = arith.truncf %269 : vector<8x128xf32> to vector<8x128xbf16>
    %271 = arith.index_cast %c6_i32 : i32 to index
    %c0_71 = arith.constant 0 : index
    %c0_72 = arith.constant 0 : index
    %272 = vector.load %arg5[%271, %c0_71, %c0_72] : memref<8x8x128xbf16, #tpu.memory_space<vmem>>, vector<1x8x128xbf16>
    %273 = vector.shape_cast %272 : vector<1x8x128xbf16> to vector<8x128xbf16>
    %274 = vector.shape_cast %270 : vector<8x128xbf16> to vector<1x8x128xbf16>
    tpu.vector_store %arg5[%271, %c0_71, %c0_72], %274 {strides = array<i32>} : memref<8x8x128xbf16, #tpu.memory_space<vmem>>, vector<1x8x128xbf16>,
    %c7_i32 = arith.constant 7 : i32
    %275 = arith.index_cast %c7_i32 : i32 to index
    %c0_73 = arith.constant 0 : index
    %c0_74 = arith.constant 0 : index
    %276 = vector.load %arg6[%275, %c0_73, %c0_74] : memref<8x8x512xbf16, #tpu.memory_space<vmem>>, vector<1x8x512xbf16>
    %277 = vector.shape_cast %276 : vector<1x8x512xbf16> to vector<8x512xbf16>
    %278 = arith.extf %277 : vector<8x512xbf16> to vector<8x512xf32>
    %279 = arith.truncf %269 : vector<8x128xf32> to vector<8x128xbf16>
    %cst_75 = arith.constant dense<0.000000e+00> : vector<8x512xf32>
    %280 = tpu.matmul %279, %13, %cst_75 {dimension_numbers = #tpu.dot_dimension_numbers<[1], [0], [0], [1], [0, 0, 1, 1], [], []>} : vector<8x128xbf16>, vector<128x512xbf16>, vector<8x512xf32> -> vector<8x512xf32>
    %281 = arith.addf %278, %280 : vector<8x512xf32>
    %282 = vector.extract_strided_slice %281 {offsets = [0, 0], sizes = [8, 128], strides = [1, 1]} : vector<8x512xf32> to vector<8x128xf32>
    %283 = arith.negf %282 : vector<8x128xf32>
    %284 = math.exp %283 : vector<8x128xf32>
    %cst_76 = arith.constant 1.000000e+00 : f32
    %285 = vector.broadcast %cst_76 : f32 to vector<8x128xf32>
    %286 = arith.addf %285, %284 : vector<8x128xf32>
    %287 = arith.divf %285, %286 : vector<8x128xf32>
    %288 = vector.extract_strided_slice %281 {offsets = [0, 128], sizes = [8, 128], strides = [1, 1]} : vector<8x512xf32> to vector<8x128xf32>
    %289 = arith.negf %288 : vector<8x128xf32>
    %290 = math.exp %289 : vector<8x128xf32>
    %cst_77 = arith.constant 1.000000e+00 : f32
    %291 = vector.broadcast %cst_77 : f32 to vector<8x128xf32>
    %292 = arith.addf %291, %290 : vector<8x128xf32>
    %293 = arith.divf %291, %292 : vector<8x128xf32>
    %294 = vector.extract_strided_slice %281 {offsets = [0, 256], sizes = [8, 128], strides = [1, 1]} : vector<8x512xf32> to vector<8x128xf32>
    %295 = math.tanh %294 : vector<8x128xf32>
    %296 = vector.extract_strided_slice %281 {offsets = [0, 384], sizes = [8, 128], strides = [1, 1]} : vector<8x512xf32> to vector<8x128xf32>
    %297 = arith.negf %296 : vector<8x128xf32>
    %298 = math.exp %297 : vector<8x128xf32>
    %cst_78 = arith.constant 1.000000e+00 : f32
    %299 = vector.broadcast %cst_78 : f32 to vector<8x128xf32>
    %300 = arith.addf %299, %298 : vector<8x128xf32>
    %301 = arith.divf %299, %300 : vector<8x128xf32>
    %302 = arith.mulf %293, %267 : vector<8x128xf32>
    %303 = arith.mulf %287, %295 : vector<8x128xf32>
    %304 = arith.addf %302, %303 : vector<8x128xf32>
    %305 = math.tanh %304 : vector<8x128xf32>
    %306 = arith.mulf %301, %305 : vector<8x128xf32>
    %307 = arith.truncf %306 : vector<8x128xf32> to vector<8x128xbf16>
    %308 = arith.index_cast %c7_i32 : i32 to index
    %c0_79 = arith.constant 0 : index
    %c0_80 = arith.constant 0 : index
    %309 = vector.load %arg5[%308, %c0_79, %c0_80] : memref<8x8x128xbf16, #tpu.memory_space<vmem>>, vector<1x8x128xbf16>
    %310 = vector.shape_cast %309 : vector<1x8x128xbf16> to vector<8x128xbf16>
    %311 = vector.shape_cast %307 : vector<8x128xbf16> to vector<1x8x128xbf16>
    tpu.vector_store %arg5[%308, %c0_79, %c0_80], %311 {strides = array<i32>} : memref<8x8x128xbf16, #tpu.memory_space<vmem>>, vector<1x8x128xbf16>,
    %c8_i32 = arith.constant 8 : i32
    %c0_81 = arith.constant 0 : index
    %c0_82 = arith.constant 0 : index
    %312 = vector.load %arg7[%c0_81, %c0_82] : memref<8x128xf32, #tpu.memory_space<vmem>>, vector<8x128xf32>
    tpu.vector_store %arg7[%c0_81, %c0_82], %306 {strides = array<i32>} : memref<8x128xf32, #tpu.memory_space<vmem>>, vector<8x128xf32>,
    %c0_83 = arith.constant 0 : index
    %c0_84 = arith.constant 0 : index
    %313 = vector.load %arg8[%c0_83, %c0_84] : memref<8x128xf32, #tpu.memory_space<vmem>>, vector<8x128xf32>
    tpu.vector_store %arg8[%c0_83, %c0_84], %304 {strides = array<i32>} : memref<8x128xf32, #tpu.memory_space<vmem>>, vector<8x128xf32>,
    return
  }
  func.func @transform_0(%arg0: i32) -> (i32, i32, i32) {
    %c0_i32 = arith.constant 0 : i32
    %c0_i32_0 = arith.constant 0 : i32
    %c0_i32_1 = arith.constant 0 : i32
    return %arg0, %c0_i32, %c0_i32_0 : i32, i32, i32
  }
  func.func @transform_1(%arg0: i32) -> (i32, i32) {
    %c0_i32 = arith.constant 0 : i32
    %c0_i32_0 = arith.constant 0 : i32
    %c0_i32_1 = arith.constant 0 : i32
    return %c0_i32, %c0_i32_0 : i32, i32
  }
  func.func @transform_2(%arg0: i32) -> (i32, i32) {
    %c0_i32 = arith.constant 0 : i32
    %c0_i32_0 = arith.constant 0 : i32
    %c0_i32_1 = arith.constant 0 : i32
    return %c0_i32, %c0_i32_0 : i32, i32
  }
  func.func @transform_3(%arg0: i32) -> (i32, i32) {
    %c0_i32 = arith.constant 0 : i32
    %c0_i32_0 = arith.constant 0 : i32
    %c0_i32_1 = arith.constant 0 : i32
    return %c0_i32, %c0_i32_0 : i32, i32
  }
  func.func @transform_4(%arg0: i32) -> (i32, i32, i32) {
    %c0_i32 = arith.constant 0 : i32
    %c0_i32_0 = arith.constant 0 : i32
    %c0_i32_1 = arith.constant 0 : i32
    return %arg0, %c0_i32, %c0_i32_0 : i32, i32, i32
  }
}

</mosaic_0001>

<bundles_post_ra>
// kernel: lstm_model_forward.2
= control target key start
LH: loop header
LB: loop body
LE: loop exit
PB: predicated region body
PF: predicated region fallthrough
CT: control target
= control target key end

     0   :  { %9 = vsyncpa [#allocation6], 0  ;;  %s2824_s0 = inlined_call_operand.vmem [shape: bf16[8,8,128], index: 0, kind: input, shape index: {}]   ;;  %s2825_s1 = inlined_call_operand.hbm [shape: bf16[128,512], index: 1, kind: input, shape index: {}]   ;;  %s2826_s2 = inlined_call_operand.hbm [shape: bf16[128,512], index: 2, kind: input, shape index: {}]   ;;  %s2827_s3 = inlined_call_operand.vmem [shape: f32[1,512], index: 3, kind: input, shape index: {}]   ;;  %s2828_s4 = inlined_call_operand.vmem [shape: bf16[8,8,128], index: 4, kind: output, shape index: {}]  }
   0x1   :  { %10 = vsyncpa [#allocation8], 0  ;;  %s2194_s15 = smov [#allocation5]   ;;  %s2146_s19 = scalar_lea.hbm %s2825_s1, 4096 }
   0x2   :  { %s18_s16 = sshll.u32 %s2194_s15, 4  ;;  %p2147_p0 = scmp.ne.s32.totalorder %s2825_s1, %s2146_s19  ;;  %s19_s16 = int_to_ptr.vmem [resolvable:$true] %s18_s16 }
   0x3   :  { %p2150_p1 = scmp.lt.u32.totalorder %s2146_s19, %s2825_s1 }
   0x5   :  { %p2152_p2 = pnand %p2150_p1, %p2147_p0 }
   0x7   :  { %2155 = shalt.err (!%p2152_p2)
}
   0x8   :  { %s2156_s24 = scalar_lea.vmem %s19_s16, 4096  ;;  %p2161_p4 = scmp.lt.s32.totalorder %s19_s16, %s19_s16 }
   0x9   :  { %p2157_p3 = scmp.ne.s32.totalorder %s19_s16, %s2156_s24  ;;  %p2162_p5 = scmp.lt.s32.totalorder %s2156_s24, %s2156_s24 }
   0xb   :  { %p2163_p6 = por %p2162_p5, %p2161_p4 }
   0xd   :  { %p2164_p7 = pnand %p2163_p6, %p2157_p3 }
   0xf   :  { %2167 = shalt.err (!%p2164_p7)
}
  0x10   :  { %s2195_s25 = smov 256   ;;  %s2196_s26 = smov 16  }
  0x11   :  { %24 = dma.hbm_to_vmem [thread:$0]  %s2825_s1, 4096, %s19_s16, [#allocation6], %s2195_s25, %s2195_s25, %s2196_s26  }
  0x12   :  { %s2197_s29 = smov [#allocation7]   ;;  %s2168_s7 = scalar_lea.hbm %s2826_s2, 4096 }
  0x13   :  { %s30_s30 = sshll.u32 %s2197_s29, 4  ;;  %p2169_p8 = scmp.ne.s32.totalorder %s2826_s2, %s2168_s7  ;;  %s31_s30 = int_to_ptr.vmem [resolvable:$true] %s30_s30 }
  0x14   :  { %p2172_p9 = scmp.lt.u32.totalorder %s2168_s7, %s2826_s2 }
  0x16   :  { %p2174_p10 = pnand %p2172_p9, %p2169_p8 }
  0x18   :  { %2177 = shalt.err (!%p2174_p10)
}
  0x19   :  { %s2178_s12 = scalar_lea.vmem %s31_s30, 4096  ;;  %p2183_p12 = scmp.lt.s32.totalorder %s31_s30, %s31_s30 }
  0x1a   :  { %p2179_p11 = scmp.ne.s32.totalorder %s31_s30, %s2178_s12  ;;  %p2184_p13 = scmp.lt.s32.totalorder %s2178_s12, %s2178_s12 }
  0x1c   :  { %p2185_p0 = por %p2184_p13, %p2183_p12 }
  0x1e   :  { %p2186_p1 = pnand %p2185_p0, %p2179_p11 }
  0x20   :  { %2189 = shalt.err (!%p2186_p1)
}
  0x21   :  { %36 = dma.hbm_to_vmem [thread:$0]  %s2826_s2, 4096, %s31_s30, [#allocation8], %s2195_s25, %s2195_s25, %s2196_s26  }
  0x22   :  { %2190 = dma.done.wait [#allocation6], 4096  }
  0x23   :  { %2191 = vsyncadd [#allocation6], 4294963200 }
  0x24   :  { %2192 = dma.done.wait [#allocation8], 4096  }
  0x25   :  { %2193 = vsyncadd [#allocation8], 4294963200  ;;  %v2829_v0 = vmov 0   ;;  %v1886_v1 = vld [vmem:[#allocation5 + $0x4] ss:$16 sps:$4 sm:$0xff]   ;;  %v1947_v44 = vld [vmem:[%s2824_s0 + $0x8] sm:$0xff]  }
  0x26   :  { %330 = vmatprep.mubr.bf16.mxu0 %v2829_v0  ;;  %403 = vmatprep.mubr.bf16.mxu1 %v2829_v0  ;;  %v1888_v2 = vld [vmem:[#allocation5 + $0xc] ss:$16 sps:$4 sm:$0xff]   ;;  %v1890_v3 = vld [vmem:[#allocation5] ss:$16 sps:$4 sm:$0xff]   ;;  %v1891_v4 = vld [vmem:[#allocation5 + $0x8] ss:$16 sps:$4 sm:$0xff]  }
  0x27   :  { %298 = vmatprep.subr.bf16.mxu0 %v1886_v1  ;;  %371 = vmatprep.subr.bf16.mxu1 %v1888_v2  ;;  %v1892_v5 = vld [vmem:[#allocation5 + $0x24] ss:$16 sps:$4 sm:$0xff]   ;;  %v1894_v6 = vld [vmem:[#allocation5 + $0x2c] ss:$16 sps:$4 sm:$0xff]   ;;  %v1896_v7 = vld [vmem:[#allocation5 + $0x20] ss:$16 sps:$4 sm:$0xff]  }
  0x28   :  { %299 = vmatpush1.bf16.msra.mxu0 %v1890_v3  ;;  %372 = vmatpush1.bf16.msra.mxu1 %v1891_v4  ;;  %v1897_v8 = vld [vmem:[#allocation5 + $0x28] ss:$16 sps:$4 sm:$0xff]   ;;  %v1898_v9 = vld [vmem:[#allocation5 + $0x44] ss:$16 sps:$4 sm:$0xff]   ;;  %v1900_v10 = vld [vmem:[#allocation5 + $0x4c] ss:$16 sps:$4 sm:$0xff]  }
  0x29   :  { %300 = vmatprep.subr.bf16.mxu0 %v1892_v5  ;;  %373 = vmatprep.subr.bf16.mxu1 %v1894_v6  ;;  %v1902_v11 = vld [vmem:[#allocation5 + $0x40] ss:$16 sps:$4 sm:$0xff]   ;;  %v1903_v12 = vld [vmem:[#allocation5 + $0x48] ss:$16 sps:$4 sm:$0xff]   ;;  %v1904_v13 = vld [vmem:[#allocation5 + $0x64] ss:$16 sps:$4 sm:$0xff]  }
  0x2a   :  { %v1906_v14 = vld [vmem:[#allocation5 + $0x6c] ss:$16 sps:$4 sm:$0xff]   ;;  %v1908_v15 = vld [vmem:[#allocation5 + $0x60] ss:$16 sps:$4 sm:$0xff]   ;;  %v1909_v16 = vld [vmem:[#allocation5 + $0x68] ss:$16 sps:$4 sm:$0xff]  }
  0x2b   :  { %v1910_v17 = vld [vmem:[#allocation5 + $0x84] ss:$16 sps:$4 sm:$0xff]   ;;  %v1912_v18 = vld [vmem:[#allocation5 + $0x8c] ss:$16 sps:$4 sm:$0xff]   ;;  %v1914_v19 = vld [vmem:[#allocation5 + $0x80] ss:$16 sps:$4 sm:$0xff]  }
  0x2c   :  { %301 = vmatpush1.bf16.msra.mxu0 %v1896_v7  ;;  %374 = vmatpush1.bf16.msra.mxu1 %v1897_v8  ;;  %v1915_v20 = vld [vmem:[#allocation5 + $0x88] ss:$16 sps:$4 sm:$0xff]   ;;  %v1916_v21 = vld [vmem:[#allocation5 + $0xa4] ss:$16 sps:$4 sm:$0xff]   ;;  %v1918_v22 = vld [vmem:[#allocation5 + $0xac] ss:$16 sps:$4 sm:$0xff]   ;;  %v94_v7 = vlaneseq }
  0x2d   :  { %302 = vmatprep.subr.bf16.mxu0 %v1898_v9  ;;  %375 = vmatprep.subr.bf16.mxu1 %v1900_v10  ;;  %v1920_v23 = vld [vmem:[#allocation5 + $0xa0] ss:$16 sps:$4 sm:$0xff]   ;;  %v1921_v24 = vld [vmem:[#allocation5 + $0xa8] ss:$16 sps:$4 sm:$0xff]   ;;  %v1922_v25 = vld [vmem:[#allocation5 + $0xc4] ss:$16 sps:$4 sm:$0xff]  }
  0x2e   :  { %v1924_v26 = vld [vmem:[#allocation5 + $0xcc] ss:$16 sps:$4 sm:$0xff]   ;;  %v1926_v27 = vld [vmem:[#allocation5 + $0xc0] ss:$16 sps:$4 sm:$0xff]   ;;  %v1927_v28 = vld [vmem:[#allocation5 + $0xc8] ss:$16 sps:$4 sm:$0xff]  }
  0x2f   :  { %v1928_v29 = vld [vmem:[#allocation5 + $0xe4] ss:$16 sps:$4 sm:$0xff]   ;;  %v1930_v30 = vld [vmem:[#allocation5 + $0xec] ss:$16 sps:$4 sm:$0xff]   ;;  %v1932_v31 = vld [vmem:[#allocation5 + $0xe0] ss:$16 sps:$4 sm:$0xff]  }
  0x30   :  { %303 = vmatpush1.bf16.msra.mxu0 %v1902_v11  ;;  %376 = vmatpush1.bf16.msra.mxu1 %v1903_v12  ;;  %v1933_v32 = vld [vmem:[#allocation5 + $0xe8] ss:$16 sps:$4 sm:$0xff]   ;;  %v2251_v33 = vld [vmem:[#allocation7 + $0x4] ss:$16 sps:$4 sm:$0xff]   ;;  %v2253_v34 = vld [vmem:[#allocation7 + $0xc] ss:$16 sps:$4 sm:$0xff]  }
  0x31   :  { %304 = vmatprep.subr.bf16.mxu0 %v1904_v13  ;;  %377 = vmatprep.subr.bf16.mxu1 %v1906_v14  ;;  %v1934_v35 = vld [vmem:[%s2824_s0] sm:$0xff]   ;;  %v2260_v37 = vld [vmem:[#allocation7 + $0x8] ss:$16 sps:$4 sm:$0xff]   ;;  %v2266_v39 = vld [vmem:[#allocation7 + $0x2c] ss:$16 sps:$4 sm:$0xff]   ;;  %v2199_v6 = vmov 0.0|0.0  }
  0x32   :  { %v2258_v36 = vld [vmem:[#allocation7] ss:$16 sps:$4 sm:$0xff]   ;;  %v2264_v38 = vld [vmem:[#allocation7 + $0x24] ss:$16 sps:$4 sm:$0xff]   ;;  %v2272_v41 = vld [vmem:[#allocation7 + $0x28] ss:$16 sps:$4 sm:$0xff]  }
  0x33   :  { %v2268_v40 = vld [vmem:[#allocation7 + $0x20] ss:$16 sps:$4 sm:$0xff]   ;;  %v2276_v42 = vld [vmem:[#allocation7 + $0x44] ss:$16 sps:$4 sm:$0xff]   ;;  %v2278_v43 = vld [vmem:[#allocation7 + $0x4c] ss:$16 sps:$4 sm:$0xff]  }
  0x34   :  { %305 = vmatpush1.bf16.msra.mxu0 %v1908_v15  ;;  %378 = vmatpush1.bf16.msra.mxu1 %v1909_v16  ;;  %v2285_v45 = vld [vmem:[#allocation7 + $0x40] ss:$16 sps:$4 sm:$0xff]   ;;  %v2287_v46 = vld [vmem:[#allocation7 + $0x48] ss:$16 sps:$4 sm:$0xff]   ;;  %v2291_v47 = vld [vmem:[#allocation7 + $0x64] ss:$16 sps:$4 sm:$0xff]  }
  0x35   :  { %306 = vmatprep.subr.bf16.mxu0 %v1910_v17  ;;  %379 = vmatprep.subr.bf16.mxu1 %v1912_v18  ;;  %v2295_v48 = vld [vmem:[#allocation7 + $0x6c] ss:$16 sps:$4 sm:$0xff]   ;;  %v2297_v49 = vld [vmem:[#allocation7 + $0x60] ss:$16 sps:$4 sm:$0xff]   ;;  %v2299_v50 = vld [vmem:[#allocation7 + $0x68] ss:$16 sps:$4 sm:$0xff]  }
  0x36   :  { %v2303_v51 = vld [vmem:[#allocation7 + $0x84] ss:$16 sps:$4 sm:$0xff]   ;;  %v2307_v52 = vld [vmem:[#allocation7 + $0x8c] ss:$16 sps:$4 sm:$0xff]   ;;  %v2316_v54 = vld [vmem:[#allocation7 + $0x80] ss:$16 sps:$4 sm:$0xff]  }
  0x37   :  { %v1960_v53 = vld [vmem:[%s2824_s0 + $0x10] sm:$0xff]   ;;  %v2318_v55 = vld [vmem:[#allocation7 + $0x88] ss:$16 sps:$4 sm:$0xff]   ;;  %v2324_v57 = vld [vmem:[#allocation7 + $0xac] ss:$16 sps:$4 sm:$0xff]   ;;  %v95_v8 = vshrl.u32 %v94_v7, 7 }
  0x38   :  { %307 = vmatpush1.bf16.msra.mxu0 %v1914_v19  ;;  %380 = vmatpush1.bf16.msra.mxu1 %v1915_v20  ;;  %v2322_v56 = vld [vmem:[#allocation7 + $0xa4] ss:$16 sps:$4 sm:$0xff]   ;;  %v2328_v58 = vld [vmem:[#allocation7 + $0xa0] ss:$16 sps:$4 sm:$0xff]   ;;  %v2330_v59 = vld [vmem:[#allocation7 + $0xa8] ss:$16 sps:$4 sm:$0xff]  }
  0x39   :  { %308 = vmatprep.subr.bf16.mxu0 %v1916_v21  ;;  %381 = vmatprep.subr.bf16.mxu1 %v1918_v22  ;;  %v2334_v60 = vld [vmem:[#allocation7 + $0xc4] ss:$16 sps:$4 sm:$0xff]   ;;  %v2336_v61 = vld [vmem:[#allocation7 + $0xcc] ss:$16 sps:$4 sm:$0xff]   ;;  %v2345_v63 = vld [vmem:[#allocation7 + $0xc0] ss:$16 sps:$4 sm:$0xff]  }
  0x3a   :  { %v1973_v62 = vld [vmem:[%s2824_s0 + $0x18] sm:$0xff]   ;;  %v2351_v2 = vld [vmem:[#allocation7 + $0xe4] ss:$16 sps:$4 sm:$0xff]   ;;  %v2357_v4 = vld [vmem:[#allocation7 + $0xe0] ss:$16 sps:$4 sm:$0xff]   ;;  %v96_v9 = vsub.s32 0, %v95_v8 }
  0x3b   :  { %v2347_v1 = vld [vmem:[#allocation7 + $0xc8] ss:$16 sps:$4 sm:$0xff]   ;;  %v2353_v3 = vld [vmem:[#allocation7 + $0xec] ss:$16 sps:$4 sm:$0xff]   ;;  %v104_v10 = vsub.s32 2, %v95_v8  ;;  %v100_v12 = vsub.s32 1, %v95_v8 }
  0x3c   :  { %309 = vmatpush1.bf16.msra.mxu0 %v1920_v23  ;;  %382 = vmatpush1.bf16.msra.mxu1 %v1921_v24  ;;  %v2359_v5 = vld [vmem:[#allocation7 + $0xe8] ss:$16 sps:$4 sm:$0xff]   ;;  %v92_v11 = vld [vmem:[%s2827_s3] sm:$0xf]  ;;  %v108_v13 = vsub.s32 3, %v95_v8 }
  0x3d   :  { %310 = vmatprep.subr.bf16.mxu0 %v1922_v25  ;;  %383 = vmatprep.subr.bf16.mxu1 %v1924_v26  ;;  %v2406_v14 = vrot.slane %v92_v11, %v96_v9  ;;  %v2408_v15 = vrot.slane %v92_v11, %v104_v10  ;;  %v2410_v16 = vrot.slane %v92_v11, %v100_v12 }
  0x3e   :  { %v2412_v17 = vrot.slane %v92_v11, %v108_v13 }
  0x40   :  { %311 = vmatpush1.bf16.msra.mxu0 %v1926_v27  ;;  %384 = vmatpush1.bf16.msra.mxu1 %v1927_v28 }
  0x41   :  { %312 = vmatprep.subr.bf16.mxu0 %v1928_v29  ;;  %385 = vmatprep.subr.bf16.mxu1 %v1930_v30 }
  0x44   :  { %313 = vmatpush1.bf16.msra.mxu0 %v1932_v31  ;;  %386 = vmatpush1.bf16.msra.mxu1 %v1933_v32 }
  0x45   :  { %789 = vmatprep.subr.bf16.mxu0 %v2251_v33  ;;  %830 = vmatprep.subr.bf16.mxu1 %v2253_v34 }
  0x47   :  { %331 = vmatmul.mubr.bf16.vlgmr.msra.gmra.mrb[0].mxu0 %v1934_v35  ;;  %404 = vmatmul.mubr.bf16.vlgmr.msra.gmra.mrb[0].mxu1 %v1934_v35 }
  0x48   :  { %790 = vmatpush1.bf16.msra.mxu0 %v2258_v36  ;;  %831 = vmatpush1.bf16.msra.mxu1 %v2260_v37 }
  0x49   :  { %791 = vmatprep.subr.bf16.mxu0 %v2264_v38  ;;  %832 = vmatprep.subr.bf16.mxu1 %v2266_v39 }
  0x4a   :  { %340 = vmatprep.mubr.bf16.mxu0 %v2829_v0  ;;  %413 = vmatprep.mubr.bf16.mxu1 %v2829_v0 }
  0x4c   :  { %792 = vmatpush1.bf16.msra.mxu0 %v2268_v40  ;;  %833 = vmatpush1.bf16.msra.mxu1 %v2272_v41 }
  0x4d   :  { %793 = vmatprep.subr.bf16.mxu0 %v2276_v42  ;;  %834 = vmatprep.subr.bf16.mxu1 %v2278_v43 }
  0x4f   :  { %341 = vmatmul.mubr.bf16.gmra.mrb[4].mxu0 %v1947_v44  ;;  %414 = vmatmul.mubr.bf16.gmra.mrb[4].mxu1 %v1947_v44 }
  0x50   :  { %794 = vmatpush1.bf16.msra.mxu0 %v2285_v45  ;;  %835 = vmatpush1.bf16.msra.mxu1 %v2287_v46 }
  0x51   :  { %795 = vmatprep.subr.bf16.mxu0 %v2291_v47  ;;  %836 = vmatprep.subr.bf16.mxu1 %v2295_v48 }
  0x52   :  { %350 = vmatprep.mubr.bf16.mxu0 %v2829_v0  ;;  %423 = vmatprep.mubr.bf16.mxu1 %v2829_v0 }
  0x54   :  { %796 = vmatpush1.bf16.msra.mxu0 %v2297_v49  ;;  %837 = vmatpush1.bf16.msra.mxu1 %v2299_v50 }
  0x55   :  { %797 = vmatprep.subr.bf16.mxu0 %v2303_v51  ;;  %838 = vmatprep.subr.bf16.mxu1 %v2307_v52 }
  0x57   :  { %351 = vmatmul.mubr.bf16.gmra.mrb[8].mxu0 %v1960_v53  ;;  %424 = vmatmul.mubr.bf16.gmra.mrb[8].mxu1 %v1960_v53 }
  0x58   :  { %798 = vmatpush1.bf16.msra.mxu0 %v2316_v54  ;;  %839 = vmatpush1.bf16.msra.mxu1 %v2318_v55 }
  0x59   :  { %799 = vmatprep.subr.bf16.mxu0 %v2322_v56  ;;  %840 = vmatprep.subr.bf16.mxu1 %v2324_v57 }
  0x5a   :  { %360 = vmatprep.mubr.bf16.mxu0 %v2829_v0  ;;  %433 = vmatprep.mubr.bf16.mxu1 %v2829_v0 }
  0x5c   :  { %800 = vmatpush1.bf16.msra.mxu0 %v2328_v58  ;;  %841 = vmatpush1.bf16.msra.mxu1 %v2330_v59 }
  0x5d   :  { %801 = vmatprep.subr.bf16.mxu0 %v2334_v60  ;;  %842 = vmatprep.subr.bf16.mxu1 %v2336_v61 }
  0x5f   :  { %361 = vmatmul.mubr.bf16.gmra.mrb[12].mxu0 %v1973_v62  ;;  %434 = vmatmul.mubr.bf16.gmra.mrb[12].mxu1 %v1973_v62 }
  0x60   :  { %802 = vmatpush1.bf16.msra.mxu0 %v2345_v63  ;;  %843 = vmatpush1.bf16.msra.mxu1 %v2347_v1 }
  0x61   :  { %803 = vmatprep.subr.bf16.mxu0 %v2351_v2  ;;  %844 = vmatprep.subr.bf16.mxu1 %v2353_v3 }
  0x62   :  { %821 = vmatprep.mubr.bf16.mxu0 %v2829_v0  ;;  %862 = vmatprep.mubr.bf16.mxu1 %v2829_v0 }
  0x64   :  { %804 = vmatpush1.bf16.msra.mxu0 %v2357_v4  ;;  %845 = vmatpush1.bf16.msra.mxu1 %v2359_v5 }
  0x65   :  { %908 = vmatprep.subr.bf16.mxu0 %v2251_v33  ;;  %949 = vmatprep.subr.bf16.mxu1 %v2253_v34 }
  0x67   :  { %822 = vmatmul.mubr.bf16.vlgmr.msra.gmra.mrb[16].mxu0 %v2199_v6  ;;  %863 = vmatmul.mubr.bf16.vlgmr.msra.gmra.mrb[16].mxu1 %v2199_v6 }
  0x68   :  { %909 = vmatpush1.bf16.msra.mxu0 %v2258_v36  ;;  %950 = vmatpush1.bf16.msra.mxu1 %v2260_v37 }
  0x69   :  { %910 = vmatprep.subr.bf16.mxu0 %v2264_v38  ;;  %951 = vmatprep.subr.bf16.mxu1 %v2266_v39 }
  0x6a   :  { %940 = vmatprep.mubr.bf16.mxu0 %v2829_v0  ;;  %981 = vmatprep.mubr.bf16.mxu1 %v2829_v0 }
  0x6c   :  { %911 = vmatpush1.bf16.msra.mxu0 %v2268_v40  ;;  %952 = vmatpush1.bf16.msra.mxu1 %v2272_v41 }
  0x6d   :  { %912 = vmatprep.subr.bf16.mxu0 %v2276_v42  ;;  %953 = vmatprep.subr.bf16.mxu1 %v2278_v43 }
  0x70   :  { %913 = vmatpush1.bf16.msra.mxu0 %v2285_v45  ;;  %954 = vmatpush1.bf16.msra.mxu1 %v2287_v46 }
  0x71   :  { %914 = vmatprep.subr.bf16.mxu0 %v2291_v47  ;;  %955 = vmatprep.subr.bf16.mxu1 %v2295_v48 }
  0x74   :  { %915 = vmatpush1.bf16.msra.mxu0 %v2297_v49  ;;  %956 = vmatpush1.bf16.msra.mxu1 %v2299_v50 }
  0x75   :  { %916 = vmatprep.subr.bf16.mxu0 %v2303_v51  ;;  %957 = vmatprep.subr.bf16.mxu1 %v2307_v52 }
  0x78   :  { %917 = vmatpush1.bf16.msra.mxu0 %v2316_v54  ;;  %958 = vmatpush1.bf16.msra.mxu1 %v2318_v55 }
  0x79   :  { %918 = vmatprep.subr.bf16.mxu0 %v2322_v56  ;;  %959 = vmatprep.subr.bf16.mxu1 %v2324_v57 }
  0x7c   :  { %919 = vmatpush1.bf16.msra.mxu0 %v2328_v58  ;;  %960 = vmatpush1.bf16.msra.mxu1 %v2330_v59 }
  0x7d   :  { %920 = vmatprep.subr.bf16.mxu0 %v2334_v60  ;;  %961 = vmatprep.subr.bf16.mxu1 %v2336_v61 }
  0x80   :  { %921 = vmatpush1.bf16.msra.mxu0 %v2345_v63  ;;  %962 = vmatpush1.bf16.msra.mxu1 %v2347_v1 }
  0x81   :  { %922 = vmatprep.subr.bf16.mxu0 %v2351_v2  ;;  %963 = vmatprep.subr.bf16.mxu1 %v2353_v3 }
  0x84   :  { %923 = vmatpush1.bf16.msra.mxu0 %v2357_v4  ;;  %964 = vmatpush1.bf16.msra.mxu1 %v2359_v5 }
  0x85   :  { %1028 = vmatprep.subr.bf16.mxu0 %v2251_v33  ;;  %1069 = vmatprep.subr.bf16.mxu1 %v2253_v34 }
 0x11a   :  { %v332_v18 = vpop.f32.mrb[0].mxu0  ;;  %v405_v19 = vpop.f32.mrb[0].mxu1 }
 0x11b   :  { %v333_v20 = vadd.f32 %v332_v18, %v2406_v14  ;;  %v334_v21 = vpop.f32.mrb[1].mxu0  ;;  %v406_v22 = vadd.f32 %v405_v19, %v2408_v15  ;;  %v407_v23 = vpop.f32.mrb[1].mxu1 }
 0x11c   :  { %v335_v24 = vadd.f32 %v334_v21, %v2410_v16  ;;  %v336_v25 = vpop.f32.mrb[2].mxu0  ;;  %v408_v26 = vadd.f32 %v407_v23, %v2412_v17  ;;  %v409_v27 = vpop.f32.mrb[2].mxu1 }
 0x11d   :  { %v337_v28 = vadd.f32 %v336_v25, %v2406_v14  ;;  %v338_v29 = vpop.f32.mrb[3].mxu0  ;;  %v410_v30 = vadd.f32 %v409_v27, %v2408_v15  ;;  %v411_v31 = vpop.f32.mrb[3].mxu1 }
 0x11e   :  { %v2420_v32 = vpack.c.bf16 %v335_v24, %v333_v20  ;;  %v339_v35 = vadd.f32 %v338_v29, %v2410_v16  ;;  %v2423_v44 = vpack.c.bf16 %v408_v26, %v406_v22  ;;  %v412_v53 = vadd.f32 %v411_v31, %v2412_v17 }
 0x120   :  { %v2426_v62 = vpack.c.bf16 %v339_v35, %v337_v28  ;;  %v2428_v6 = vpack.c.bf16 %v412_v53, %v410_v30 }
 0x122   :  { %v342_v7 = vpop.f32.mrb[4].mxu0  ;;  %v415_v8 = vpop.f32.mrb[4].mxu1 }
 0x123   :  { %v343_v9 = vadd.f32 %v342_v7, %v2406_v14  ;;  %v344_v10 = vpop.f32.mrb[5].mxu0  ;;  %v416_v11 = vadd.f32 %v415_v8, %v2408_v15  ;;  %v417_v12 = vpop.f32.mrb[5].mxu1 }
 0x124   :  { %v345_v13 = vadd.f32 %v344_v10, %v2410_v16  ;;  %v346_v18 = vpop.f32.mrb[6].mxu0  ;;  %v418_v19 = vadd.f32 %v417_v12, %v2412_v17  ;;  %v419_v20 = vpop.f32.mrb[6].mxu1 }
 0x125   :  { %v347_v21 = vadd.f32 %v346_v18, %v2406_v14  ;;  %v348_v22 = vpop.f32.mrb[7].mxu0  ;;  %v420_v23 = vadd.f32 %v419_v20, %v2408_v15  ;;  %v421_v24 = vpop.f32.mrb[7].mxu1 }
 0x126   :  { %v2436_v25 = vpack.c.bf16 %v345_v13, %v343_v9  ;;  %v349_v26 = vadd.f32 %v348_v22, %v2410_v16  ;;  %v2439_v27 = vpack.c.bf16 %v418_v19, %v416_v11  ;;  %v422_v28 = vadd.f32 %v421_v24, %v2412_v17 }
 0x128   :  { %v2442_v29 = vpack.c.bf16 %v349_v26, %v347_v21  ;;  %v2444_v30 = vpack.c.bf16 %v422_v28, %v420_v23 }
 0x12a   :  { %v352_v31 = vpop.f32.mrb[8].mxu0  ;;  %v425_v35 = vpop.f32.mrb[8].mxu1 }
 0x12b   :  { %v353_v53 = vadd.f32 %v352_v31, %v2406_v14  ;;  %v354_v7 = vpop.f32.mrb[9].mxu0  ;;  %v426_v8 = vadd.f32 %v425_v35, %v2408_v15  ;;  %v427_v10 = vpop.f32.mrb[9].mxu1 }
 0x12c   :  { %v355_v9 = vadd.f32 %v354_v7, %v2410_v16  ;;  %v356_v12 = vpop.f32.mrb[10].mxu0  ;;  %v428_v11 = vadd.f32 %v427_v10, %v2412_v17  ;;  %v429_v13 = vpop.f32.mrb[10].mxu1 }
 0x12d   :  { %v357_v18 = vadd.f32 %v356_v12, %v2406_v14  ;;  %v358_v19 = vpop.f32.mrb[11].mxu0  ;;  %v430_v20 = vadd.f32 %v429_v13, %v2408_v15  ;;  %v431_v21 = vpop.f32.mrb[11].mxu1 }
 0x12e   :  { %v2452_v22 = vpack.c.bf16 %v355_v9, %v353_v53  ;;  %v359_v23 = vadd.f32 %v358_v19, %v2410_v16  ;;  %v2455_v24 = vpack.c.bf16 %v428_v11, %v426_v8  ;;  %v432_v26 = vadd.f32 %v431_v21, %v2412_v17 }
 0x130   :  { %v2458_v28 = vpack.c.bf16 %v359_v23, %v357_v18  ;;  %v2460_v31 = vpack.c.bf16 %v432_v26, %v430_v20 }
 0x132   :  { %2836 = vst [vmem:[#allocation11_spill] sm:$0xff] %v2458_v28  ;;  %2837 = vst [vmem:[#allocation12_spill] sm:$0xff] %v2460_v31  ;;  %v362_v35 = vpop.f32.mrb[12].mxu0  ;;  %v435_v7 = vpop.f32.mrb[12].mxu1 }
 0x133   :  { %v363_v10 = vadd.f32 %v362_v35, %v2406_v14  ;;  %v364_v12 = vpop.f32.mrb[13].mxu0  ;;  %v436_v13 = vadd.f32 %v435_v7, %v2408_v15  ;;  %v437_v0 = vpop.f32.mrb[13].mxu1 }
 0x134   :  { %v365_v53 = vadd.f32 %v364_v12, %v2410_v16  ;;  %v366_v9 = vpop.f32.mrb[14].mxu0  ;;  %v438_v8 = vadd.f32 %v437_v0, %v2412_v17  ;;  %v439_v11 = vpop.f32.mrb[14].mxu1  ;;  %v624_v0 = vunpack.c.l.bf16 %v2420_v32 }
 0x135   :  { %v367_v19 = vadd.f32 %v366_v9, %v2406_v14  ;;  %v368_v18 = vpop.f32.mrb[15].mxu0  ;;  %v440_v20 = vadd.f32 %v439_v11, %v2408_v15  ;;  %v441_v21 = vpop.f32.mrb[15].mxu1  ;;  %v626_v14 = vunpack.c.l.bf16 %v2423_v44  ;;  %v625_v15 = vunpack.c.h.bf16 %v2420_v32 }
 0x136   :  { %v2468_v23 = vpack.c.bf16 %v365_v53, %v363_v10  ;;  %v369_v26 = vadd.f32 %v368_v18, %v2410_v16  ;;  %v2471_v35 = vpack.c.bf16 %v438_v8, %v436_v13  ;;  %v442_v7 = vadd.f32 %v441_v21, %v2412_v17 }
 0x137   :  { %v627_v10 = vunpack.c.h.bf16 %v2423_v44 }
 0x138   :  { %2838 = vst [vmem:[#allocation13_spill] sm:$0xff] %v2471_v35  ;;  %v2474_v31 = vpack.c.bf16 %v369_v26, %v367_v19  ;;  %v2476_v12 = vpack.c.bf16 %v442_v7, %v440_v20 }
 0x13a   :  { %2839 = vst [vmem:[#allocation14_spill] sm:$0xff] %v2474_v31  ;;  %2840 = vst [vmem:[#allocation15_spill] sm:$0xff] %v2476_v12  ;;  %v823_v9 = vpop.f32.mrb[16].mxu0  ;;  %v864_v28 = vpop.f32.mrb[16].mxu1 }
 0x13b   :  { %v871_v53 = vadd.f32 %v823_v9, %v624_v0  ;;  %v873_v16 = vadd.f32 %v864_v28, %v626_v14  ;;  %v825_v13 = vpop.f32.mrb[17].mxu0  ;;  %v866_v8 = vpop.f32.mrb[17].mxu1 }
 0x13c   :  { %v872_v11 = vadd.f32 %v825_v13, %v625_v15  ;;  %v874_v17 = vadd.f32 %v866_v8, %v627_v10  ;;  %v827_v19 = vpop.f32.mrb[18].mxu0  ;;  %v868_v18 = vpop.f32.mrb[18].mxu1 }
 0x13d   :  { %v1833_v20 = vmul.f32 -1.442695, %v871_v53  ;;  %v828_v21 = vpop.f32.mrb[19].mxu0  ;;  %v869_v26 = vpop.f32.mrb[19].mxu1 }
 0x13e   :  { %v1834_v7 = vmul.f32 -1.442695, %v872_v11  ;;  %v1835_v12 = vmul.f32 -1.442695, %v874_v17  ;;  %v906_v17 = vunpack.c.l.bf16 %v2428_v6  ;;  %v907_v21 = vunpack.c.h.bf16 %v2428_v6 }
 0x13f   :  { %1986 = vpow2.f32 %v1833_v20  ;;  %v905_v20 = vunpack.c.h.bf16 %v2426_v62 }
 0x140   :  { %1988 = vpow2.f32 %v1834_v7 }
 0x141   :  { %1990 = vpow2.f32 %v1835_v12 }
 0x142   :  { %1992 = vtanh.f32 %v873_v16  ;;  %v904_v16 = vunpack.c.l.bf16 %v2426_v62 }
 0x149   :  { %v1987_v31 = vpop.eup %1986 }
 0x14a   :  { %v1989_v35 = vpop.eup %1988  ;;  %v878_v32 = vadd.f32 1.0, %v1987_v31 }
 0x14b   :  { %v884_v44 = vadd.f32 1.0, %v1989_v35  ;;  %v1991_v28 = vpop.eup %1990  ;;  %v2841_v35 = vmov 0  }
 0x14c   :  { %1994 = vrcp.f32 %v878_v32  ;;  %v1993_v0 = vpop.eup %1992  ;;  %v891_v10 = vadd.f32 1.0, %v1991_v28 }
 0x14d   :  { %1996 = vrcp.f32 %v884_v44 }
 0x14e   :  { %1998 = vrcp.f32 %v891_v10 }
 0x156   :  { %v1995_v14 = vpop.eup %1994 }
 0x157   :  { %v1997_v9 = vpop.eup %1996  ;;  %v895_v15 = vmul.f32 %v1995_v14, %v1993_v0 }
 0x158   :  { %v894_v53 = vmul.f32 0.0, %v1997_v9  ;;  %v1999_v8 = vpop.eup %1998 }
 0x15a   :  { %v2482_v13 = vadd.f32 %v895_v15, %v894_v53 }
 0x15c   :  { %2000 = vtanh.f32 %v2482_v13 }
 0x166   :  { %v2001_v11 = vpop.eup %2000 }
 0x167   :  { %v898_v31 = vmul.f32 %v2001_v11, %v1999_v8 }
 0x169   :  { %v899_v12 = vpack.c.bf16 %v898_v31, %v898_v31 }
 0x16b   :  { %900 = vst [vmem:[%s2828_s4] sm:$0xf] %v899_v12  ;;  %941 = vmatmul.mubr.bf16.vlgmr.msra.gmra.mrb[20].mxu0 %v899_v12  ;;  %982 = vmatmul.mubr.bf16.vlgmr.msra.gmra.mrb[20].mxu1 %v899_v12 }
 0x16c   :  { %1029 = vmatpush1.bf16.msra.mxu0 %v2258_v36  ;;  %1070 = vmatpush1.bf16.msra.mxu1 %v2260_v37 }
 0x16d   :  { %1030 = vmatprep.subr.bf16.mxu0 %v2264_v38  ;;  %1071 = vmatprep.subr.bf16.mxu1 %v2266_v39 }
 0x16e   :  { %1060 = vmatprep.mubr.bf16.mxu0 %v2841_v35  ;;  %1101 = vmatprep.mubr.bf16.mxu1 %v2841_v35 }
 0x170   :  { %1031 = vmatpush1.bf16.msra.mxu0 %v2268_v40  ;;  %1072 = vmatpush1.bf16.msra.mxu1 %v2272_v41 }
 0x171   :  { %1032 = vmatprep.subr.bf16.mxu0 %v2276_v42  ;;  %1073 = vmatprep.subr.bf16.mxu1 %v2278_v43 }
 0x174   :  { %1033 = vmatpush1.bf16.msra.mxu0 %v2285_v45  ;;  %1074 = vmatpush1.bf16.msra.mxu1 %v2287_v46 }
 0x175   :  { %1034 = vmatprep.subr.bf16.mxu0 %v2291_v47  ;;  %1075 = vmatprep.subr.bf16.mxu1 %v2295_v48 }
 0x178   :  { %1035 = vmatpush1.bf16.msra.mxu0 %v2297_v49  ;;  %1076 = vmatpush1.bf16.msra.mxu1 %v2299_v50 }
 0x179   :  { %1036 = vmatprep.subr.bf16.mxu0 %v2303_v51  ;;  %1077 = vmatprep.subr.bf16.mxu1 %v2307_v52 }
 0x17c   :  { %1037 = vmatpush1.bf16.msra.mxu0 %v2316_v54  ;;  %1078 = vmatpush1.bf16.msra.mxu1 %v2318_v55 }
 0x17d   :  { %1038 = vmatprep.subr.bf16.mxu0 %v2322_v56  ;;  %1079 = vmatprep.subr.bf16.mxu1 %v2324_v57 }
 0x180   :  { %1039 = vmatpush1.bf16.msra.mxu0 %v2328_v58  ;;  %1080 = vmatpush1.bf16.msra.mxu1 %v2330_v59 }
 0x181   :  { %1040 = vmatprep.subr.bf16.mxu0 %v2334_v60  ;;  %1081 = vmatprep.subr.bf16.mxu1 %v2336_v61 }
 0x184   :  { %1041 = vmatpush1.bf16.msra.mxu0 %v2345_v63  ;;  %1082 = vmatpush1.bf16.msra.mxu1 %v2347_v1 }
 0x185   :  { %1042 = vmatprep.subr.bf16.mxu0 %v2351_v2  ;;  %1083 = vmatprep.subr.bf16.mxu1 %v2353_v3 }
 0x188   :  { %1043 = vmatpush1.bf16.msra.mxu0 %v2357_v4  ;;  %1084 = vmatpush1.bf16.msra.mxu1 %v2359_v5 }
 0x189   :  { %1148 = vmatprep.subr.bf16.mxu0 %v2251_v33  ;;  %1189 = vmatprep.subr.bf16.mxu1 %v2253_v34 }
 0x23e   :  { %v942_v19 = vpop.f32.mrb[20].mxu0  ;;  %v983_v18 = vpop.f32.mrb[20].mxu1 }
 0x23f   :  { %v990_v26 = vadd.f32 %v942_v19, %v904_v16  ;;  %v992_v7 = vadd.f32 %v983_v18, %v906_v17  ;;  %v944_v32 = vpop.f32.mrb[21].mxu0  ;;  %v985_v44 = vpop.f32.mrb[21].mxu1 }
 0x240   :  { %v991_v28 = vadd.f32 %v944_v32, %v905_v20  ;;  %v993_v0 = vadd.f32 %v985_v44, %v907_v21  ;;  %v946_v14 = vpop.f32.mrb[22].mxu0  ;;  %v987_v9 = vpop.f32.mrb[22].mxu1 }
 0x241   :  { %v1836_v15 = vmul.f32 -1.442695, %v990_v26  ;;  %v947_v10 = vpop.f32.mrb[23].mxu0  ;;  %v988_v53 = vpop.f32.mrb[23].mxu1  ;;  %v1026_v14 = vunpack.c.l.bf16 %v2439_v27 }
 0x242   :  { %v1837_v8 = vmul.f32 -1.442695, %v991_v28  ;;  %v1838_v11 = vmul.f32 -1.442695, %v993_v0  ;;  %v1025_v10 = vunpack.c.h.bf16 %v2436_v25  ;;  %v1027_v53 = vunpack.c.h.bf16 %v2439_v27 }
 0x243   :  { %2002 = vpow2.f32 %v1836_v15 }
 0x244   :  { %2004 = vpow2.f32 %v1837_v8 }
 0x245   :  { %2006 = vpow2.f32 %v1838_v11 }
 0x246   :  { %2008 = vtanh.f32 %v992_v7 }
 0x24d   :  { %v2003_v31 = vpop.eup %2002 }
 0x24e   :  { %v2005_v12 = vpop.eup %2004  ;;  %v997_v62 = vadd.f32 1.0, %v2003_v31 }
 0x24f   :  { %v1003_v6 = vadd.f32 1.0, %v2005_v12  ;;  %v2007_v16 = vpop.eup %2006 }
 0x250   :  { %2010 = vrcp.f32 %v997_v62  ;;  %v2009_v17 = vpop.eup %2008  ;;  %v1010_v21 = vadd.f32 1.0, %v2007_v16 }
 0x251   :  { %2012 = vrcp.f32 %v1003_v6 }
 0x252   :  { %2014 = vrcp.f32 %v1010_v21 }
 0x25a   :  { %v2011_v19 = vpop.eup %2010 }
 0x25b   :  { %v2013_v18 = vpop.eup %2012  ;;  %v1014_v20 = vmul.f32 %v2011_v19, %v2009_v17 }
 0x25c   :  { %v1013_v26 = vmul.f32 %v2013_v18, %v2482_v13  ;;  %v2015_v44 = vpop.eup %2014  ;;  %v1024_v13 = vunpack.c.l.bf16 %v2436_v25 }
 0x25e   :  { %v2527_v32 = vadd.f32 %v1014_v20, %v1013_v26 }
 0x260   :  { %2016 = vtanh.f32 %v2527_v32 }
 0x26a   :  { %v2017_v28 = vpop.eup %2016 }
 0x26b   :  { %v1017_v0 = vmul.f32 %v2017_v28, %v2015_v44 }
 0x26d   :  { %v1018_v7 = vpack.c.bf16 %v1017_v0, %v1017_v0 }
 0x26f   :  { %1839 = vst [vmem:[%s2828_s4 + $0x4] sm:$0xf] %v1018_v7  ;;  %1061 = vmatmul.mubr.bf16.vlgmr.msra.gmra.mrb[24].mxu0 %v1018_v7  ;;  %1102 = vmatmul.mubr.bf16.vlgmr.msra.gmra.mrb[24].mxu1 %v1018_v7 }
 0x270   :  { %1149 = vmatpush1.bf16.msra.mxu0 %v2258_v36  ;;  %1190 = vmatpush1.bf16.msra.mxu1 %v2260_v37 }
 0x271   :  { %1150 = vmatprep.subr.bf16.mxu0 %v2264_v38  ;;  %1191 = vmatprep.subr.bf16.mxu1 %v2266_v39 }
 0x272   :  { %1180 = vmatprep.mubr.bf16.mxu0 %v2841_v35  ;;  %1221 = vmatprep.mubr.bf16.mxu1 %v2841_v35 }
 0x274   :  { %1151 = vmatpush1.bf16.msra.mxu0 %v2268_v40  ;;  %1192 = vmatpush1.bf16.msra.mxu1 %v2272_v41 }
 0x275   :  { %1152 = vmatprep.subr.bf16.mxu0 %v2276_v42  ;;  %1193 = vmatprep.subr.bf16.mxu1 %v2278_v43 }
 0x278   :  { %1153 = vmatpush1.bf16.msra.mxu0 %v2285_v45  ;;  %1194 = vmatpush1.bf16.msra.mxu1 %v2287_v46 }
 0x279   :  { %1154 = vmatprep.subr.bf16.mxu0 %v2291_v47  ;;  %1195 = vmatprep.subr.bf16.mxu1 %v2295_v48 }
 0x27c   :  { %1155 = vmatpush1.bf16.msra.mxu0 %v2297_v49  ;;  %1196 = vmatpush1.bf16.msra.mxu1 %v2299_v50 }
 0x27d   :  { %1156 = vmatprep.subr.bf16.mxu0 %v2303_v51  ;;  %1197 = vmatprep.subr.bf16.mxu1 %v2307_v52 }
 0x280   :  { %1157 = vmatpush1.bf16.msra.mxu0 %v2316_v54  ;;  %1198 = vmatpush1.bf16.msra.mxu1 %v2318_v55 }
 0x281   :  { %1158 = vmatprep.subr.bf16.mxu0 %v2322_v56  ;;  %1199 = vmatprep.subr.bf16.mxu1 %v2324_v57 }
 0x284   :  { %1159 = vmatpush1.bf16.msra.mxu0 %v2328_v58  ;;  %1200 = vmatpush1.bf16.msra.mxu1 %v2330_v59 }
 0x285   :  { %1160 = vmatprep.subr.bf16.mxu0 %v2334_v60  ;;  %1201 = vmatprep.subr.bf16.mxu1 %v2336_v61 }
 0x288   :  { %1161 = vmatpush1.bf16.msra.mxu0 %v2345_v63  ;;  %1202 = vmatpush1.bf16.msra.mxu1 %v2347_v1 }
 0x289   :  { %1162 = vmatprep.subr.bf16.mxu0 %v2351_v2  ;;  %1203 = vmatprep.subr.bf16.mxu1 %v2353_v3 }
 0x28c   :  { %1163 = vmatpush1.bf16.msra.mxu0 %v2357_v4  ;;  %1204 = vmatpush1.bf16.msra.mxu1 %v2359_v5 }
 0x28d   :  { %1268 = vmatprep.subr.bf16.mxu0 %v2251_v33  ;;  %1309 = vmatprep.subr.bf16.mxu1 %v2253_v34 }
 0x342   :  { %v1062_v9 = vpop.f32.mrb[24].mxu0  ;;  %v1103_v15 = vpop.f32.mrb[24].mxu1 }
 0x343   :  { %v1110_v8 = vadd.f32 %v1062_v9, %v1024_v13  ;;  %v1112_v11 = vadd.f32 %v1103_v15, %v1026_v14  ;;  %v1064_v31 = vpop.f32.mrb[25].mxu0  ;;  %v1105_v12 = vpop.f32.mrb[25].mxu1 }
 0x344   :  { %v1111_v62 = vadd.f32 %v1064_v31, %v1025_v10  ;;  %v1113_v6 = vadd.f32 %v1105_v12, %v1027_v53  ;;  %v1066_v16 = vpop.f32.mrb[26].mxu0  ;;  %v1107_v17 = vpop.f32.mrb[26].mxu1 }
 0x345   :  { %v1840_v19 = vmul.f32 -1.442695, %v1110_v8  ;;  %v1067_v18 = vpop.f32.mrb[27].mxu0  ;;  %v1108_v20 = vpop.f32.mrb[27].mxu1 }
 0x346   :  { %v1841_v21 = vmul.f32 -1.442695, %v1111_v62  ;;  %v1842_v26 = vmul.f32 -1.442695, %v1113_v6 }
 0x347   :  { %2018 = vpow2.f32 %v1840_v19 }
 0x348   :  { %2020 = vpow2.f32 %v1841_v21 }
 0x349   :  { %2022 = vpow2.f32 %v1842_v26 }
 0x34a   :  { %2024 = vtanh.f32 %v1112_v11 }
 0x351   :  { %v2019_v44 = vpop.eup %2018 }
 0x352   :  { %v2021_v28 = vpop.eup %2020  ;;  %v1117_v25 = vadd.f32 1.0, %v2019_v44 }
 0x353   :  { %v1123_v27 = vadd.f32 1.0, %v2021_v28  ;;  %v2023_v0 = vpop.eup %2022 }
 0x354   :  { %2026 = vrcp.f32 %v1117_v25  ;;  %v2025_v7 = vpop.eup %2024  ;;  %v1130_v15 = vadd.f32 1.0, %v2023_v0 }
 0x355   :  { %2028 = vrcp.f32 %v1123_v27 }
 0x356   :  { %2030 = vrcp.f32 %v1130_v15 }
 0x35e   :  { %v2027_v13 = vpop.eup %2026 }
 0x35f   :  { %v2029_v14 = vpop.eup %2028  ;;  %v1134_v9 = vmul.f32 %v2027_v13, %v2025_v7 }
 0x360   :  { %v1133_v10 = vmul.f32 %v2029_v14, %v2527_v32  ;;  %v2031_v8 = vpop.eup %2030  ;;  %v1147_v32 = vunpack.c.h.bf16 %v2444_v30 }
 0x362   :  { %v2572_v53 = vadd.f32 %v1134_v9, %v1133_v10 }
 0x364   :  { %2032 = vtanh.f32 %v2572_v53 }
 0x36e   :  { %v2033_v31 = vpop.eup %2032 }
 0x36f   :  { %v1137_v12 = vmul.f32 %v2033_v31, %v2031_v8 }
 0x371   :  { %v1138_v11 = vpack.c.bf16 %v1137_v12, %v1137_v12 }
 0x373   :  { %1843 = vst [vmem:[%s2828_s4 + $0x8] sm:$0xf] %v1138_v11  ;;  %1181 = vmatmul.mubr.bf16.vlgmr.msra.gmra.mrb[28].mxu0 %v1138_v11  ;;  %1222 = vmatmul.mubr.bf16.vlgmr.msra.gmra.mrb[28].mxu1 %v1138_v11 }
 0x374   :  { %1269 = vmatpush1.bf16.msra.mxu0 %v2258_v36  ;;  %1310 = vmatpush1.bf16.msra.mxu1 %v2260_v37  ;;  %v1144_v36 = vunpack.c.l.bf16 %v2442_v29  ;;  %v1146_v37 = vunpack.c.l.bf16 %v2444_v30 }
 0x375   :  { %1270 = vmatprep.subr.bf16.mxu0 %v2264_v38  ;;  %1311 = vmatprep.subr.bf16.mxu1 %v2266_v39 }
 0x376   :  { %1300 = vmatprep.mubr.bf16.mxu0 %v2841_v35  ;;  %1341 = vmatprep.mubr.bf16.mxu1 %v2841_v35 }
 0x378   :  { %1271 = vmatpush1.bf16.msra.mxu0 %v2268_v40  ;;  %1312 = vmatpush1.bf16.msra.mxu1 %v2272_v41  ;;  %v1145_v40 = vunpack.c.h.bf16 %v2442_v29 }
 0x379   :  { %1272 = vmatprep.subr.bf16.mxu0 %v2276_v42  ;;  %1313 = vmatprep.subr.bf16.mxu1 %v2278_v43 }
 0x37c   :  { %1273 = vmatpush1.bf16.msra.mxu0 %v2285_v45  ;;  %1314 = vmatpush1.bf16.msra.mxu1 %v2287_v46 }
 0x37d   :  { %1274 = vmatprep.subr.bf16.mxu0 %v2291_v47  ;;  %1315 = vmatprep.subr.bf16.mxu1 %v2295_v48 }
 0x380   :  { %1275 = vmatpush1.bf16.msra.mxu0 %v2297_v49  ;;  %1316 = vmatpush1.bf16.msra.mxu1 %v2299_v50 }
 0x381   :  { %1276 = vmatprep.subr.bf16.mxu0 %v2303_v51  ;;  %1317 = vmatprep.subr.bf16.mxu1 %v2307_v52 }
 0x384   :  { %1277 = vmatpush1.bf16.msra.mxu0 %v2316_v54  ;;  %1318 = vmatpush1.bf16.msra.mxu1 %v2318_v55 }
 0x385   :  { %1278 = vmatprep.subr.bf16.mxu0 %v2322_v56  ;;  %1319 = vmatprep.subr.bf16.mxu1 %v2324_v57 }
 0x388   :  { %1279 = vmatpush1.bf16.msra.mxu0 %v2328_v58  ;;  %1320 = vmatpush1.bf16.msra.mxu1 %v2330_v59 }
 0x389   :  { %1280 = vmatprep.subr.bf16.mxu0 %v2334_v60  ;;  %1321 = vmatprep.subr.bf16.mxu1 %v2336_v61 }
 0x38c   :  { %1281 = vmatpush1.bf16.msra.mxu0 %v2345_v63  ;;  %1322 = vmatpush1.bf16.msra.mxu1 %v2347_v1 }
 0x38d   :  { %1282 = vmatprep.subr.bf16.mxu0 %v2351_v2  ;;  %1323 = vmatprep.subr.bf16.mxu1 %v2353_v3 }
 0x390   :  { %1283 = vmatpush1.bf16.msra.mxu0 %v2357_v4  ;;  %1324 = vmatpush1.bf16.msra.mxu1 %v2359_v5 }
 0x391   :  { %1388 = vmatprep.subr.bf16.mxu0 %v2251_v33  ;;  %1429 = vmatprep.subr.bf16.mxu1 %v2253_v34 }
 0x446   :  { %v1182_v38 = vpop.f32.mrb[28].mxu0  ;;  %v1223_v39 = vpop.f32.mrb[28].mxu1 }
 0x447   :  { %v1230_v62 = vadd.f32 %v1182_v38, %v1144_v36  ;;  %v1232_v6 = vadd.f32 %v1223_v39, %v1146_v37  ;;  %v1184_v16 = vpop.f32.mrb[29].mxu0  ;;  %v1225_v17 = vpop.f32.mrb[29].mxu1  ;;  %v2623_v37 = vld [vmem:[#allocation7] ss:$16 sps:$4 sm:$0xff]   ;;  %v2629_v38 = vld [vmem:[#allocation7 + $0x24] ss:$16 sps:$4 sm:$0xff]  }
 0x448   :  { %v1231_v19 = vadd.f32 %v1184_v16, %v1145_v40  ;;  %v1233_v18 = vadd.f32 %v1225_v17, %v1147_v32  ;;  %v1186_v20 = vpop.f32.mrb[30].mxu0  ;;  %v1227_v33 = vpop.f32.mrb[30].mxu1  ;;  %v2632_v39 = vld [vmem:[#allocation7 + $0x2c] ss:$16 sps:$4 sm:$0xff]   ;;  %v2637_v40 = vld [vmem:[#allocation7 + $0x20] ss:$16 sps:$4 sm:$0xff]  }
 0x449   :  { %v1844_v21 = vmul.f32 -1.442695, %v1230_v62  ;;  %v1187_v34 = vpop.f32.mrb[31].mxu0  ;;  %v1228_v26 = vpop.f32.mrb[31].mxu1 }
 0x44a   :  { %v1845_v44 = vmul.f32 -1.442695, %v1231_v19  ;;  %v1846_v28 = vmul.f32 -1.442695, %v1233_v18  ;;  %v2689_v34 = vld [vmem:[#allocation7 + $0x28] ss:$16 sps:$4 sm:$0xff]  }
 0x44b   :  { %2034 = vpow2.f32 %v1844_v21  ;;  %v2692_v26 = vld [vmem:[#allocation7 + $0x44] ss:$16 sps:$4 sm:$0xff]  }
 0x44c   :  { %2036 = vpow2.f32 %v1845_v44  ;;  %v2695_v44 = vld [vmem:[#allocation7 + $0x4c] ss:$16 sps:$4 sm:$0xff]  }
 0x44d   :  { %2038 = vpow2.f32 %v1846_v28  ;;  %v2698_v28 = vld [vmem:[#allocation7 + $0x40] ss:$16 sps:$4 sm:$0xff]  }
 0x44e   :  { %2040 = vtanh.f32 %v1232_v6 }
 0x455   :  { %v2035_v25 = vpop.eup %2034 }
 0x456   :  { %v2037_v27 = vpop.eup %2036  ;;  %v1237_v29 = vadd.f32 1.0, %v2035_v25  ;;  %v2701_v25 = vld [vmem:[#allocation7 + $0x48] ss:$16 sps:$4 sm:$0xff]  }
 0x457   :  { %v1243_v30 = vadd.f32 1.0, %v2037_v27  ;;  %v2039_v0 = vpop.eup %2038  ;;  %v2704_v27 = vld [vmem:[#allocation7 + $0x64] ss:$16 sps:$4 sm:$0xff]  }
 0x458   :  { %2042 = vrcp.f32 %v1237_v29  ;;  %v2041_v7 = vpop.eup %2040  ;;  %v1250_v15 = vadd.f32 1.0, %v2039_v0  ;;  %v2707_v29 = vld [vmem:[#allocation7 + $0x6c] ss:$16 sps:$4 sm:$0xff]   ;;  %v2713_v0 = vld [vmem:[#allocation7 + $0x68] ss:$16 sps:$4 sm:$0xff]  }
 0x459   :  { %2044 = vrcp.f32 %v1243_v30  ;;  %v2710_v30 = vld [vmem:[#allocation7 + $0x60] ss:$16 sps:$4 sm:$0xff]  }
 0x45a   :  { %2046 = vrcp.f32 %v1250_v15  ;;  %v2728_v15 = vld [vmem:[#allocation7 + $0xa4] ss:$16 sps:$4 sm:$0xff]  }
 0x462   :  { %v2043_v13 = vpop.eup %2042 }
 0x463   :  { %v2045_v14 = vpop.eup %2044  ;;  %v1254_v9 = vmul.f32 %v2043_v13, %v2041_v7  ;;  %v2716_v7 = vld [vmem:[#allocation7 + $0x84] ss:$16 sps:$4 sm:$0xff]   ;;  %v2719_v13 = vld [vmem:[#allocation7 + $0x8c] ss:$16 sps:$4 sm:$0xff]  }
 0x464   :  { %v1253_v10 = vmul.f32 %v2045_v14, %v2572_v53  ;;  %v2047_v31 = vpop.eup %2046  ;;  %v2626_v53 = vld [vmem:[#allocation7 + $0x8] ss:$16 sps:$4 sm:$0xff]   ;;  %v2722_v14 = vld [vmem:[#allocation7 + $0x80] ss:$16 sps:$4 sm:$0xff]  }
 0x466   :  { %v2617_v8 = vadd.f32 %v1254_v9, %v1253_v10  ;;  %v2725_v9 = vld [vmem:[#allocation7 + $0x88] ss:$16 sps:$4 sm:$0xff]   ;;  %v2731_v10 = vld [vmem:[#allocation7 + $0xac] ss:$16 sps:$4 sm:$0xff]  }
 0x468   :  { %2048 = vtanh.f32 %v2617_v8 }
 0x472   :  { %v2049_v12 = vpop.eup %2048 }
 0x473   :  { %v1257_v11 = vmul.f32 %v2049_v12, %v2047_v31  ;;  %v2737_v31 = vld [vmem:[#allocation7 + $0xa8] ss:$16 sps:$4 sm:$0xff]   ;;  %v2740_v12 = vld [vmem:[#allocation7 + $0xc4] ss:$16 sps:$4 sm:$0xff]  }
 0x475   :  { %v1258_v36 = vpack.c.bf16 %v1257_v11, %v1257_v11  ;;  %v2743_v11 = vld [vmem:[#allocation7 + $0xcc] ss:$16 sps:$4 sm:$0xff]  }
 0x477   :  { %1847 = vst [vmem:[%s2828_s4 + $0xc] sm:$0xf] %v1258_v36  ;;  %1301 = vmatmul.mubr.bf16.vlgmr.msra.gmra.mrb[32].mxu0 %v1258_v36  ;;  %1342 = vmatmul.mubr.bf16.vlgmr.msra.gmra.mrb[32].mxu1 %v1258_v36  ;;  %v2746_v36 = vld [vmem:[#allocation7 + $0xc0] ss:$16 sps:$4 sm:$0xff]  }
 0x478   :  { %1389 = vmatpush1.bf16.msra.mxu0 %v2623_v37  ;;  %1430 = vmatpush1.bf16.msra.mxu1 %v2626_v53 }
 0x479   :  { %1390 = vmatprep.subr.bf16.mxu0 %v2629_v38  ;;  %1431 = vmatprep.subr.bf16.mxu1 %v2632_v39 }
 0x47a   :  { %1420 = vmatprep.mubr.bf16.mxu0 %v2841_v35  ;;  %1461 = vmatprep.mubr.bf16.mxu1 %v2841_v35 }
 0x47c   :  { %1391 = vmatpush1.bf16.msra.mxu0 %v2637_v40  ;;  %1432 = vmatpush1.bf16.msra.mxu1 %v2272_v41  ;;  %v2665_v41 = vld [vmem:[#allocation7 + $0x4] ss:$16 sps:$4 sm:$0xff]  }
 0x47d   :  { %1392 = vmatprep.subr.bf16.mxu0 %v2276_v42  ;;  %1433 = vmatprep.subr.bf16.mxu1 %v2278_v43  ;;  %v2668_v42 = vld [vmem:[#allocation7 + $0xc] ss:$16 sps:$4 sm:$0xff]   ;;  %v1264_v43 = vunpack.c.l.bf16 %v2452_v22 }
 0x480   :  { %1393 = vmatpush1.bf16.msra.mxu0 %v2285_v45  ;;  %1434 = vmatpush1.bf16.msra.mxu1 %v2287_v46  ;;  %v1266_v45 = vunpack.c.l.bf16 %v2455_v24 }
 0x481   :  { %1394 = vmatprep.subr.bf16.mxu0 %v2291_v47  ;;  %1435 = vmatprep.subr.bf16.mxu1 %v2295_v48  ;;  %v1265_v48 = vunpack.c.h.bf16 %v2452_v22 }
 0x484   :  { %1395 = vmatpush1.bf16.msra.mxu0 %v2297_v49  ;;  %1436 = vmatpush1.bf16.msra.mxu1 %v2299_v50  ;;  %v1267_v49 = vunpack.c.h.bf16 %v2455_v24 }
 0x485   :  { %1396 = vmatprep.subr.bf16.mxu0 %v2303_v51  ;;  %1437 = vmatprep.subr.bf16.mxu1 %v2307_v52 }
 0x488   :  { %1397 = vmatpush1.bf16.msra.mxu0 %v2316_v54  ;;  %1438 = vmatpush1.bf16.msra.mxu1 %v2318_v55 }
 0x489   :  { %1398 = vmatprep.subr.bf16.mxu0 %v2322_v56  ;;  %1439 = vmatprep.subr.bf16.mxu1 %v2324_v57 }
 0x48c   :  { %1399 = vmatpush1.bf16.msra.mxu0 %v2328_v58  ;;  %1440 = vmatpush1.bf16.msra.mxu1 %v2330_v59 }
 0x48d   :  { %1400 = vmatprep.subr.bf16.mxu0 %v2334_v60  ;;  %1441 = vmatprep.subr.bf16.mxu1 %v2336_v61 }
 0x490   :  { %1401 = vmatpush1.bf16.msra.mxu0 %v2345_v63  ;;  %1442 = vmatpush1.bf16.msra.mxu1 %v2347_v1 }
 0x491   :  { %1402 = vmatprep.subr.bf16.mxu0 %v2351_v2  ;;  %1443 = vmatprep.subr.bf16.mxu1 %v2353_v3 }
 0x494   :  { %1403 = vmatpush1.bf16.msra.mxu0 %v2357_v4  ;;  %1444 = vmatpush1.bf16.msra.mxu1 %v2359_v5 }
 0x495   :  { %1508 = vmatprep.subr.bf16.mxu0 %v2665_v41  ;;  %1549 = vmatprep.subr.bf16.mxu1 %v2668_v42 }
 0x54a   :  { %v1302_v46 = vpop.f32.mrb[32].mxu0  ;;  %v1343_v47 = vpop.f32.mrb[32].mxu1 }
 0x54b   :  { %v1350_v50 = vadd.f32 %v1302_v46, %v1264_v43  ;;  %v1352_v51 = vadd.f32 %v1343_v47, %v1266_v45  ;;  %v1304_v52 = vpop.f32.mrb[33].mxu0  ;;  %v1345_v54 = vpop.f32.mrb[33].mxu1  ;;  %v2749_v43 = vld [vmem:[#allocation7 + $0xc8] ss:$16 sps:$4 sm:$0xff]   ;;  %v2752_v45 = vld [vmem:[#allocation7 + $0xe4] ss:$16 sps:$4 sm:$0xff]  }
 0x54c   :  { %v1351_v55 = vadd.f32 %v1304_v52, %v1265_v48  ;;  %v1353_v56 = vadd.f32 %v1345_v54, %v1267_v49  ;;  %v1306_v57 = vpop.f32.mrb[34].mxu0  ;;  %v1347_v58 = vpop.f32.mrb[34].mxu1  ;;  %v2755_v46 = vld [vmem:[#allocation7 + $0xec] ss:$16 sps:$4 sm:$0xff]   ;;  %v2758_v47 = vld [vmem:[#allocation7 + $0xe0] ss:$16 sps:$4 sm:$0xff]  }
 0x54d   :  { %v1848_v59 = vmul.f32 -1.442695, %v1350_v50  ;;  %v1307_v60 = vpop.f32.mrb[35].mxu0  ;;  %v1348_v61 = vpop.f32.mrb[35].mxu1  ;;  %v2761_v48 = vld [vmem:[#allocation7 + $0xe8] ss:$16 sps:$4 sm:$0xff]  }
 0x54e   :  { %v1849_v63 = vmul.f32 -1.442695, %v1351_v55  ;;  %v1850_v1 = vmul.f32 -1.442695, %v1353_v56  ;;  %v2842_v49 = vld [vmem:[#allocation11_spill] sm:$0xff] }
 0x54f   :  { %2050 = vpow2.f32 %v1848_v59  ;;  %v1384_v50 = vunpack.c.l.bf16 %v2842_v49  ;;  %v1385_v56 = vunpack.c.h.bf16 %v2842_v49 }
 0x550   :  { %2052 = vpow2.f32 %v1849_v63 }
 0x551   :  { %2054 = vpow2.f32 %v1850_v1 }
 0x552   :  { %2056 = vtanh.f32 %v1352_v51  ;;  %v2843_v51 = vld [vmem:[#allocation12_spill] sm:$0xff] }
 0x553   :  { %v1386_v52 = vunpack.c.l.bf16 %v2843_v51  ;;  %v1387_v57 = vunpack.c.h.bf16 %v2843_v51 }
 0x559   :  { %v2051_v2 = vpop.eup %2050 }
 0x55a   :  { %v2053_v3 = vpop.eup %2052  ;;  %v1357_v4 = vadd.f32 1.0, %v2051_v2 }
 0x55b   :  { %v1363_v5 = vadd.f32 1.0, %v2053_v3  ;;  %v2055_v22 = vpop.eup %2054 }
 0x55c   :  { %2058 = vrcp.f32 %v1357_v4  ;;  %v2057_v24 = vpop.eup %2056  ;;  %v1370_v16 = vadd.f32 1.0, %v2055_v22 }
 0x55d   :  { %2060 = vrcp.f32 %v1363_v5 }
 0x55e   :  { %2062 = vrcp.f32 %v1370_v16 }
 0x566   :  { %v2059_v32 = vpop.eup %2058 }
 0x567   :  { %v2061_v62 = vpop.eup %2060  ;;  %v1374_v6 = vmul.f32 %v2059_v32, %v2057_v24 }
 0x568   :  { %v1373_v17 = vmul.f32 %v2061_v62, %v2617_v8  ;;  %v2063_v18 = vpop.eup %2062  ;;  %v2734_v8 = vld [vmem:[#allocation7 + $0xa0] ss:$16 sps:$4 sm:$0xff]  }
 0x56a   :  { %v2676_v19 = vadd.f32 %v1374_v6, %v1373_v17 }
 0x56c   :  { %2064 = vtanh.f32 %v2676_v19 }
 0x576   :  { %v2065_v20 = vpop.eup %2064 }
 0x577   :  { %v1377_v33 = vmul.f32 %v2065_v20, %v2063_v18 }
 0x579   :  { %v1378_v21 = vpack.c.bf16 %v1377_v33, %v1377_v33 }
 0x57b   :  { %1851 = vst [vmem:[%s2828_s4 + $0x10] sm:$0xf] %v1378_v21  ;;  %1421 = vmatmul.mubr.bf16.vlgmr.msra.gmra.mrb[36].mxu0 %v1378_v21  ;;  %1462 = vmatmul.mubr.bf16.vlgmr.msra.gmra.mrb[36].mxu1 %v1378_v21 }
 0x57c   :  { %1509 = vmatpush1.bf16.msra.mxu0 %v2623_v37  ;;  %1550 = vmatpush1.bf16.msra.mxu1 %v2626_v53 }
 0x57d   :  { %1510 = vmatprep.subr.bf16.mxu0 %v2629_v38  ;;  %1551 = vmatprep.subr.bf16.mxu1 %v2632_v39 }
 0x57e   :  { %1540 = vmatprep.mubr.bf16.mxu0 %v2841_v35  ;;  %1581 = vmatprep.mubr.bf16.mxu1 %v2841_v35 }
 0x580   :  { %1511 = vmatpush1.bf16.msra.mxu0 %v2637_v40  ;;  %1552 = vmatpush1.bf16.msra.mxu1 %v2689_v34 }
 0x581   :  { %1512 = vmatprep.subr.bf16.mxu0 %v2692_v26  ;;  %1553 = vmatprep.subr.bf16.mxu1 %v2695_v44 }
 0x584   :  { %1513 = vmatpush1.bf16.msra.mxu0 %v2698_v28  ;;  %1554 = vmatpush1.bf16.msra.mxu1 %v2701_v25 }
 0x585   :  { %1514 = vmatprep.subr.bf16.mxu0 %v2704_v27  ;;  %1555 = vmatprep.subr.bf16.mxu1 %v2707_v29 }
 0x588   :  { %1515 = vmatpush1.bf16.msra.mxu0 %v2710_v30  ;;  %1556 = vmatpush1.bf16.msra.mxu1 %v2713_v0 }
 0x589   :  { %1516 = vmatprep.subr.bf16.mxu0 %v2716_v7  ;;  %1557 = vmatprep.subr.bf16.mxu1 %v2719_v13 }
 0x58c   :  { %1517 = vmatpush1.bf16.msra.mxu0 %v2722_v14  ;;  %1558 = vmatpush1.bf16.msra.mxu1 %v2725_v9 }
 0x58d   :  { %1518 = vmatprep.subr.bf16.mxu0 %v2728_v15  ;;  %1559 = vmatprep.subr.bf16.mxu1 %v2731_v10 }
 0x590   :  { %1519 = vmatpush1.bf16.msra.mxu0 %v2734_v8  ;;  %1560 = vmatpush1.bf16.msra.mxu1 %v2737_v31 }
 0x591   :  { %1520 = vmatprep.subr.bf16.mxu0 %v2740_v12  ;;  %1561 = vmatprep.subr.bf16.mxu1 %v2743_v11 }
 0x594   :  { %1521 = vmatpush1.bf16.msra.mxu0 %v2746_v36  ;;  %1562 = vmatpush1.bf16.msra.mxu1 %v2749_v43 }
 0x595   :  { %1522 = vmatprep.subr.bf16.mxu0 %v2752_v45  ;;  %1563 = vmatprep.subr.bf16.mxu1 %v2755_v46 }
 0x598   :  { %1523 = vmatpush1.bf16.msra.mxu0 %v2758_v47  ;;  %1564 = vmatpush1.bf16.msra.mxu1 %v2761_v48 }
 0x599   :  { %1628 = vmatprep.subr.bf16.mxu0 %v2665_v41  ;;  %1669 = vmatprep.subr.bf16.mxu1 %v2668_v42 }
 0x64e   :  { %v1422_v54 = vpop.f32.mrb[36].mxu0  ;;  %v1463_v55 = vpop.f32.mrb[36].mxu1 }
 0x64f   :  { %v1470_v58 = vadd.f32 %v1422_v54, %v1384_v50  ;;  %v1472_v59 = vadd.f32 %v1463_v55, %v1386_v52  ;;  %v1424_v60 = vpop.f32.mrb[37].mxu0  ;;  %v1465_v61 = vpop.f32.mrb[37].mxu1 }
 0x650   :  { %v1471_v63 = vadd.f32 %v1424_v60, %v1385_v56  ;;  %v1473_v1 = vadd.f32 %v1465_v61, %v1387_v57  ;;  %v1426_v2 = vpop.f32.mrb[38].mxu0  ;;  %v1467_v41 = vpop.f32.mrb[38].mxu1  ;;  %v2846_v61 = vld [vmem:[#allocation15_spill] sm:$0xff] }
 0x651   :  { %v1852_v3 = vmul.f32 -1.442695, %v1470_v58  ;;  %v1427_v42 = vpop.f32.mrb[39].mxu0  ;;  %v1468_v4 = vpop.f32.mrb[39].mxu1 }
 0x652   :  { %v1853_v5 = vmul.f32 -1.442695, %v1471_v63  ;;  %v1854_v22 = vmul.f32 -1.442695, %v1473_v1  ;;  %v1626_v63 = vunpack.c.l.bf16 %v2846_v61 }
 0x653   :  { %2066 = vpow2.f32 %v1852_v3  ;;  %v1627_v3 = vunpack.c.h.bf16 %v2846_v61 }
 0x654   :  { %2068 = vpow2.f32 %v1853_v5 }
 0x655   :  { %2070 = vpow2.f32 %v1854_v22 }
 0x656   :  { %2072 = vtanh.f32 %v1472_v59  ;;  %v2845_v59 = vld [vmem:[#allocation14_spill] sm:$0xff] }
 0x657   :  { %v1624_v60 = vunpack.c.l.bf16 %v2845_v59  ;;  %v1625_v41 = vunpack.c.h.bf16 %v2845_v59 }
 0x65d   :  { %v2067_v24 = vpop.eup %2066 }
 0x65e   :  { %v2069_v32 = vpop.eup %2068  ;;  %v1477_v62 = vadd.f32 1.0, %v2067_v24 }
 0x65f   :  { %v1483_v6 = vadd.f32 1.0, %v2069_v32  ;;  %v2071_v16 = vpop.eup %2070 }
 0x660   :  { %2074 = vrcp.f32 %v1477_v62  ;;  %v2073_v17 = vpop.eup %2072  ;;  %v1490_v21 = vadd.f32 1.0, %v2071_v16 }
 0x661   :  { %2076 = vrcp.f32 %v1483_v6 }
 0x662   :  { %2078 = vrcp.f32 %v1490_v21 }
 0x66a   :  { %v2075_v18 = vpop.eup %2074 }
 0x66b   :  { %v2077_v20 = vpop.eup %2076  ;;  %v1494_v33 = vmul.f32 %v2075_v18, %v2073_v17 }
 0x66c   :  { %v1493_v49 = vmul.f32 %v2077_v20, %v2676_v19  ;;  %v2079_v51 = vpop.eup %2078 }
 0x66e   :  { %v2771_v50 = vadd.f32 %v1494_v33, %v1493_v49 }
 0x670   :  { %2080 = vtanh.f32 %v2771_v50 }
 0x67a   :  { %v2081_v52 = vpop.eup %2080 }
 0x67b   :  { %v1497_v54 = vmul.f32 %v2081_v52, %v2079_v51 }
 0x67d   :  { %v1498_v55 = vpack.c.bf16 %v1497_v54, %v1497_v54 }
 0x67f   :  { %1855 = vst [vmem:[%s2828_s4 + $0x14] sm:$0xf] %v1498_v55  ;;  %1541 = vmatmul.mubr.bf16.vlgmr.msra.gmra.mrb[40].mxu0 %v1498_v55  ;;  %1582 = vmatmul.mubr.bf16.vlgmr.msra.gmra.mrb[40].mxu1 %v1498_v55 }
 0x680   :  { %1629 = vmatpush1.bf16.msra.mxu0 %v2623_v37  ;;  %1670 = vmatpush1.bf16.msra.mxu1 %v2626_v53  ;;  %v2844_v37 = vld [vmem:[#allocation13_spill] sm:$0xff] }
 0x681   :  { %1630 = vmatprep.subr.bf16.mxu0 %v2629_v38  ;;  %1671 = vmatprep.subr.bf16.mxu1 %v2632_v39  ;;  %v1506_v53 = vunpack.c.l.bf16 %v2844_v37  ;;  %v1507_v19 = vunpack.c.h.bf16 %v2844_v37 }
 0x682   :  { %1660 = vmatprep.mubr.bf16.mxu0 %v2841_v35  ;;  %1701 = vmatprep.mubr.bf16.mxu1 %v2841_v35  ;;  %v1504_v35 = vunpack.c.l.bf16 %v2468_v23 }
 0x684   :  { %1631 = vmatpush1.bf16.msra.mxu0 %v2637_v40  ;;  %1672 = vmatpush1.bf16.msra.mxu1 %v2689_v34  ;;  %v1505_v40 = vunpack.c.h.bf16 %v2468_v23 }
 0x685   :  { %1632 = vmatprep.subr.bf16.mxu0 %v2692_v26  ;;  %1673 = vmatprep.subr.bf16.mxu1 %v2695_v44 }
 0x688   :  { %1633 = vmatpush1.bf16.msra.mxu0 %v2698_v28  ;;  %1674 = vmatpush1.bf16.msra.mxu1 %v2701_v25 }
 0x689   :  { %1634 = vmatprep.subr.bf16.mxu0 %v2704_v27  ;;  %1675 = vmatprep.subr.bf16.mxu1 %v2707_v29 }
 0x68c   :  { %1635 = vmatpush1.bf16.msra.mxu0 %v2710_v30  ;;  %1676 = vmatpush1.bf16.msra.mxu1 %v2713_v0 }
 0x68d   :  { %1636 = vmatprep.subr.bf16.mxu0 %v2716_v7  ;;  %1677 = vmatprep.subr.bf16.mxu1 %v2719_v13 }
 0x690   :  { %1637 = vmatpush1.bf16.msra.mxu0 %v2722_v14  ;;  %1678 = vmatpush1.bf16.msra.mxu1 %v2725_v9 }
 0x691   :  { %1638 = vmatprep.subr.bf16.mxu0 %v2728_v15  ;;  %1679 = vmatprep.subr.bf16.mxu1 %v2731_v10 }
 0x694   :  { %1639 = vmatpush1.bf16.msra.mxu0 %v2734_v8  ;;  %1680 = vmatpush1.bf16.msra.mxu1 %v2737_v31 }
 0x695   :  { %1640 = vmatprep.subr.bf16.mxu0 %v2740_v12  ;;  %1681 = vmatprep.subr.bf16.mxu1 %v2743_v11 }
 0x698   :  { %1641 = vmatpush1.bf16.msra.mxu0 %v2746_v36  ;;  %1682 = vmatpush1.bf16.msra.mxu1 %v2749_v43 }
 0x699   :  { %1642 = vmatprep.subr.bf16.mxu0 %v2752_v45  ;;  %1683 = vmatprep.subr.bf16.mxu1 %v2755_v46 }
 0x69c   :  { %1643 = vmatpush1.bf16.msra.mxu0 %v2758_v47  ;;  %1684 = vmatpush1.bf16.msra.mxu1 %v2761_v48 }
 0x752   :  { %v1542_v38 = vpop.f32.mrb[40].mxu0  ;;  %v1583_v39 = vpop.f32.mrb[40].mxu1 }
 0x753   :  { %v1590_v34 = vadd.f32 %v1542_v38, %v1504_v35  ;;  %v1592_v26 = vadd.f32 %v1583_v39, %v1506_v53  ;;  %v1544_v44 = vpop.f32.mrb[41].mxu0  ;;  %v1585_v28 = vpop.f32.mrb[41].mxu1 }
 0x754   :  { %v1591_v25 = vadd.f32 %v1544_v44, %v1505_v40  ;;  %v1593_v27 = vadd.f32 %v1585_v28, %v1507_v19  ;;  %v1546_v29 = vpop.f32.mrb[42].mxu0  ;;  %v1587_v30 = vpop.f32.mrb[42].mxu1 }
 0x755   :  { %v1856_v0 = vmul.f32 -1.442695, %v1590_v34  ;;  %v1547_v7 = vpop.f32.mrb[43].mxu0  ;;  %v1588_v13 = vpop.f32.mrb[43].mxu1 }
 0x756   :  { %v1857_v14 = vmul.f32 -1.442695, %v1591_v25  ;;  %v1858_v9 = vmul.f32 -1.442695, %v1593_v27 }
 0x757   :  { %2082 = vpow2.f32 %v1856_v0 }
 0x758   :  { %2084 = vpow2.f32 %v1857_v14 }
 0x759   :  { %2086 = vpow2.f32 %v1858_v9 }
 0x75a   :  { %2088 = vtanh.f32 %v1592_v26 }
 0x761   :  { %v2083_v15 = vpop.eup %2082 }
 0x762   :  { %v2085_v10 = vpop.eup %2084  ;;  %v1597_v23 = vadd.f32 1.0, %v2083_v15 }
 0x763   :  { %v1603_v8 = vadd.f32 1.0, %v2085_v10  ;;  %v2087_v31 = vpop.eup %2086 }
 0x764   :  { %2090 = vrcp.f32 %v1597_v23  ;;  %v2089_v12 = vpop.eup %2088  ;;  %v1610_v45 = vadd.f32 1.0, %v2087_v31 }
 0x765   :  { %2092 = vrcp.f32 %v1603_v8 }
 0x766   :  { %2094 = vrcp.f32 %v1610_v45 }
 0x76e   :  { %v2091_v11 = vpop.eup %2090 }
 0x76f   :  { %v2093_v36 = vpop.eup %2092  ;;  %v1614_v43 = vmul.f32 %v2091_v11, %v2089_v12 }
 0x770   :  { %v1613_v46 = vmul.f32 %v2093_v36, %v2771_v50  ;;  %v2095_v48 = vpop.eup %2094 }
 0x772   :  { %v1615_v47 = vadd.f32 %v1614_v43, %v1613_v46 }
 0x774   :  { %2096 = vtanh.f32 %v1615_v47 }
 0x77e   :  { %v2097_v56 = vpop.eup %2096 }
 0x77f   :  { %v1617_v57 = vmul.f32 %v2097_v56, %v2095_v48 }
 0x781   :  { %v1618_v58 = vpack.c.bf16 %v1617_v57, %v1617_v57 }
 0x783   :  { %1859 = vst [vmem:[%s2828_s4 + $0x18] sm:$0xf] %v1618_v58  ;;  %1661 = vmatmul.mubr.bf16.vlgmr.msra.gmra.mrb[44].mxu0 %v1618_v58  ;;  %1702 = vmatmul.mubr.bf16.vlgmr.msra.gmra.mrb[44].mxu1 %v1618_v58 }
 0x856   :  { %v1662_v1 = vpop.f32.mrb[44].mxu0  ;;  %v1703_v2 = vpop.f32.mrb[44].mxu1 }
 0x857   :  { %v1710_v42 = vadd.f32 %v1662_v1, %v1624_v60  ;;  %v1712_v4 = vadd.f32 %v1703_v2, %v1626_v63  ;;  %v1664_v5 = vpop.f32.mrb[45].mxu0  ;;  %v1705_v22 = vpop.f32.mrb[45].mxu1 }
 0x858   :  { %v1711_v24 = vadd.f32 %v1664_v5, %v1625_v41  ;;  %v1713_v32 = vadd.f32 %v1705_v22, %v1627_v3  ;;  %v1666_v62 = vpop.f32.mrb[46].mxu0  ;;  %v1707_v6 = vpop.f32.mrb[46].mxu1 }
 0x859   :  { %v1860_v16 = vmul.f32 -1.442695, %v1710_v42  ;;  %v1667_v17 = vpop.f32.mrb[47].mxu0  ;;  %v1708_v18 = vpop.f32.mrb[47].mxu1 }
 0x85a   :  { %v1861_v20 = vmul.f32 -1.442695, %v1711_v24  ;;  %v1862_v33 = vmul.f32 -1.442695, %v1713_v32 }
 0x85b   :  { %2098 = vpow2.f32 %v1860_v16 }
 0x85c   :  { %2100 = vpow2.f32 %v1861_v20 }
 0x85d   :  { %2102 = vpow2.f32 %v1862_v33 }
 0x85e   :  { %2104 = vtanh.f32 %v1712_v4 }
 0x865   :  { %v2099_v21 = vpop.eup %2098 }
 0x866   :  { %v2101_v49 = vpop.eup %2100  ;;  %v1717_v50 = vadd.f32 1.0, %v2099_v21 }
 0x867   :  { %v1723_v51 = vadd.f32 1.0, %v2101_v49  ;;  %v2103_v52 = vpop.eup %2102 }
 0x868   :  { %2106 = vrcp.f32 %v1717_v50  ;;  %v2105_v54 = vpop.eup %2104  ;;  %v1730_v53 = vadd.f32 1.0, %v2103_v52 }
 0x869   :  { %2108 = vrcp.f32 %v1723_v51 }
 0x86a   :  { %2110 = vrcp.f32 %v1730_v53 }
 0x872   :  { %v2107_v55 = vpop.eup %2106 }
 0x873   :  { %v2109_v35 = vpop.eup %2108  ;;  %v1734_v37 = vmul.f32 %v2107_v55, %v2105_v54 }
 0x874   :  { %v1733_v38 = vmul.f32 %v2109_v35, %v1615_v47  ;;  %v2111_v40 = vpop.eup %2110 }
 0x876   :  { %v1735_v39 = vadd.f32 %v1734_v37, %v1733_v38 }
 0x878   :  { %2112 = vtanh.f32 %v1735_v39 }
 0x882   :  { %v2113_v19 = vpop.eup %2112 }
 0x883   :  { %v1737_v34 = vmul.f32 %v2113_v19, %v2111_v40 }
 0x885   :  { %v1738_v26 = vpack.c.bf16 %v1737_v34, %v1737_v34 }
 0x887   :  { %1863 = vst [vmem:[%s2828_s4 + $0x1c] sm:$0xf] %v1738_v26 }
 0x888   :  { %1747 = vsyncpa [#allocation6], 1 }
 0x889   :  { %1748 = vsyncpa [#allocation8], 1 }

// kernel: lstm_model_forward.3
= control target key start
LH: loop header
LB: loop body
LE: loop exit
PB: predicated region body
PF: predicated region fallthrough
CT: control target
= control target key end

     0   :  { %v3179_v1 = vmov 0   ;;  %vm2263_vm0 = vmmov 0   ;;  %s3172_s1 = inlined_call_operand.vmem [shape: bf16[128,512], index: 1, kind: input, shape index: {}]   ;;  %s3173_s0 = inlined_call_operand.vmem [shape: bf16[8,8,128], index: 0, kind: input, shape index: {}]   ;;  %s3174_s2 = inlined_call_operand.vmem [shape: bf16[128,512], index: 2, kind: input, shape index: {}]   ;;  %s3175_s3 = inlined_call_operand.vmem [shape: f32[1,512], index: 3, kind: input, shape index: {}]   ;;  %s3176_s4 = inlined_call_operand.vmem [shape: bf16[128,128], index: 4, kind: input, shape index: {}]   ;;  %s3177_s5 = inlined_call_operand.vmem [shape: f32[1,128], index: 5, kind: input, shape index: {}]   ;;  %s3178_s6 = inlined_call_operand.vmem [shape: f32[8,128], index: 6, kind: output, shape index: {}]  }
   0x1   :  { %v1992_v0 = vld [vmem:[%s3172_s1 + $0x4] ss:$16 sps:$4 sm:$0xff]   ;;  %308 = vmatprep.mubr.bf16.mxu0 %v3179_v1  ;;  %381 = vmatprep.mubr.bf16.mxu1 %v3179_v1  ;;  %v1994_v2 = vld [vmem:[%s3172_s1 + $0xc] ss:$16 sps:$4 sm:$0xff]   ;;  %v1996_v3 = vld [vmem:[%s3172_s1] ss:$16 sps:$4 sm:$0xff]  }
   0x2   :  { %276 = vmatprep.subr.bf16.mxu0 %v1992_v0  ;;  %v1997_v4 = vld [vmem:[%s3172_s1 + $0x8] ss:$16 sps:$4 sm:$0xff]   ;;  %349 = vmatprep.subr.bf16.mxu1 %v1994_v2  ;;  %v1998_v5 = vld [vmem:[%s3172_s1 + $0x24] ss:$16 sps:$4 sm:$0xff]   ;;  %v2000_v6 = vld [vmem:[%s3172_s1 + $0x2c] ss:$16 sps:$4 sm:$0xff]  }
   0x3   :  { %277 = vmatpush1.bf16.msra.mxu0 %v1996_v3  ;;  %350 = vmatpush1.bf16.msra.mxu1 %v1997_v4  ;;  %v2002_v7 = vld [vmem:[%s3172_s1 + $0x20] ss:$16 sps:$4 sm:$0xff]   ;;  %v2003_v8 = vld [vmem:[%s3172_s1 + $0x28] ss:$16 sps:$4 sm:$0xff]   ;;  %v2004_v9 = vld [vmem:[%s3172_s1 + $0x44] ss:$16 sps:$4 sm:$0xff]  }
   0x4   :  { %278 = vmatprep.subr.bf16.mxu0 %v1998_v5  ;;  %351 = vmatprep.subr.bf16.mxu1 %v2000_v6  ;;  %v2006_v10 = vld [vmem:[%s3172_s1 + $0x4c] ss:$16 sps:$4 sm:$0xff]   ;;  %v2008_v11 = vld [vmem:[%s3172_s1 + $0x40] ss:$16 sps:$4 sm:$0xff]   ;;  %v2009_v12 = vld [vmem:[%s3172_s1 + $0x48] ss:$16 sps:$4 sm:$0xff]  }
   0x5   :  { %v2010_v13 = vld [vmem:[%s3172_s1 + $0x64] ss:$16 sps:$4 sm:$0xff]   ;;  %v2012_v14 = vld [vmem:[%s3172_s1 + $0x6c] ss:$16 sps:$4 sm:$0xff]   ;;  %v2014_v15 = vld [vmem:[%s3172_s1 + $0x60] ss:$16 sps:$4 sm:$0xff]  }
   0x6   :  { %v2015_v16 = vld [vmem:[%s3172_s1 + $0x68] ss:$16 sps:$4 sm:$0xff]   ;;  %v2016_v17 = vld [vmem:[%s3172_s1 + $0x84] ss:$16 sps:$4 sm:$0xff]   ;;  %v2018_v18 = vld [vmem:[%s3172_s1 + $0x8c] ss:$16 sps:$4 sm:$0xff]  }
   0x7   :  { %279 = vmatpush1.bf16.msra.mxu0 %v2002_v7  ;;  %352 = vmatpush1.bf16.msra.mxu1 %v2003_v8  ;;  %v2020_v19 = vld [vmem:[%s3172_s1 + $0x80] ss:$16 sps:$4 sm:$0xff]   ;;  %v2021_v20 = vld [vmem:[%s3172_s1 + $0x88] ss:$16 sps:$4 sm:$0xff]   ;;  %v2022_v21 = vld [vmem:[%s3172_s1 + $0xa4] ss:$16 sps:$4 sm:$0xff]   ;;  %v72_v7 = vlaneseq }
   0x8   :  { %280 = vmatprep.subr.bf16.mxu0 %v2004_v9  ;;  %353 = vmatprep.subr.bf16.mxu1 %v2006_v10  ;;  %v2024_v22 = vld [vmem:[%s3172_s1 + $0xac] ss:$16 sps:$4 sm:$0xff]   ;;  %v2026_v23 = vld [vmem:[%s3172_s1 + $0xa0] ss:$16 sps:$4 sm:$0xff]   ;;  %v2027_v24 = vld [vmem:[%s3172_s1 + $0xa8] ss:$16 sps:$4 sm:$0xff]  }
   0x9   :  { %v2028_v25 = vld [vmem:[%s3172_s1 + $0xc4] ss:$16 sps:$4 sm:$0xff]   ;;  %v2030_v26 = vld [vmem:[%s3172_s1 + $0xcc] ss:$16 sps:$4 sm:$0xff]   ;;  %v2032_v27 = vld [vmem:[%s3172_s1 + $0xc0] ss:$16 sps:$4 sm:$0xff]  }
   0xa   :  { %v2033_v28 = vld [vmem:[%s3172_s1 + $0xc8] ss:$16 sps:$4 sm:$0xff]   ;;  %v2034_v29 = vld [vmem:[%s3172_s1 + $0xe4] ss:$16 sps:$4 sm:$0xff]   ;;  %v2036_v30 = vld [vmem:[%s3172_s1 + $0xec] ss:$16 sps:$4 sm:$0xff]  }
   0xb   :  { %281 = vmatpush1.bf16.msra.mxu0 %v2008_v11  ;;  %354 = vmatpush1.bf16.msra.mxu1 %v2009_v12  ;;  %v2038_v31 = vld [vmem:[%s3172_s1 + $0xe0] ss:$16 sps:$4 sm:$0xff]   ;;  %v2039_v32 = vld [vmem:[%s3172_s1 + $0xe8] ss:$16 sps:$4 sm:$0xff]   ;;  %v2400_v33 = vld [vmem:[%s3174_s2 + $0x4] ss:$16 sps:$4 sm:$0xff]  }
   0xc   :  { %282 = vmatprep.subr.bf16.mxu0 %v2010_v13  ;;  %355 = vmatprep.subr.bf16.mxu1 %v2012_v14  ;;  %v2405_v34 = vld [vmem:[%s3174_s2 + $0xc] ss:$16 sps:$4 sm:$0xff]   ;;  %v2040_v35 = vld [vmem:[%s3173_s0] sm:$0xff]   ;;  %v2418_v37 = vld [vmem:[%s3174_s2 + $0x8] ss:$16 sps:$4 sm:$0xff]   ;;  %v2261_v6 = vmov 0.0|0.0  }
   0xd   :  { %v2413_v36 = vld [vmem:[%s3174_s2] ss:$16 sps:$4 sm:$0xff]   ;;  %v2425_v38 = vld [vmem:[%s3174_s2 + $0x24] ss:$16 sps:$4 sm:$0xff]   ;;  %v2430_v39 = vld [vmem:[%s3174_s2 + $0x2c] ss:$16 sps:$4 sm:$0xff]  }
   0xe   :  { %v2435_v40 = vld [vmem:[%s3174_s2 + $0x20] ss:$16 sps:$4 sm:$0xff]   ;;  %v2442_v41 = vld [vmem:[%s3174_s2 + $0x28] ss:$16 sps:$4 sm:$0xff]   ;;  %v2449_v42 = vld [vmem:[%s3174_s2 + $0x44] ss:$16 sps:$4 sm:$0xff]  }
   0xf   :  { %283 = vmatpush1.bf16.msra.mxu0 %v2014_v15  ;;  %356 = vmatpush1.bf16.msra.mxu1 %v2015_v16  ;;  %v2454_v43 = vld [vmem:[%s3174_s2 + $0x4c] ss:$16 sps:$4 sm:$0xff]   ;;  %v2464_v45 = vld [vmem:[%s3174_s2 + $0x40] ss:$16 sps:$4 sm:$0xff]   ;;  %v2469_v46 = vld [vmem:[%s3174_s2 + $0x48] ss:$16 sps:$4 sm:$0xff]  }
  0x10   :  { %284 = vmatprep.subr.bf16.mxu0 %v2016_v17  ;;  %357 = vmatprep.subr.bf16.mxu1 %v2018_v18  ;;  %v2053_v44 = vld [vmem:[%s3173_s0 + $0x8] sm:$0xff]   ;;  %v2476_v47 = vld [vmem:[%s3174_s2 + $0x64] ss:$16 sps:$4 sm:$0xff]   ;;  %v2488_v49 = vld [vmem:[%s3174_s2 + $0x60] ss:$16 sps:$4 sm:$0xff]   ;;  %v73_v8 = vshrl.u32 %v72_v7, 7 }
  0x11   :  { %v2483_v48 = vld [vmem:[%s3174_s2 + $0x6c] ss:$16 sps:$4 sm:$0xff]   ;;  %v2493_v50 = vld [vmem:[%s3174_s2 + $0x68] ss:$16 sps:$4 sm:$0xff]   ;;  %v2500_v51 = vld [vmem:[%s3174_s2 + $0x84] ss:$16 sps:$4 sm:$0xff]  }
  0x12   :  { %v2507_v52 = vld [vmem:[%s3174_s2 + $0x8c] ss:$16 sps:$4 sm:$0xff]   ;;  %v2066_v53 = vld [vmem:[%s3173_s0 + $0x10] sm:$0xff]   ;;  %v2524_v55 = vld [vmem:[%s3174_s2 + $0x88] ss:$16 sps:$4 sm:$0xff]   ;;  %v74_v9 = vsub.s32 0, %v73_v8 }
  0x13   :  { %285 = vmatpush1.bf16.msra.mxu0 %v2020_v19  ;;  %358 = vmatpush1.bf16.msra.mxu1 %v2021_v20  ;;  %v2519_v54 = vld [vmem:[%s3174_s2 + $0x80] ss:$16 sps:$4 sm:$0xff]   ;;  %v2531_v56 = vld [vmem:[%s3174_s2 + $0xa4] ss:$16 sps:$4 sm:$0xff]   ;;  %v2536_v57 = vld [vmem:[%s3174_s2 + $0xac] ss:$16 sps:$4 sm:$0xff]  }
  0x14   :  { %286 = vmatprep.subr.bf16.mxu0 %v2022_v21  ;;  %359 = vmatprep.subr.bf16.mxu1 %v2024_v22  ;;  %v2543_v58 = vld [vmem:[%s3174_s2 + $0xa0] ss:$16 sps:$4 sm:$0xff]   ;;  %v2548_v59 = vld [vmem:[%s3174_s2 + $0xa8] ss:$16 sps:$4 sm:$0xff]   ;;  %v2555_v60 = vld [vmem:[%s3174_s2 + $0xc4] ss:$16 sps:$4 sm:$0xff]  }
  0x15   :  { %v2560_v61 = vld [vmem:[%s3174_s2 + $0xcc] ss:$16 sps:$4 sm:$0xff]   ;;  %v2572_v63 = vld [vmem:[%s3174_s2 + $0xc0] ss:$16 sps:$4 sm:$0xff]   ;;  %v2577_v0 = vld [vmem:[%s3174_s2 + $0xc8] ss:$16 sps:$4 sm:$0xff]  }
  0x16   :  { %v2079_v62 = vld [vmem:[%s3173_s0 + $0x18] sm:$0xff]   ;;  %v2584_v2 = vld [vmem:[%s3174_s2 + $0xe4] ss:$16 sps:$4 sm:$0xff]   ;;  %v2596_v4 = vld [vmem:[%s3174_s2 + $0xe0] ss:$16 sps:$4 sm:$0xff]   ;;  %v82_v10 = vsub.s32 2, %v73_v8 }
  0x17   :  { %287 = vmatpush1.bf16.msra.mxu0 %v2026_v23  ;;  %360 = vmatpush1.bf16.msra.mxu1 %v2027_v24  ;;  %v2589_v3 = vld [vmem:[%s3174_s2 + $0xec] ss:$16 sps:$4 sm:$0xff]   ;;  %v2601_v5 = vld [vmem:[%s3174_s2 + $0xe8] ss:$16 sps:$4 sm:$0xff]   ;;  %v70_v11 = vld [vmem:[%s3175_s3] sm:$0xf] }
  0x18   :  { %288 = vmatprep.subr.bf16.mxu0 %v2028_v25  ;;  %361 = vmatprep.subr.bf16.mxu1 %v2030_v26  ;;  %v78_v12 = vsub.s32 1, %v73_v8  ;;  %v86_v13 = vsub.s32 3, %v73_v8  ;;  %v2648_v14 = vrot.slane %v70_v11, %v74_v9  ;;  %v2650_v15 = vrot.slane %v70_v11, %v82_v10 }
  0x1a   :  { %v2652_v16 = vrot.slane %v70_v11, %v78_v12  ;;  %v2654_v17 = vrot.slane %v70_v11, %v86_v13 }
  0x1b   :  { %289 = vmatpush1.bf16.msra.mxu0 %v2032_v27  ;;  %362 = vmatpush1.bf16.msra.mxu1 %v2033_v28 }
  0x1c   :  { %290 = vmatprep.subr.bf16.mxu0 %v2034_v29  ;;  %363 = vmatprep.subr.bf16.mxu1 %v2036_v30 }
  0x1f   :  { %291 = vmatpush1.bf16.msra.mxu0 %v2038_v31  ;;  %364 = vmatpush1.bf16.msra.mxu1 %v2039_v32 }
  0x20   :  { %767 = vmatprep.subr.bf16.mxu0 %v2400_v33  ;;  %808 = vmatprep.subr.bf16.mxu1 %v2405_v34 }
  0x22   :  { %309 = vmatmul.mubr.bf16.vlgmr.msra.gmra.mrb[0].mxu0 %v2040_v35  ;;  %382 = vmatmul.mubr.bf16.vlgmr.msra.gmra.mrb[0].mxu1 %v2040_v35 }
  0x23   :  { %768 = vmatpush1.bf16.msra.mxu0 %v2413_v36  ;;  %809 = vmatpush1.bf16.msra.mxu1 %v2418_v37 }
  0x24   :  { %769 = vmatprep.subr.bf16.mxu0 %v2425_v38  ;;  %810 = vmatprep.subr.bf16.mxu1 %v2430_v39 }
  0x25   :  { %318 = vmatprep.mubr.bf16.mxu0 %v3179_v1  ;;  %391 = vmatprep.mubr.bf16.mxu1 %v3179_v1 }
  0x27   :  { %770 = vmatpush1.bf16.msra.mxu0 %v2435_v40  ;;  %811 = vmatpush1.bf16.msra.mxu1 %v2442_v41 }
  0x28   :  { %771 = vmatprep.subr.bf16.mxu0 %v2449_v42  ;;  %812 = vmatprep.subr.bf16.mxu1 %v2454_v43 }
  0x2a   :  { %319 = vmatmul.mubr.bf16.gmra.mrb[4].mxu0 %v2053_v44  ;;  %392 = vmatmul.mubr.bf16.gmra.mrb[4].mxu1 %v2053_v44 }
  0x2b   :  { %772 = vmatpush1.bf16.msra.mxu0 %v2464_v45  ;;  %813 = vmatpush1.bf16.msra.mxu1 %v2469_v46 }
  0x2c   :  { %773 = vmatprep.subr.bf16.mxu0 %v2476_v47  ;;  %814 = vmatprep.subr.bf16.mxu1 %v2483_v48 }
  0x2d   :  { %328 = vmatprep.mubr.bf16.mxu0 %v3179_v1  ;;  %401 = vmatprep.mubr.bf16.mxu1 %v3179_v1 }
  0x2f   :  { %774 = vmatpush1.bf16.msra.mxu0 %v2488_v49  ;;  %815 = vmatpush1.bf16.msra.mxu1 %v2493_v50 }
  0x30   :  { %775 = vmatprep.subr.bf16.mxu0 %v2500_v51  ;;  %816 = vmatprep.subr.bf16.mxu1 %v2507_v52 }
  0x32   :  { %329 = vmatmul.mubr.bf16.gmra.mrb[8].mxu0 %v2066_v53  ;;  %402 = vmatmul.mubr.bf16.gmra.mrb[8].mxu1 %v2066_v53 }
  0x33   :  { %776 = vmatpush1.bf16.msra.mxu0 %v2519_v54  ;;  %817 = vmatpush1.bf16.msra.mxu1 %v2524_v55 }
  0x34   :  { %777 = vmatprep.subr.bf16.mxu0 %v2531_v56  ;;  %818 = vmatprep.subr.bf16.mxu1 %v2536_v57 }
  0x35   :  { %338 = vmatprep.mubr.bf16.mxu0 %v3179_v1  ;;  %411 = vmatprep.mubr.bf16.mxu1 %v3179_v1 }
  0x37   :  { %778 = vmatpush1.bf16.msra.mxu0 %v2543_v58  ;;  %819 = vmatpush1.bf16.msra.mxu1 %v2548_v59 }
  0x38   :  { %779 = vmatprep.subr.bf16.mxu0 %v2555_v60  ;;  %820 = vmatprep.subr.bf16.mxu1 %v2560_v61 }
  0x3a   :  { %339 = vmatmul.mubr.bf16.gmra.mrb[12].mxu0 %v2079_v62  ;;  %412 = vmatmul.mubr.bf16.gmra.mrb[12].mxu1 %v2079_v62 }
  0x3b   :  { %780 = vmatpush1.bf16.msra.mxu0 %v2572_v63  ;;  %821 = vmatpush1.bf16.msra.mxu1 %v2577_v0 }
  0x3c   :  { %781 = vmatprep.subr.bf16.mxu0 %v2584_v2  ;;  %822 = vmatprep.subr.bf16.mxu1 %v2589_v3 }
  0x3d   :  { %799 = vmatprep.mubr.bf16.mxu0 %v3179_v1  ;;  %840 = vmatprep.mubr.bf16.mxu1 %v3179_v1 }
  0x3f   :  { %782 = vmatpush1.bf16.msra.mxu0 %v2596_v4  ;;  %823 = vmatpush1.bf16.msra.mxu1 %v2601_v5 }
  0x40   :  { %885 = vmatprep.subr.bf16.mxu0 %v2400_v33  ;;  %926 = vmatprep.subr.bf16.mxu1 %v2405_v34 }
  0x42   :  { %800 = vmatmul.mubr.bf16.vlgmr.msra.gmra.mrb[16].mxu0 %v2261_v6  ;;  %841 = vmatmul.mubr.bf16.vlgmr.msra.gmra.mrb[16].mxu1 %v2261_v6 }
  0x43   :  { %886 = vmatpush1.bf16.msra.mxu0 %v2413_v36  ;;  %927 = vmatpush1.bf16.msra.mxu1 %v2418_v37 }
  0x44   :  { %887 = vmatprep.subr.bf16.mxu0 %v2425_v38  ;;  %928 = vmatprep.subr.bf16.mxu1 %v2430_v39 }
  0x45   :  { %917 = vmatprep.mubr.bf16.mxu0 %v3179_v1  ;;  %958 = vmatprep.mubr.bf16.mxu1 %v3179_v1 }
  0x47   :  { %888 = vmatpush1.bf16.msra.mxu0 %v2435_v40  ;;  %929 = vmatpush1.bf16.msra.mxu1 %v2442_v41 }
  0x48   :  { %889 = vmatprep.subr.bf16.mxu0 %v2449_v42  ;;  %930 = vmatprep.subr.bf16.mxu1 %v2454_v43 }
  0x4b   :  { %890 = vmatpush1.bf16.msra.mxu0 %v2464_v45  ;;  %931 = vmatpush1.bf16.msra.mxu1 %v2469_v46 }
  0x4c   :  { %891 = vmatprep.subr.bf16.mxu0 %v2476_v47  ;;  %932 = vmatprep.subr.bf16.mxu1 %v2483_v48 }
  0x4f   :  { %892 = vmatpush1.bf16.msra.mxu0 %v2488_v49  ;;  %933 = vmatpush1.bf16.msra.mxu1 %v2493_v50 }
  0x50   :  { %893 = vmatprep.subr.bf16.mxu0 %v2500_v51  ;;  %934 = vmatprep.subr.bf16.mxu1 %v2507_v52 }
  0x53   :  { %894 = vmatpush1.bf16.msra.mxu0 %v2519_v54  ;;  %935 = vmatpush1.bf16.msra.mxu1 %v2524_v55 }
  0x54   :  { %895 = vmatprep.subr.bf16.mxu0 %v2531_v56  ;;  %936 = vmatprep.subr.bf16.mxu1 %v2536_v57 }
  0x57   :  { %896 = vmatpush1.bf16.msra.mxu0 %v2543_v58  ;;  %937 = vmatpush1.bf16.msra.mxu1 %v2548_v59 }
  0x58   :  { %897 = vmatprep.subr.bf16.mxu0 %v2555_v60  ;;  %938 = vmatprep.subr.bf16.mxu1 %v2560_v61 }
  0x5b   :  { %898 = vmatpush1.bf16.msra.mxu0 %v2572_v63  ;;  %939 = vmatpush1.bf16.msra.mxu1 %v2577_v0 }
  0x5c   :  { %899 = vmatprep.subr.bf16.mxu0 %v2584_v2  ;;  %940 = vmatprep.subr.bf16.mxu1 %v2589_v3 }
  0x5f   :  { %900 = vmatpush1.bf16.msra.mxu0 %v2596_v4  ;;  %941 = vmatpush1.bf16.msra.mxu1 %v2601_v5 }
  0x60   :  { %1003 = vmatprep.subr.bf16.mxu0 %v2400_v33  ;;  %1044 = vmatprep.subr.bf16.mxu1 %v2405_v34 }
  0xf5   :  { %v310_v18 = vpop.f32.mrb[0].mxu0  ;;  %v383_v19 = vpop.f32.mrb[0].mxu1 }
  0xf6   :  { %v311_v20 = vadd.f32 %v310_v18, %v2648_v14  ;;  %v312_v21 = vpop.f32.mrb[1].mxu0  ;;  %v384_v22 = vadd.f32 %v383_v19, %v2650_v15  ;;  %v385_v23 = vpop.f32.mrb[1].mxu1 }
  0xf7   :  { %v313_v24 = vadd.f32 %v312_v21, %v2652_v16  ;;  %v314_v25 = vpop.f32.mrb[2].mxu0  ;;  %v386_v26 = vadd.f32 %v385_v23, %v2654_v17  ;;  %v387_v27 = vpop.f32.mrb[2].mxu1 }
  0xf8   :  { %v315_v28 = vadd.f32 %v314_v25, %v2648_v14  ;;  %v316_v29 = vpop.f32.mrb[3].mxu0  ;;  %v388_v30 = vadd.f32 %v387_v27, %v2650_v15  ;;  %v389_v31 = vpop.f32.mrb[3].mxu1 }
  0xf9   :  { %v2662_v32 = vpack.c.bf16 %v313_v24, %v311_v20  ;;  %v317_v35 = vadd.f32 %v316_v29, %v2652_v16  ;;  %v2665_v44 = vpack.c.bf16 %v386_v26, %v384_v22  ;;  %v390_v53 = vadd.f32 %v389_v31, %v2654_v17 }
  0xfb   :  { %v2668_v62 = vpack.c.bf16 %v317_v35, %v315_v28  ;;  %v2670_v6 = vpack.c.bf16 %v390_v53, %v388_v30 }
  0xfd   :  { %v320_v7 = vpop.f32.mrb[4].mxu0  ;;  %v393_v8 = vpop.f32.mrb[4].mxu1 }
  0xfe   :  { %v321_v9 = vadd.f32 %v320_v7, %v2648_v14  ;;  %v322_v10 = vpop.f32.mrb[5].mxu0  ;;  %v394_v11 = vadd.f32 %v393_v8, %v2650_v15  ;;  %v395_v12 = vpop.f32.mrb[5].mxu1 }
  0xff   :  { %v323_v13 = vadd.f32 %v322_v10, %v2652_v16  ;;  %v324_v18 = vpop.f32.mrb[6].mxu0  ;;  %v396_v19 = vadd.f32 %v395_v12, %v2654_v17  ;;  %v397_v20 = vpop.f32.mrb[6].mxu1 }
 0x100   :  { %v325_v21 = vadd.f32 %v324_v18, %v2648_v14  ;;  %v326_v22 = vpop.f32.mrb[7].mxu0  ;;  %v398_v23 = vadd.f32 %v397_v20, %v2650_v15  ;;  %v399_v24 = vpop.f32.mrb[7].mxu1 }
 0x101   :  { %v2678_v25 = vpack.c.bf16 %v323_v13, %v321_v9  ;;  %v327_v26 = vadd.f32 %v326_v22, %v2652_v16  ;;  %v2681_v27 = vpack.c.bf16 %v396_v19, %v394_v11  ;;  %v400_v28 = vadd.f32 %v399_v24, %v2654_v17 }
 0x103   :  { %v2684_v29 = vpack.c.bf16 %v327_v26, %v325_v21  ;;  %v2686_v30 = vpack.c.bf16 %v400_v28, %v398_v23 }
 0x105   :  { %v330_v31 = vpop.f32.mrb[8].mxu0  ;;  %v403_v35 = vpop.f32.mrb[8].mxu1 }
 0x106   :  { %v331_v53 = vadd.f32 %v330_v31, %v2648_v14  ;;  %v332_v7 = vpop.f32.mrb[9].mxu0  ;;  %v404_v8 = vadd.f32 %v403_v35, %v2650_v15  ;;  %v405_v10 = vpop.f32.mrb[9].mxu1 }
 0x107   :  { %v333_v9 = vadd.f32 %v332_v7, %v2652_v16  ;;  %v334_v12 = vpop.f32.mrb[10].mxu0  ;;  %v406_v11 = vadd.f32 %v405_v10, %v2654_v17  ;;  %v407_v13 = vpop.f32.mrb[10].mxu1 }
 0x108   :  { %v335_v18 = vadd.f32 %v334_v12, %v2648_v14  ;;  %v336_v19 = vpop.f32.mrb[11].mxu0  ;;  %v408_v20 = vadd.f32 %v407_v13, %v2650_v15  ;;  %v409_v21 = vpop.f32.mrb[11].mxu1 }
 0x109   :  { %v2694_v22 = vpack.c.bf16 %v333_v9, %v331_v53  ;;  %v337_v23 = vadd.f32 %v336_v19, %v2652_v16  ;;  %v2697_v24 = vpack.c.bf16 %v406_v11, %v404_v8  ;;  %v410_v26 = vadd.f32 %v409_v21, %v2654_v17 }
 0x10b   :  { %v2700_v28 = vpack.c.bf16 %v337_v23, %v335_v18  ;;  %v2702_v31 = vpack.c.bf16 %v410_v26, %v408_v20 }
 0x10d   :  { %3186 = vst [vmem:[#allocation5_spill] sm:$0xff] %v2700_v28  ;;  %3187 = vst [vmem:[#allocation6_spill] sm:$0xff] %v2702_v31  ;;  %v340_v35 = vpop.f32.mrb[12].mxu0  ;;  %v413_v7 = vpop.f32.mrb[12].mxu1 }
 0x10e   :  { %v341_v10 = vadd.f32 %v340_v35, %v2648_v14  ;;  %v342_v12 = vpop.f32.mrb[13].mxu0  ;;  %v414_v13 = vadd.f32 %v413_v7, %v2650_v15  ;;  %v415_v1 = vpop.f32.mrb[13].mxu1 }
 0x10f   :  { %v343_v53 = vadd.f32 %v342_v12, %v2652_v16  ;;  %v344_v9 = vpop.f32.mrb[14].mxu0  ;;  %v416_v8 = vadd.f32 %v415_v1, %v2654_v17  ;;  %v417_v11 = vpop.f32.mrb[14].mxu1  ;;  %v602_v1 = vunpack.c.l.bf16 %v2662_v32 }
 0x110   :  { %v345_v19 = vadd.f32 %v344_v9, %v2648_v14  ;;  %v346_v18 = vpop.f32.mrb[15].mxu0  ;;  %v418_v20 = vadd.f32 %v417_v11, %v2650_v15  ;;  %v419_v21 = vpop.f32.mrb[15].mxu1  ;;  %v604_v14 = vunpack.c.l.bf16 %v2665_v44  ;;  %v603_v15 = vunpack.c.h.bf16 %v2662_v32 }
 0x111   :  { %v2710_v23 = vpack.c.bf16 %v343_v53, %v341_v10  ;;  %v347_v26 = vadd.f32 %v346_v18, %v2652_v16  ;;  %v2713_v35 = vpack.c.bf16 %v416_v8, %v414_v13  ;;  %v420_v7 = vadd.f32 %v419_v21, %v2654_v17 }
 0x112   :  { %v605_v10 = vunpack.c.h.bf16 %v2665_v44 }
 0x113   :  { %3188 = vst [vmem:[#allocation7_spill] sm:$0xff] %v2713_v35  ;;  %v2716_v31 = vpack.c.bf16 %v347_v26, %v345_v19  ;;  %v2718_v12 = vpack.c.bf16 %v420_v7, %v418_v20 }
 0x115   :  { %3189 = vst [vmem:[#allocation8_spill] sm:$0xff] %v2716_v31  ;;  %3190 = vst [vmem:[#allocation9_spill] sm:$0xff] %v2718_v12  ;;  %v801_v9 = vpop.f32.mrb[16].mxu0  ;;  %v842_v28 = vpop.f32.mrb[16].mxu1 }
 0x116   :  { %v849_v53 = vadd.f32 %v801_v9, %v602_v1  ;;  %v851_v16 = vadd.f32 %v842_v28, %v604_v14  ;;  %v803_v13 = vpop.f32.mrb[17].mxu0  ;;  %v844_v8 = vpop.f32.mrb[17].mxu1 }
 0x117   :  { %v850_v11 = vadd.f32 %v803_v13, %v603_v15  ;;  %v852_v17 = vadd.f32 %v844_v8, %v605_v10  ;;  %v805_v19 = vpop.f32.mrb[18].mxu0  ;;  %v846_v18 = vpop.f32.mrb[18].mxu1 }
 0x118   :  { %v1910_v20 = vmul.f32 -1.442695, %v849_v53  ;;  %v806_v21 = vpop.f32.mrb[19].mxu0  ;;  %v847_v26 = vpop.f32.mrb[19].mxu1 }
 0x119   :  { %v1911_v7 = vmul.f32 -1.442695, %v850_v11  ;;  %v1912_v12 = vmul.f32 -1.442695, %v852_v17  ;;  %v882_v17 = vunpack.c.l.bf16 %v2670_v6  ;;  %v883_v21 = vunpack.c.h.bf16 %v2670_v6 }
 0x11a   :  { %2100 = vpow2.f32 %v1910_v20  ;;  %v881_v20 = vunpack.c.h.bf16 %v2668_v62 }
 0x11b   :  { %2102 = vpow2.f32 %v1911_v7 }
 0x11c   :  { %2104 = vpow2.f32 %v1912_v12 }
 0x11d   :  { %2106 = vtanh.f32 %v851_v16  ;;  %v880_v16 = vunpack.c.l.bf16 %v2668_v62 }
 0x124   :  { %v2101_v31 = vpop.eup %2100 }
 0x125   :  { %v2103_v35 = vpop.eup %2102  ;;  %v856_v32 = vadd.f32 1.0, %v2101_v31 }
 0x126   :  { %v862_v44 = vadd.f32 1.0, %v2103_v35  ;;  %v2105_v28 = vpop.eup %2104  ;;  %v3191_v35 = vmov 0  }
 0x127   :  { %2108 = vrcp.f32 %v856_v32  ;;  %v2107_v1 = vpop.eup %2106  ;;  %v869_v10 = vadd.f32 1.0, %v2105_v28 }
 0x128   :  { %2110 = vrcp.f32 %v862_v44 }
 0x129   :  { %2112 = vrcp.f32 %v869_v10 }
 0x131   :  { %v2109_v14 = vpop.eup %2108 }
 0x132   :  { %v2111_v9 = vpop.eup %2110  ;;  %v873_v15 = vmul.f32 %v2109_v14, %v2107_v1 }
 0x133   :  { %v872_v53 = vmul.f32 0.0, %v2111_v9  ;;  %v2113_v8 = vpop.eup %2112 }
 0x135   :  { %v2724_v13 = vadd.f32 %v873_v15, %v872_v53 }
 0x137   :  { %2114 = vtanh.f32 %v2724_v13 }
 0x141   :  { %v2115_v11 = vpop.eup %2114 }
 0x142   :  { %v876_v31 = vmul.f32 %v2115_v11, %v2113_v8 }
 0x144   :  { %v884_v12 = vpack.c.bf16 %v876_v31, %v876_v31 }
 0x146   :  { %918 = vmatmul.mubr.bf16.vlgmr.msra.gmra.mrb[20].mxu0 %v884_v12  ;;  %959 = vmatmul.mubr.bf16.vlgmr.msra.gmra.mrb[20].mxu1 %v884_v12 }
 0x147   :  { %1004 = vmatpush1.bf16.msra.mxu0 %v2413_v36  ;;  %1045 = vmatpush1.bf16.msra.mxu1 %v2418_v37 }
 0x148   :  { %1005 = vmatprep.subr.bf16.mxu0 %v2425_v38  ;;  %1046 = vmatprep.subr.bf16.mxu1 %v2430_v39 }
 0x149   :  { %1035 = vmatprep.mubr.bf16.mxu0 %v3191_v35  ;;  %1076 = vmatprep.mubr.bf16.mxu1 %v3191_v35 }
 0x14b   :  { %1006 = vmatpush1.bf16.msra.mxu0 %v2435_v40  ;;  %1047 = vmatpush1.bf16.msra.mxu1 %v2442_v41 }
 0x14c   :  { %1007 = vmatprep.subr.bf16.mxu0 %v2449_v42  ;;  %1048 = vmatprep.subr.bf16.mxu1 %v2454_v43 }
 0x14f   :  { %1008 = vmatpush1.bf16.msra.mxu0 %v2464_v45  ;;  %1049 = vmatpush1.bf16.msra.mxu1 %v2469_v46 }
 0x150   :  { %1009 = vmatprep.subr.bf16.mxu0 %v2476_v47  ;;  %1050 = vmatprep.subr.bf16.mxu1 %v2483_v48 }
 0x153   :  { %1010 = vmatpush1.bf16.msra.mxu0 %v2488_v49  ;;  %1051 = vmatpush1.bf16.msra.mxu1 %v2493_v50 }
 0x154   :  { %1011 = vmatprep.subr.bf16.mxu0 %v2500_v51  ;;  %1052 = vmatprep.subr.bf16.mxu1 %v2507_v52 }
 0x157   :  { %1012 = vmatpush1.bf16.msra.mxu0 %v2519_v54  ;;  %1053 = vmatpush1.bf16.msra.mxu1 %v2524_v55 }
 0x158   :  { %1013 = vmatprep.subr.bf16.mxu0 %v2531_v56  ;;  %1054 = vmatprep.subr.bf16.mxu1 %v2536_v57 }
 0x15b   :  { %1014 = vmatpush1.bf16.msra.mxu0 %v2543_v58  ;;  %1055 = vmatpush1.bf16.msra.mxu1 %v2548_v59 }
 0x15c   :  { %1015 = vmatprep.subr.bf16.mxu0 %v2555_v60  ;;  %1056 = vmatprep.subr.bf16.mxu1 %v2560_v61 }
 0x15f   :  { %1016 = vmatpush1.bf16.msra.mxu0 %v2572_v63  ;;  %1057 = vmatpush1.bf16.msra.mxu1 %v2577_v0 }
 0x160   :  { %1017 = vmatprep.subr.bf16.mxu0 %v2584_v2  ;;  %1058 = vmatprep.subr.bf16.mxu1 %v2589_v3 }
 0x163   :  { %1018 = vmatpush1.bf16.msra.mxu0 %v2596_v4  ;;  %1059 = vmatpush1.bf16.msra.mxu1 %v2601_v5 }
 0x164   :  { %1121 = vmatprep.subr.bf16.mxu0 %v2400_v33  ;;  %1162 = vmatprep.subr.bf16.mxu1 %v2405_v34 }
 0x219   :  { %v919_v19 = vpop.f32.mrb[20].mxu0  ;;  %v960_v18 = vpop.f32.mrb[20].mxu1 }
 0x21a   :  { %v967_v26 = vadd.f32 %v919_v19, %v880_v16  ;;  %v969_v7 = vadd.f32 %v960_v18, %v882_v17  ;;  %v921_v32 = vpop.f32.mrb[21].mxu0  ;;  %v962_v44 = vpop.f32.mrb[21].mxu1 }
 0x21b   :  { %v968_v28 = vadd.f32 %v921_v32, %v881_v20  ;;  %v970_v1 = vadd.f32 %v962_v44, %v883_v21  ;;  %v923_v14 = vpop.f32.mrb[22].mxu0  ;;  %v964_v9 = vpop.f32.mrb[22].mxu1 }
 0x21c   :  { %v1913_v15 = vmul.f32 -1.442695, %v967_v26  ;;  %v924_v10 = vpop.f32.mrb[23].mxu0  ;;  %v965_v53 = vpop.f32.mrb[23].mxu1  ;;  %v1000_v14 = vunpack.c.l.bf16 %v2681_v27 }
 0x21d   :  { %v1914_v8 = vmul.f32 -1.442695, %v968_v28  ;;  %v1915_v11 = vmul.f32 -1.442695, %v970_v1  ;;  %v999_v10 = vunpack.c.h.bf16 %v2678_v25  ;;  %v1001_v53 = vunpack.c.h.bf16 %v2681_v27 }
 0x21e   :  { %2116 = vpow2.f32 %v1913_v15 }
 0x21f   :  { %2118 = vpow2.f32 %v1914_v8 }
 0x220   :  { %2120 = vpow2.f32 %v1915_v11 }
 0x221   :  { %2122 = vtanh.f32 %v969_v7 }
 0x228   :  { %v2117_v31 = vpop.eup %2116 }
 0x229   :  { %v2119_v12 = vpop.eup %2118  ;;  %v974_v62 = vadd.f32 1.0, %v2117_v31 }
 0x22a   :  { %v980_v6 = vadd.f32 1.0, %v2119_v12  ;;  %v2121_v16 = vpop.eup %2120 }
 0x22b   :  { %2124 = vrcp.f32 %v974_v62  ;;  %v2123_v17 = vpop.eup %2122  ;;  %v987_v21 = vadd.f32 1.0, %v2121_v16 }
 0x22c   :  { %2126 = vrcp.f32 %v980_v6 }
 0x22d   :  { %2128 = vrcp.f32 %v987_v21 }
 0x235   :  { %v2125_v19 = vpop.eup %2124 }
 0x236   :  { %v2127_v18 = vpop.eup %2126  ;;  %v991_v20 = vmul.f32 %v2125_v19, %v2123_v17 }
 0x237   :  { %v990_v26 = vmul.f32 %v2127_v18, %v2724_v13  ;;  %v2129_v44 = vpop.eup %2128  ;;  %v998_v13 = vunpack.c.l.bf16 %v2678_v25 }
 0x239   :  { %v2766_v32 = vadd.f32 %v991_v20, %v990_v26 }
 0x23b   :  { %2130 = vtanh.f32 %v2766_v32 }
 0x245   :  { %v2131_v28 = vpop.eup %2130 }
 0x246   :  { %v994_v1 = vmul.f32 %v2131_v28, %v2129_v44 }
 0x248   :  { %v1002_v7 = vpack.c.bf16 %v994_v1, %v994_v1 }
 0x24a   :  { %1036 = vmatmul.mubr.bf16.vlgmr.msra.gmra.mrb[24].mxu0 %v1002_v7  ;;  %1077 = vmatmul.mubr.bf16.vlgmr.msra.gmra.mrb[24].mxu1 %v1002_v7 }
 0x24b   :  { %1122 = vmatpush1.bf16.msra.mxu0 %v2413_v36  ;;  %1163 = vmatpush1.bf16.msra.mxu1 %v2418_v37 }
 0x24c   :  { %1123 = vmatprep.subr.bf16.mxu0 %v2425_v38  ;;  %1164 = vmatprep.subr.bf16.mxu1 %v2430_v39 }
 0x24d   :  { %1153 = vmatprep.mubr.bf16.mxu0 %v3191_v35  ;;  %1194 = vmatprep.mubr.bf16.mxu1 %v3191_v35 }
 0x24f   :  { %1124 = vmatpush1.bf16.msra.mxu0 %v2435_v40  ;;  %1165 = vmatpush1.bf16.msra.mxu1 %v2442_v41 }
 0x250   :  { %1125 = vmatprep.subr.bf16.mxu0 %v2449_v42  ;;  %1166 = vmatprep.subr.bf16.mxu1 %v2454_v43 }
 0x253   :  { %1126 = vmatpush1.bf16.msra.mxu0 %v2464_v45  ;;  %1167 = vmatpush1.bf16.msra.mxu1 %v2469_v46 }
 0x254   :  { %1127 = vmatprep.subr.bf16.mxu0 %v2476_v47  ;;  %1168 = vmatprep.subr.bf16.mxu1 %v2483_v48 }
 0x257   :  { %1128 = vmatpush1.bf16.msra.mxu0 %v2488_v49  ;;  %1169 = vmatpush1.bf16.msra.mxu1 %v2493_v50 }
 0x258   :  { %1129 = vmatprep.subr.bf16.mxu0 %v2500_v51  ;;  %1170 = vmatprep.subr.bf16.mxu1 %v2507_v52 }
 0x25b   :  { %1130 = vmatpush1.bf16.msra.mxu0 %v2519_v54  ;;  %1171 = vmatpush1.bf16.msra.mxu1 %v2524_v55 }
 0x25c   :  { %1131 = vmatprep.subr.bf16.mxu0 %v2531_v56  ;;  %1172 = vmatprep.subr.bf16.mxu1 %v2536_v57 }
 0x25f   :  { %1132 = vmatpush1.bf16.msra.mxu0 %v2543_v58  ;;  %1173 = vmatpush1.bf16.msra.mxu1 %v2548_v59 }
 0x260   :  { %1133 = vmatprep.subr.bf16.mxu0 %v2555_v60  ;;  %1174 = vmatprep.subr.bf16.mxu1 %v2560_v61 }
 0x263   :  { %1134 = vmatpush1.bf16.msra.mxu0 %v2572_v63  ;;  %1175 = vmatpush1.bf16.msra.mxu1 %v2577_v0 }
 0x264   :  { %1135 = vmatprep.subr.bf16.mxu0 %v2584_v2  ;;  %1176 = vmatprep.subr.bf16.mxu1 %v2589_v3 }
 0x267   :  { %1136 = vmatpush1.bf16.msra.mxu0 %v2596_v4  ;;  %1177 = vmatpush1.bf16.msra.mxu1 %v2601_v5 }
 0x268   :  { %1239 = vmatprep.subr.bf16.mxu0 %v2400_v33  ;;  %1280 = vmatprep.subr.bf16.mxu1 %v2405_v34 }
 0x31d   :  { %v1037_v9 = vpop.f32.mrb[24].mxu0  ;;  %v1078_v15 = vpop.f32.mrb[24].mxu1 }
 0x31e   :  { %v1085_v8 = vadd.f32 %v1037_v9, %v998_v13  ;;  %v1087_v11 = vadd.f32 %v1078_v15, %v1000_v14  ;;  %v1039_v31 = vpop.f32.mrb[25].mxu0  ;;  %v1080_v12 = vpop.f32.mrb[25].mxu1 }
 0x31f   :  { %v1086_v62 = vadd.f32 %v1039_v31, %v999_v10  ;;  %v1088_v6 = vadd.f32 %v1080_v12, %v1001_v53  ;;  %v1041_v16 = vpop.f32.mrb[26].mxu0  ;;  %v1082_v17 = vpop.f32.mrb[26].mxu1 }
 0x320   :  { %v1916_v19 = vmul.f32 -1.442695, %v1085_v8  ;;  %v1042_v18 = vpop.f32.mrb[27].mxu0  ;;  %v1083_v20 = vpop.f32.mrb[27].mxu1 }
 0x321   :  { %v1917_v21 = vmul.f32 -1.442695, %v1086_v62  ;;  %v1918_v26 = vmul.f32 -1.442695, %v1088_v6  ;;  %v1119_v62 = vunpack.c.h.bf16 %v2686_v30 }
 0x322   :  { %2132 = vpow2.f32 %v1916_v19 }
 0x323   :  { %2134 = vpow2.f32 %v1917_v21 }
 0x324   :  { %2136 = vpow2.f32 %v1918_v26 }
 0x325   :  { %2138 = vtanh.f32 %v1087_v11 }
 0x32c   :  { %v2133_v44 = vpop.eup %2132 }
 0x32d   :  { %v2135_v28 = vpop.eup %2134  ;;  %v1092_v25 = vadd.f32 1.0, %v2133_v44 }
 0x32e   :  { %v1098_v27 = vadd.f32 1.0, %v2135_v28  ;;  %v2137_v1 = vpop.eup %2136 }
 0x32f   :  { %2140 = vrcp.f32 %v1092_v25  ;;  %v2139_v7 = vpop.eup %2138  ;;  %v1105_v15 = vadd.f32 1.0, %v2137_v1 }
 0x330   :  { %2142 = vrcp.f32 %v1098_v27 }
 0x331   :  { %2144 = vrcp.f32 %v1105_v15 }
 0x339   :  { %v2141_v13 = vpop.eup %2140 }
 0x33a   :  { %v2143_v14 = vpop.eup %2142  ;;  %v1109_v9 = vmul.f32 %v2141_v13, %v2139_v7 }
 0x33b   :  { %v1108_v10 = vmul.f32 %v2143_v14, %v2766_v32  ;;  %v2145_v8 = vpop.eup %2144  ;;  %v1117_v32 = vunpack.c.h.bf16 %v2684_v29 }
 0x33d   :  { %v2808_v53 = vadd.f32 %v1109_v9, %v1108_v10 }
 0x33f   :  { %2146 = vtanh.f32 %v2808_v53 }
 0x349   :  { %v2147_v31 = vpop.eup %2146 }
 0x34a   :  { %v1112_v12 = vmul.f32 %v2147_v31, %v2145_v8 }
 0x34c   :  { %v1120_v11 = vpack.c.bf16 %v1112_v12, %v1112_v12 }
 0x34e   :  { %1154 = vmatmul.mubr.bf16.vlgmr.msra.gmra.mrb[28].mxu0 %v1120_v11  ;;  %1195 = vmatmul.mubr.bf16.vlgmr.msra.gmra.mrb[28].mxu1 %v1120_v11 }
 0x34f   :  { %1240 = vmatpush1.bf16.msra.mxu0 %v2413_v36  ;;  %1281 = vmatpush1.bf16.msra.mxu1 %v2418_v37  ;;  %v1116_v36 = vunpack.c.l.bf16 %v2684_v29  ;;  %v1118_v37 = vunpack.c.l.bf16 %v2686_v30 }
 0x350   :  { %1241 = vmatprep.subr.bf16.mxu0 %v2425_v38  ;;  %1282 = vmatprep.subr.bf16.mxu1 %v2430_v39 }
 0x351   :  { %1271 = vmatprep.mubr.bf16.mxu0 %v3191_v35  ;;  %1312 = vmatprep.mubr.bf16.mxu1 %v3191_v35 }
 0x353   :  { %1242 = vmatpush1.bf16.msra.mxu0 %v2435_v40  ;;  %1283 = vmatpush1.bf16.msra.mxu1 %v2442_v41 }
 0x354   :  { %1243 = vmatprep.subr.bf16.mxu0 %v2449_v42  ;;  %1284 = vmatprep.subr.bf16.mxu1 %v2454_v43 }
 0x357   :  { %1244 = vmatpush1.bf16.msra.mxu0 %v2464_v45  ;;  %1285 = vmatpush1.bf16.msra.mxu1 %v2469_v46 }
 0x358   :  { %1245 = vmatprep.subr.bf16.mxu0 %v2476_v47  ;;  %1286 = vmatprep.subr.bf16.mxu1 %v2483_v48 }
 0x35b   :  { %1246 = vmatpush1.bf16.msra.mxu0 %v2488_v49  ;;  %1287 = vmatpush1.bf16.msra.mxu1 %v2493_v50 }
 0x35c   :  { %1247 = vmatprep.subr.bf16.mxu0 %v2500_v51  ;;  %1288 = vmatprep.subr.bf16.mxu1 %v2507_v52 }
 0x35f   :  { %1248 = vmatpush1.bf16.msra.mxu0 %v2519_v54  ;;  %1289 = vmatpush1.bf16.msra.mxu1 %v2524_v55 }
 0x360   :  { %1249 = vmatprep.subr.bf16.mxu0 %v2531_v56  ;;  %1290 = vmatprep.subr.bf16.mxu1 %v2536_v57 }
 0x363   :  { %1250 = vmatpush1.bf16.msra.mxu0 %v2543_v58  ;;  %1291 = vmatpush1.bf16.msra.mxu1 %v2548_v59 }
 0x364   :  { %1251 = vmatprep.subr.bf16.mxu0 %v2555_v60  ;;  %1292 = vmatprep.subr.bf16.mxu1 %v2560_v61 }
 0x367   :  { %1252 = vmatpush1.bf16.msra.mxu0 %v2572_v63  ;;  %1293 = vmatpush1.bf16.msra.mxu1 %v2577_v0 }
 0x368   :  { %1253 = vmatprep.subr.bf16.mxu0 %v2584_v2  ;;  %1294 = vmatprep.subr.bf16.mxu1 %v2589_v3 }
 0x36b   :  { %1254 = vmatpush1.bf16.msra.mxu0 %v2596_v4  ;;  %1295 = vmatpush1.bf16.msra.mxu1 %v2601_v5 }
 0x36c   :  { %1357 = vmatprep.subr.bf16.mxu0 %v2400_v33  ;;  %1398 = vmatprep.subr.bf16.mxu1 %v2405_v34 }
 0x421   :  { %v1155_v38 = vpop.f32.mrb[28].mxu0  ;;  %v1196_v39 = vpop.f32.mrb[28].mxu1 }
 0x422   :  { %v1203_v6 = vadd.f32 %v1155_v38, %v1116_v36  ;;  %v1205_v16 = vadd.f32 %v1196_v39, %v1118_v37  ;;  %v1157_v17 = vpop.f32.mrb[29].mxu0  ;;  %v1198_v19 = vpop.f32.mrb[29].mxu1  ;;  %v2856_v38 = vld [vmem:[%s3174_s2] ss:$16 sps:$4 sm:$0xff]   ;;  %v2868_v39 = vld [vmem:[%s3174_s2 + $0x24] ss:$16 sps:$4 sm:$0xff]  }
 0x423   :  { %v1204_v18 = vadd.f32 %v1157_v17, %v1117_v32  ;;  %v1206_v20 = vadd.f32 %v1198_v19, %v1119_v62  ;;  %v1159_v21 = vpop.f32.mrb[30].mxu0  ;;  %v1200_v33 = vpop.f32.mrb[30].mxu1  ;;  %v2874_v32 = vld [vmem:[%s3174_s2 + $0x2c] ss:$16 sps:$4 sm:$0xff]  }
 0x424   :  { %v1919_v26 = vmul.f32 -1.442695, %v1203_v6  ;;  %v1160_v34 = vpop.f32.mrb[31].mxu0  ;;  %v1201_v44 = vpop.f32.mrb[31].mxu1 }
 0x425   :  { %v1920_v28 = vmul.f32 -1.442695, %v1204_v18  ;;  %v1921_v25 = vmul.f32 -1.442695, %v1206_v20  ;;  %v2940_v34 = vld [vmem:[%s3174_s2 + $0x28] ss:$16 sps:$4 sm:$0xff]  }
 0x426   :  { %2148 = vpow2.f32 %v1919_v26  ;;  %v2934_v26 = vld [vmem:[%s3174_s2 + $0x20] ss:$16 sps:$4 sm:$0xff]   ;;  %v2946_v44 = vld [vmem:[%s3174_s2 + $0x44] ss:$16 sps:$4 sm:$0xff]  }
 0x427   :  { %2150 = vpow2.f32 %v1920_v28  ;;  %v2952_v28 = vld [vmem:[%s3174_s2 + $0x4c] ss:$16 sps:$4 sm:$0xff]  }
 0x428   :  { %2152 = vpow2.f32 %v1921_v25  ;;  %v2958_v25 = vld [vmem:[%s3174_s2 + $0x40] ss:$16 sps:$4 sm:$0xff]  }
 0x429   :  { %2154 = vtanh.f32 %v1205_v16 }
 0x430   :  { %v2149_v27 = vpop.eup %2148 }
 0x431   :  { %v2151_v1 = vpop.eup %2150  ;;  %v1210_v29 = vadd.f32 1.0, %v2149_v27  ;;  %v2964_v27 = vld [vmem:[%s3174_s2 + $0x48] ss:$16 sps:$4 sm:$0xff]  }
 0x432   :  { %v1216_v30 = vadd.f32 1.0, %v2151_v1  ;;  %v2153_v7 = vpop.eup %2152  ;;  %v2970_v1 = vld [vmem:[%s3174_s2 + $0x64] ss:$16 sps:$4 sm:$0xff]  }
 0x433   :  { %2156 = vrcp.f32 %v1210_v29  ;;  %v2155_v13 = vpop.eup %2154  ;;  %v1223_v10 = vadd.f32 1.0, %v2153_v7  ;;  %v2976_v29 = vld [vmem:[%s3174_s2 + $0x6c] ss:$16 sps:$4 sm:$0xff]   ;;  %v2988_v7 = vld [vmem:[%s3174_s2 + $0x68] ss:$16 sps:$4 sm:$0xff]  }
 0x434   :  { %2158 = vrcp.f32 %v1216_v30  ;;  %v2982_v30 = vld [vmem:[%s3174_s2 + $0x60] ss:$16 sps:$4 sm:$0xff]  }
 0x435   :  { %2160 = vrcp.f32 %v1223_v10  ;;  %v3018_v10 = vld [vmem:[%s3174_s2 + $0xa4] ss:$16 sps:$4 sm:$0xff]  }
 0x43d   :  { %v2157_v14 = vpop.eup %2156 }
 0x43e   :  { %v2159_v9 = vpop.eup %2158  ;;  %v1227_v15 = vmul.f32 %v2157_v14, %v2155_v13  ;;  %v2994_v13 = vld [vmem:[%s3174_s2 + $0x84] ss:$16 sps:$4 sm:$0xff]   ;;  %v3000_v14 = vld [vmem:[%s3174_s2 + $0x8c] ss:$16 sps:$4 sm:$0xff]  }
 0x43f   :  { %v1226_v8 = vmul.f32 %v2159_v9, %v2808_v53  ;;  %v2161_v12 = vpop.eup %2160  ;;  %v2862_v53 = vld [vmem:[%s3174_s2 + $0x8] ss:$16 sps:$4 sm:$0xff]   ;;  %v3006_v9 = vld [vmem:[%s3174_s2 + $0x80] ss:$16 sps:$4 sm:$0xff]  }
 0x441   :  { %v2850_v31 = vadd.f32 %v1227_v15, %v1226_v8  ;;  %v3012_v15 = vld [vmem:[%s3174_s2 + $0x88] ss:$16 sps:$4 sm:$0xff]   ;;  %v3024_v8 = vld [vmem:[%s3174_s2 + $0xac] ss:$16 sps:$4 sm:$0xff]  }
 0x443   :  { %2162 = vtanh.f32 %v2850_v31 }
 0x44d   :  { %v2163_v11 = vpop.eup %2162 }
 0x44e   :  { %v1230_v36 = vmul.f32 %v2163_v11, %v2161_v12  ;;  %v3036_v12 = vld [vmem:[%s3174_s2 + $0xa8] ss:$16 sps:$4 sm:$0xff]   ;;  %v3042_v11 = vld [vmem:[%s3174_s2 + $0xc4] ss:$16 sps:$4 sm:$0xff]  }
 0x450   :  { %v1238_v37 = vpack.c.bf16 %v1230_v36, %v1230_v36  ;;  %v3048_v36 = vld [vmem:[%s3174_s2 + $0xcc] ss:$16 sps:$4 sm:$0xff]  }
 0x452   :  { %1272 = vmatmul.mubr.bf16.vlgmr.msra.gmra.mrb[32].mxu0 %v1238_v37  ;;  %1313 = vmatmul.mubr.bf16.vlgmr.msra.gmra.mrb[32].mxu1 %v1238_v37  ;;  %v3054_v37 = vld [vmem:[%s3174_s2 + $0xc0] ss:$16 sps:$4 sm:$0xff]  }
 0x453   :  { %1358 = vmatpush1.bf16.msra.mxu0 %v2856_v38  ;;  %1399 = vmatpush1.bf16.msra.mxu1 %v2862_v53 }
 0x454   :  { %1359 = vmatprep.subr.bf16.mxu0 %v2868_v39  ;;  %1400 = vmatprep.subr.bf16.mxu1 %v2874_v32 }
 0x455   :  { %1389 = vmatprep.mubr.bf16.mxu0 %v3191_v35  ;;  %1430 = vmatprep.mubr.bf16.mxu1 %v3191_v35 }
 0x457   :  { %1360 = vmatpush1.bf16.msra.mxu0 %v2435_v40  ;;  %1401 = vmatpush1.bf16.msra.mxu1 %v2442_v41  ;;  %v2908_v40 = vld [vmem:[%s3174_s2 + $0x4] ss:$16 sps:$4 sm:$0xff]   ;;  %v2914_v41 = vld [vmem:[%s3174_s2 + $0xc] ss:$16 sps:$4 sm:$0xff]  }
 0x458   :  { %1361 = vmatprep.subr.bf16.mxu0 %v2449_v42  ;;  %1402 = vmatprep.subr.bf16.mxu1 %v2454_v43  ;;  %v1234_v42 = vunpack.c.l.bf16 %v2694_v22  ;;  %v1236_v43 = vunpack.c.l.bf16 %v2697_v24 }
 0x45b   :  { %1362 = vmatpush1.bf16.msra.mxu0 %v2464_v45  ;;  %1403 = vmatpush1.bf16.msra.mxu1 %v2469_v46 }
 0x45c   :  { %1363 = vmatprep.subr.bf16.mxu0 %v2476_v47  ;;  %1404 = vmatprep.subr.bf16.mxu1 %v2483_v48  ;;  %v1235_v47 = vunpack.c.h.bf16 %v2694_v22  ;;  %v1237_v48 = vunpack.c.h.bf16 %v2697_v24 }
 0x45f   :  { %1364 = vmatpush1.bf16.msra.mxu0 %v2488_v49  ;;  %1405 = vmatpush1.bf16.msra.mxu1 %v2493_v50 }
 0x460   :  { %1365 = vmatprep.subr.bf16.mxu0 %v2500_v51  ;;  %1406 = vmatprep.subr.bf16.mxu1 %v2507_v52 }
 0x463   :  { %1366 = vmatpush1.bf16.msra.mxu0 %v2519_v54  ;;  %1407 = vmatpush1.bf16.msra.mxu1 %v2524_v55 }
 0x464   :  { %1367 = vmatprep.subr.bf16.mxu0 %v2531_v56  ;;  %1408 = vmatprep.subr.bf16.mxu1 %v2536_v57 }
 0x467   :  { %1368 = vmatpush1.bf16.msra.mxu0 %v2543_v58  ;;  %1409 = vmatpush1.bf16.msra.mxu1 %v2548_v59 }
 0x468   :  { %1369 = vmatprep.subr.bf16.mxu0 %v2555_v60  ;;  %1410 = vmatprep.subr.bf16.mxu1 %v2560_v61 }
 0x46b   :  { %1370 = vmatpush1.bf16.msra.mxu0 %v2572_v63  ;;  %1411 = vmatpush1.bf16.msra.mxu1 %v2577_v0 }
 0x46c   :  { %1371 = vmatprep.subr.bf16.mxu0 %v2584_v2  ;;  %1412 = vmatprep.subr.bf16.mxu1 %v2589_v3 }
 0x46f   :  { %1372 = vmatpush1.bf16.msra.mxu0 %v2596_v4  ;;  %1413 = vmatpush1.bf16.msra.mxu1 %v2601_v5 }
 0x470   :  { %1475 = vmatprep.subr.bf16.mxu0 %v2908_v40  ;;  %1516 = vmatprep.subr.bf16.mxu1 %v2914_v41 }
 0x525   :  { %v1273_v45 = vpop.f32.mrb[32].mxu0  ;;  %v1314_v46 = vpop.f32.mrb[32].mxu1 }
 0x526   :  { %v1321_v49 = vadd.f32 %v1273_v45, %v1234_v42  ;;  %v1323_v50 = vadd.f32 %v1314_v46, %v1236_v43  ;;  %v1275_v51 = vpop.f32.mrb[33].mxu0  ;;  %v1316_v52 = vpop.f32.mrb[33].mxu1  ;;  %v3060_v42 = vld [vmem:[%s3174_s2 + $0xc8] ss:$16 sps:$4 sm:$0xff]   ;;  %v3066_v43 = vld [vmem:[%s3174_s2 + $0xe4] ss:$16 sps:$4 sm:$0xff]  }
 0x527   :  { %v1322_v54 = vadd.f32 %v1275_v51, %v1235_v47  ;;  %v1324_v55 = vadd.f32 %v1316_v52, %v1237_v48  ;;  %v1277_v56 = vpop.f32.mrb[34].mxu0  ;;  %v1318_v57 = vpop.f32.mrb[34].mxu1  ;;  %v3072_v45 = vld [vmem:[%s3174_s2 + $0xec] ss:$16 sps:$4 sm:$0xff]   ;;  %v3078_v46 = vld [vmem:[%s3174_s2 + $0xe0] ss:$16 sps:$4 sm:$0xff]  }
 0x528   :  { %v1922_v58 = vmul.f32 -1.442695, %v1321_v49  ;;  %v1278_v59 = vpop.f32.mrb[35].mxu0  ;;  %v1319_v60 = vpop.f32.mrb[35].mxu1  ;;  %v3084_v47 = vld [vmem:[%s3174_s2 + $0xe8] ss:$16 sps:$4 sm:$0xff]  }
 0x529   :  { %v1923_v61 = vmul.f32 -1.442695, %v1322_v54  ;;  %v1924_v63 = vmul.f32 -1.442695, %v1324_v55  ;;  %v3192_v48 = vld [vmem:[#allocation5_spill] sm:$0xff] }
 0x52a   :  { %2164 = vpow2.f32 %v1922_v58  ;;  %v1352_v49 = vunpack.c.l.bf16 %v3192_v48  ;;  %v1353_v55 = vunpack.c.h.bf16 %v3192_v48 }
 0x52b   :  { %2166 = vpow2.f32 %v1923_v61 }
 0x52c   :  { %2168 = vpow2.f32 %v1924_v63 }
 0x52d   :  { %2170 = vtanh.f32 %v1323_v50  ;;  %v3193_v50 = vld [vmem:[#allocation6_spill] sm:$0xff] }
 0x52e   :  { %v1354_v51 = vunpack.c.l.bf16 %v3193_v50  ;;  %v1355_v56 = vunpack.c.h.bf16 %v3193_v50 }
 0x534   :  { %v2165_v0 = vpop.eup %2164 }
 0x535   :  { %v2167_v2 = vpop.eup %2166  ;;  %v1328_v3 = vadd.f32 1.0, %v2165_v0 }
 0x536   :  { %v1334_v4 = vadd.f32 1.0, %v2167_v2  ;;  %v2169_v5 = vpop.eup %2168 }
 0x537   :  { %2172 = vrcp.f32 %v1328_v3  ;;  %v2171_v22 = vpop.eup %2170  ;;  %v1341_v16 = vadd.f32 1.0, %v2169_v5 }
 0x538   :  { %2174 = vrcp.f32 %v1334_v4 }
 0x539   :  { %2176 = vrcp.f32 %v1341_v16 }
 0x541   :  { %v2173_v24 = vpop.eup %2172 }
 0x542   :  { %v2175_v62 = vpop.eup %2174  ;;  %v1345_v6 = vmul.f32 %v2173_v24, %v2171_v22 }
 0x543   :  { %v1344_v17 = vmul.f32 %v2175_v62, %v2850_v31  ;;  %v2177_v18 = vpop.eup %2176  ;;  %v3030_v31 = vld [vmem:[%s3174_s2 + $0xa0] ss:$16 sps:$4 sm:$0xff]  }
 0x545   :  { %v2922_v19 = vadd.f32 %v1345_v6, %v1344_v17 }
 0x547   :  { %2178 = vtanh.f32 %v2922_v19 }
 0x551   :  { %v2179_v20 = vpop.eup %2178 }
 0x552   :  { %v1348_v21 = vmul.f32 %v2179_v20, %v2177_v18 }
 0x554   :  { %v1356_v33 = vpack.c.bf16 %v1348_v21, %v1348_v21 }
 0x556   :  { %1390 = vmatmul.mubr.bf16.vlgmr.msra.gmra.mrb[36].mxu0 %v1356_v33  ;;  %1431 = vmatmul.mubr.bf16.vlgmr.msra.gmra.mrb[36].mxu1 %v1356_v33 }
 0x557   :  { %1476 = vmatpush1.bf16.msra.mxu0 %v2856_v38  ;;  %1517 = vmatpush1.bf16.msra.mxu1 %v2862_v53 }
 0x558   :  { %1477 = vmatprep.subr.bf16.mxu0 %v2868_v39  ;;  %1518 = vmatprep.subr.bf16.mxu1 %v2874_v32 }
 0x559   :  { %1507 = vmatprep.mubr.bf16.mxu0 %v3191_v35  ;;  %1548 = vmatprep.mubr.bf16.mxu1 %v3191_v35 }
 0x55b   :  { %1478 = vmatpush1.bf16.msra.mxu0 %v2934_v26  ;;  %1519 = vmatpush1.bf16.msra.mxu1 %v2940_v34 }
 0x55c   :  { %1479 = vmatprep.subr.bf16.mxu0 %v2946_v44  ;;  %1520 = vmatprep.subr.bf16.mxu1 %v2952_v28 }
 0x55f   :  { %1480 = vmatpush1.bf16.msra.mxu0 %v2958_v25  ;;  %1521 = vmatpush1.bf16.msra.mxu1 %v2964_v27 }
 0x560   :  { %1481 = vmatprep.subr.bf16.mxu0 %v2970_v1  ;;  %1522 = vmatprep.subr.bf16.mxu1 %v2976_v29 }
 0x563   :  { %1482 = vmatpush1.bf16.msra.mxu0 %v2982_v30  ;;  %1523 = vmatpush1.bf16.msra.mxu1 %v2988_v7 }
 0x564   :  { %1483 = vmatprep.subr.bf16.mxu0 %v2994_v13  ;;  %1524 = vmatprep.subr.bf16.mxu1 %v3000_v14 }
 0x567   :  { %1484 = vmatpush1.bf16.msra.mxu0 %v3006_v9  ;;  %1525 = vmatpush1.bf16.msra.mxu1 %v3012_v15 }
 0x568   :  { %1485 = vmatprep.subr.bf16.mxu0 %v3018_v10  ;;  %1526 = vmatprep.subr.bf16.mxu1 %v3024_v8 }
 0x56b   :  { %1486 = vmatpush1.bf16.msra.mxu0 %v3030_v31  ;;  %1527 = vmatpush1.bf16.msra.mxu1 %v3036_v12 }
 0x56c   :  { %1487 = vmatprep.subr.bf16.mxu0 %v3042_v11  ;;  %1528 = vmatprep.subr.bf16.mxu1 %v3048_v36 }
 0x56f   :  { %1488 = vmatpush1.bf16.msra.mxu0 %v3054_v37  ;;  %1529 = vmatpush1.bf16.msra.mxu1 %v3060_v42 }
 0x570   :  { %1489 = vmatprep.subr.bf16.mxu0 %v3066_v43  ;;  %1530 = vmatprep.subr.bf16.mxu1 %v3072_v45 }
 0x573   :  { %1490 = vmatpush1.bf16.msra.mxu0 %v3078_v46  ;;  %1531 = vmatpush1.bf16.msra.mxu1 %v3084_v47 }
 0x574   :  { %1593 = vmatprep.subr.bf16.mxu0 %v2908_v40  ;;  %1634 = vmatprep.subr.bf16.mxu1 %v2914_v41 }
 0x629   :  { %v1391_v52 = vpop.f32.mrb[36].mxu0  ;;  %v1432_v54 = vpop.f32.mrb[36].mxu1 }
 0x62a   :  { %v1439_v57 = vadd.f32 %v1391_v52, %v1352_v49  ;;  %v1441_v58 = vadd.f32 %v1432_v54, %v1354_v51  ;;  %v1393_v59 = vpop.f32.mrb[37].mxu0  ;;  %v1434_v60 = vpop.f32.mrb[37].mxu1 }
 0x62b   :  { %v1440_v61 = vadd.f32 %v1393_v59, %v1353_v55  ;;  %v1442_v63 = vadd.f32 %v1434_v60, %v1355_v56  ;;  %v1395_v0 = vpop.f32.mrb[38].mxu0  ;;  %v1436_v40 = vpop.f32.mrb[38].mxu1  ;;  %v2262_v59 = vmov 0.0   ;;  %v2093_v60 = vld [vmem:[%s3176_s4 + $0x8] sm:$0xff]  }
 0x62c   :  { %v1925_v2 = vmul.f32 -1.442695, %v1439_v57  ;;  %v1396_v41 = vpop.f32.mrb[39].mxu0  ;;  %v1437_v3 = vpop.f32.mrb[39].mxu1  ;;  %v2096_v0 = vld [vmem:[%s3176_s4 + $0x20] sm:$0xff]   ;;  %v2097_v40 = vld [vmem:[%s3176_s4 + $0x28] sm:$0xff]  }
 0x62d   :  { %v1926_v4 = vmul.f32 -1.442695, %v1440_v61  ;;  %v1927_v5 = vmul.f32 -1.442695, %v1442_v63  ;;  %v2094_v61 = vld [vmem:[%s3176_s4 + $0x10] sm:$0xff]   ;;  %v2095_v63 = vld [vmem:[%s3176_s4 + $0x18] sm:$0xff]  }
 0x62e   :  { %2180 = vpow2.f32 %v1925_v2  ;;  %v2098_v2 = vld [vmem:[%s3176_s4 + $0x30] sm:$0xff]   ;;  %v2099_v41 = vld [vmem:[%s3176_s4 + $0x38] sm:$0xff]  }
 0x62f   :  { %2182 = vpow2.f32 %v1926_v4  ;;  %v3195_v3 = vld [vmem:[#allocation8_spill] sm:$0xff] }
 0x630   :  { %2184 = vpow2.f32 %v1927_v5  ;;  %v1588_v4 = vunpack.c.l.bf16 %v3195_v3  ;;  %v3196_v5 = vld [vmem:[#allocation9_spill] sm:$0xff] }
 0x631   :  { %2186 = vtanh.f32 %v1441_v58  ;;  %v2092_v58 = vld [vmem:[%s3176_s4] sm:$0xff]  }
 0x638   :  { %v2181_v22 = vpop.eup %2180 }
 0x639   :  { %v2183_v24 = vpop.eup %2182  ;;  %v1446_v62 = vadd.f32 1.0, %v2181_v22  ;;  %v1590_v22 = vunpack.c.l.bf16 %v3196_v5 }
 0x63a   :  { %v1452_v6 = vadd.f32 1.0, %v2183_v24  ;;  %v2185_v16 = vpop.eup %2184 }
 0x63b   :  { %2188 = vrcp.f32 %v1446_v62  ;;  %v2187_v17 = vpop.eup %2186  ;;  %v1459_v33 = vadd.f32 1.0, %v2185_v16  ;;  %v1591_v16 = vunpack.c.h.bf16 %v3196_v5 }
 0x63c   :  { %2190 = vrcp.f32 %v1452_v6  ;;  %v1589_v6 = vunpack.c.h.bf16 %v3195_v3 }
 0x63d   :  { %2192 = vrcp.f32 %v1459_v33 }
 0x645   :  { %v2189_v18 = vpop.eup %2188 }
 0x646   :  { %v2191_v20 = vpop.eup %2190  ;;  %v1463_v21 = vmul.f32 %v2189_v18, %v2187_v17 }
 0x647   :  { %v1462_v48 = vmul.f32 %v2191_v20, %v2922_v19  ;;  %v2193_v50 = vpop.eup %2192  ;;  %v1471_v19 = vunpack.c.h.bf16 %v2710_v23 }
 0x649   :  { %v3094_v49 = vadd.f32 %v1463_v21, %v1462_v48 }
 0x64b   :  { %2194 = vtanh.f32 %v3094_v49 }
 0x655   :  { %v2195_v51 = vpop.eup %2194 }
 0x656   :  { %v1466_v52 = vmul.f32 %v2195_v51, %v2193_v50 }
 0x658   :  { %v1474_v54 = vpack.c.bf16 %v1466_v52, %v1466_v52 }
 0x65a   :  { %1508 = vmatmul.mubr.bf16.vlgmr.msra.gmra.mrb[40].mxu0 %v1474_v54  ;;  %1549 = vmatmul.mubr.bf16.vlgmr.msra.gmra.mrb[40].mxu1 %v1474_v54 }
 0x65b   :  { %1594 = vmatpush1.bf16.msra.mxu0 %v2856_v38  ;;  %1635 = vmatpush1.bf16.msra.mxu1 %v2862_v53  ;;  %v3194_v38 = vld [vmem:[#allocation7_spill] sm:$0xff] }
 0x65c   :  { %1595 = vmatprep.subr.bf16.mxu0 %v2868_v39  ;;  %1636 = vmatprep.subr.bf16.mxu1 %v2874_v32  ;;  %v1472_v53 = vunpack.c.l.bf16 %v3194_v38 }
 0x65d   :  { %1625 = vmatprep.mubr.bf16.mxu0 %v3191_v35  ;;  %1666 = vmatprep.mubr.bf16.mxu1 %v3191_v35  ;;  %v1470_v35 = vunpack.c.l.bf16 %v2710_v23 }
 0x65f   :  { %1596 = vmatpush1.bf16.msra.mxu0 %v2934_v26  ;;  %1637 = vmatpush1.bf16.msra.mxu1 %v2940_v34  ;;  %v1473_v26 = vunpack.c.h.bf16 %v3194_v38 }
 0x660   :  { %1597 = vmatprep.subr.bf16.mxu0 %v2946_v44  ;;  %1638 = vmatprep.subr.bf16.mxu1 %v2952_v28 }
 0x663   :  { %1598 = vmatpush1.bf16.msra.mxu0 %v2958_v25  ;;  %1639 = vmatpush1.bf16.msra.mxu1 %v2964_v27 }
 0x664   :  { %1599 = vmatprep.subr.bf16.mxu0 %v2970_v1  ;;  %1640 = vmatprep.subr.bf16.mxu1 %v2976_v29 }
 0x667   :  { %1600 = vmatpush1.bf16.msra.mxu0 %v2982_v30  ;;  %1641 = vmatpush1.bf16.msra.mxu1 %v2988_v7 }
 0x668   :  { %1601 = vmatprep.subr.bf16.mxu0 %v2994_v13  ;;  %1642 = vmatprep.subr.bf16.mxu1 %v3000_v14 }
 0x66b   :  { %1602 = vmatpush1.bf16.msra.mxu0 %v3006_v9  ;;  %1643 = vmatpush1.bf16.msra.mxu1 %v3012_v15 }
 0x66c   :  { %1603 = vmatprep.subr.bf16.mxu0 %v3018_v10  ;;  %1644 = vmatprep.subr.bf16.mxu1 %v3024_v8 }
 0x66f   :  { %1604 = vmatpush1.bf16.msra.mxu0 %v3030_v31  ;;  %1645 = vmatpush1.bf16.msra.mxu1 %v3036_v12 }
 0x670   :  { %1605 = vmatprep.subr.bf16.mxu0 %v3042_v11  ;;  %1646 = vmatprep.subr.bf16.mxu1 %v3048_v36 }
 0x673   :  { %1606 = vmatpush1.bf16.msra.mxu0 %v3054_v37  ;;  %1647 = vmatpush1.bf16.msra.mxu1 %v3060_v42 }
 0x674   :  { %1607 = vmatprep.subr.bf16.mxu0 %v3066_v43  ;;  %1648 = vmatprep.subr.bf16.mxu1 %v3072_v45 }
 0x677   :  { %1608 = vmatpush1.bf16.msra.mxu0 %v3078_v46  ;;  %1649 = vmatpush1.bf16.msra.mxu1 %v3084_v47 }
 0x678   :  { %1968 = vmatprep.subr.bf16.mxu0 %v2262_v59 }
 0x72d   :  { %v1509_v39 = vpop.f32.mrb[40].mxu0  ;;  %v1550_v32 = vpop.f32.mrb[40].mxu1 }
 0x72e   :  { %v1557_v34 = vadd.f32 %v1509_v39, %v1470_v35  ;;  %v1559_v44 = vadd.f32 %v1550_v32, %v1472_v53  ;;  %v1511_v28 = vpop.f32.mrb[41].mxu0  ;;  %v1552_v25 = vpop.f32.mrb[41].mxu1 }
 0x72f   :  { %v1558_v27 = vadd.f32 %v1511_v28, %v1471_v19  ;;  %v1560_v1 = vadd.f32 %v1552_v25, %v1473_v26  ;;  %v1513_v29 = vpop.f32.mrb[42].mxu0  ;;  %v1554_v30 = vpop.f32.mrb[42].mxu1 }
 0x730   :  { %v1928_v7 = vmul.f32 -1.442695, %v1557_v34  ;;  %v1514_v13 = vpop.f32.mrb[43].mxu0  ;;  %v1555_v14 = vpop.f32.mrb[43].mxu1 }
 0x731   :  { %v1929_v9 = vmul.f32 -1.442695, %v1558_v27  ;;  %v1930_v15 = vmul.f32 -1.442695, %v1560_v1 }
 0x732   :  { %2196 = vpow2.f32 %v1928_v7 }
 0x733   :  { %2198 = vpow2.f32 %v1929_v9  ;;  %v1934_v9 = vld [vmem:[%s3177_s5] ss:$0 sm:$0xff] }
 0x734   :  { %2200 = vpow2.f32 %v1930_v15 }
 0x735   :  { %2202 = vtanh.f32 %v1559_v44 }
 0x73c   :  { %v2197_v10 = vpop.eup %2196 }
 0x73d   :  { %v2199_v8 = vpop.eup %2198  ;;  %v1564_v23 = vadd.f32 1.0, %v2197_v10 }
 0x73e   :  { %v1570_v31 = vadd.f32 1.0, %v2199_v8  ;;  %v2201_v12 = vpop.eup %2200 }
 0x73f   :  { %2204 = vrcp.f32 %v1564_v23  ;;  %v2203_v11 = vpop.eup %2202  ;;  %v1577_v43 = vadd.f32 1.0, %v2201_v12 }
 0x740   :  { %2206 = vrcp.f32 %v1570_v31 }
 0x741   :  { %2208 = vrcp.f32 %v1577_v43 }
 0x749   :  { %v2205_v36 = vpop.eup %2204 }
 0x74a   :  { %v2207_v37 = vpop.eup %2206  ;;  %v1581_v42 = vmul.f32 %v2205_v36, %v2203_v11 }
 0x74b   :  { %v1580_v45 = vmul.f32 %v2207_v37, %v3094_v49  ;;  %v2209_v47 = vpop.eup %2208 }
 0x74d   :  { %v3134_v46 = vadd.f32 %v1581_v42, %v1580_v45 }
 0x74f   :  { %2210 = vtanh.f32 %v3134_v46 }
 0x759   :  { %v2211_v55 = vpop.eup %2210 }
 0x75a   :  { %v1584_v56 = vmul.f32 %v2211_v55, %v2209_v47 }
 0x75c   :  { %v1592_v57 = vpack.c.bf16 %v1584_v56, %v1584_v56 }
 0x75e   :  { %1626 = vmatmul.mubr.bf16.vlgmr.msra.gmra.mrb[44].mxu0 %v1592_v57  ;;  %1667 = vmatmul.mubr.bf16.vlgmr.msra.gmra.mrb[44].mxu1 %v1592_v57 }
 0x75f   :  { %1969 = vmatpush3.bf16.msra.mxu0 %v2092_v58  ;;  %1984 = vmatprep.mubr.msk.bf16.mxu0 %vm2263_vm0, %v2262_v59 }
 0x760   :  { %1970 = vmatprep.subr.bf16.mxu0 %v2262_v59 }
 0x763   :  { %1971 = vmatpush3.bf16.msra.mxu0 %v2093_v60 }
 0x764   :  { %1972 = vmatprep.subr.bf16.mxu0 %v2262_v59 }
 0x767   :  { %1973 = vmatpush3.bf16.msra.mxu0 %v2094_v61 }
 0x768   :  { %1974 = vmatprep.subr.bf16.mxu0 %v2262_v59 }
 0x76b   :  { %1975 = vmatpush3.bf16.msra.mxu0 %v2095_v63 }
 0x76c   :  { %1976 = vmatprep.subr.bf16.mxu0 %v2262_v59 }
 0x76f   :  { %1977 = vmatpush3.bf16.msra.mxu0 %v2096_v0 }
 0x770   :  { %1978 = vmatprep.subr.bf16.mxu0 %v2262_v59 }
 0x773   :  { %1979 = vmatpush3.bf16.msra.mxu0 %v2097_v40 }
 0x774   :  { %1980 = vmatprep.subr.bf16.mxu0 %v2262_v59 }
 0x777   :  { %1981 = vmatpush3.bf16.msra.mxu0 %v2098_v2 }
 0x778   :  { %1982 = vmatprep.subr.bf16.mxu0 %v2262_v59 }
 0x77b   :  { %1983 = vmatpush3.bf16.msra.mxu0 %v2099_v41 }
 0x831   :  { %v1627_v24 = vpop.f32.mrb[44].mxu0  ;;  %v1668_v62 = vpop.f32.mrb[44].mxu1 }
 0x832   :  { %v1675_v17 = vadd.f32 %v1627_v24, %v1588_v4  ;;  %v1677_v18 = vadd.f32 %v1668_v62, %v1590_v22  ;;  %v1629_v20 = vpop.f32.mrb[45].mxu0  ;;  %v1670_v21 = vpop.f32.mrb[45].mxu1 }
 0x833   :  { %v1676_v33 = vadd.f32 %v1629_v20, %v1589_v6  ;;  %v1678_v48 = vadd.f32 %v1670_v21, %v1591_v16  ;;  %v1631_v49 = vpop.f32.mrb[46].mxu0  ;;  %v1672_v50 = vpop.f32.mrb[46].mxu1 }
 0x834   :  { %v1931_v51 = vmul.f32 -1.442695, %v1675_v17  ;;  %v1632_v52 = vpop.f32.mrb[47].mxu0  ;;  %v1673_v54 = vpop.f32.mrb[47].mxu1 }
 0x835   :  { %v1932_v35 = vmul.f32 -1.442695, %v1676_v33  ;;  %v1933_v38 = vmul.f32 -1.442695, %v1678_v48 }
 0x836   :  { %2212 = vpow2.f32 %v1931_v51 }
 0x837   :  { %2214 = vpow2.f32 %v1932_v35 }
 0x838   :  { %2216 = vpow2.f32 %v1933_v38 }
 0x839   :  { %2218 = vtanh.f32 %v1677_v18 }
 0x840   :  { %v2213_v53 = vpop.eup %2212 }
 0x841   :  { %v2215_v39 = vpop.eup %2214  ;;  %v1682_v32 = vadd.f32 1.0, %v2213_v53 }
 0x842   :  { %v1688_v19 = vadd.f32 1.0, %v2215_v39  ;;  %v2217_v26 = vpop.eup %2216 }
 0x843   :  { %2220 = vrcp.f32 %v1682_v32  ;;  %v2219_v34 = vpop.eup %2218  ;;  %v1695_v27 = vadd.f32 1.0, %v2217_v26 }
 0x844   :  { %2222 = vrcp.f32 %v1688_v19 }
 0x845   :  { %2224 = vrcp.f32 %v1695_v27 }
 0x84d   :  { %v2221_v44 = vpop.eup %2220 }
 0x84e   :  { %v2223_v28 = vpop.eup %2222  ;;  %v1699_v25 = vmul.f32 %v2221_v44, %v2219_v34 }
 0x84f   :  { %v1698_v1 = vmul.f32 %v2223_v28, %v3134_v46  ;;  %v2225_v30 = vpop.eup %2224 }
 0x851   :  { %v1700_v29 = vadd.f32 %v1699_v25, %v1698_v1 }
 0x853   :  { %2226 = vtanh.f32 %v1700_v29 }
 0x85d   :  { %v2227_v7 = vpop.eup %2226 }
 0x85e   :  { %v1702_v13 = vmul.f32 %v2227_v7, %v2225_v30 }
 0x860   :  { %v1709_v14 = vpack.c.bf16 %v1702_v13, %v1702_v13 }
 0x862   :  { %1985 = vmatmul.mubr.bf16.vlgmr.msra.gmra.mrb[48].mxu0 %v1709_v14 }
 0x935   :  { %v1815_v15 = vpop.f32.mrb[48].mxu0 }
 0x936   :  { %v1816_v10 = vadd.f32 %v1934_v9, %v1815_v15  ;;  %v1986_v8 = vpop.f32.mrb[49].mxu0 }
 0x937   :  { %v1818_v23 = vpop.f32.mrb[50].mxu0 }
 0x938   :  { %1821 = vst [vmem:[%s3178_s6] sm:$0xff] %v1816_v10  ;;  %v1987_v31 = vpop.f32.mrb[51].mxu0 }

</bundles_post_ra>
